<compile_context>
chip_gen: v6e
topology: v6e:2x2x1
jax: 0.10.0
libtpu: 0.0.40
codegen_flags: <defaults>
</compile_context>

<pallas_src>
import functools
import math

import jax
import jax.numpy as jnp
from jax.experimental import pallas as pl
from jax.experimental.pallas import tpu as pltpu

DEPTHS = (16, 32, 32)


# ----------------------------- Pallas kernels ------------------------------

def _conv_kernel(xp_ref, w_ref, b_ref, out_ref, *, scale):
    """3x3 conv (padding=1) on one image.

    xp_ref : (H+2, W*Cin)       H-zero-padded, row-flattened NHWC image
    w_ref  : (3, W*Cin, W*Cout) banded per-row-tap weights (bf16)
    b_ref  : (1, W*Cout)        bias tiled over W (f32)
    out    : (H, W*Cout)        bf16
    """
    H = out_ref.shape[0]
    acc = jnp.dot(xp_ref[0:H, :].astype(jnp.bfloat16), w_ref[0],
                  preferred_element_type=jnp.float32)
    acc = acc + jnp.dot(xp_ref[1:H + 1, :].astype(jnp.bfloat16), w_ref[1],
                        preferred_element_type=jnp.float32)
    acc = acc + jnp.dot(xp_ref[2:H + 2, :].astype(jnp.bfloat16), w_ref[2],
                        preferred_element_type=jnp.float32)
    if scale != 1.0:
        acc = acc * scale          # obs/255 folded in (f32, before the bias)
    acc = acc + b_ref[...]
    out_ref[...] = acc.astype(out_ref.dtype)


def _residual_kernel(xp_ref, w1_ref, b1_ref, w2_ref, b2_ref, out_ref, hpad_ref):
    """Full IMPALA residual block on one image: x + conv2(relu(conv1(relu(x)))).

    xp_ref is the H-zero-padded input x (bf16); hpad_ref is a VMEM scratch
    holding the H-padded intermediate relu(conv1(relu(x))).
    """
    H = out_ref.shape[0]
    acc = jnp.dot(jnp.maximum(xp_ref[0:H, :], 0), w1_ref[0],
                  preferred_element_type=jnp.float32)
    acc = acc + jnp.dot(jnp.maximum(xp_ref[1:H + 1, :], 0), w1_ref[1],
                        preferred_element_type=jnp.float32)
    acc = acc + jnp.dot(jnp.maximum(xp_ref[2:H + 2, :], 0), w1_ref[2],
                        preferred_element_type=jnp.float32)
    h = jnp.maximum(acc + b1_ref[...], 0.0)           # relu(conv1(relu(x))), f32

    hpad_ref[...] = jnp.zeros_like(hpad_ref)          # zero H-padding for conv2
    hpad_ref[1:H + 1, :] = h.astype(hpad_ref.dtype)

    acc2 = jnp.dot(hpad_ref[0:H, :], w2_ref[0], preferred_element_type=jnp.float32)
    acc2 = acc2 + jnp.dot(hpad_ref[1:H + 1, :], w2_ref[1],
                          preferred_element_type=jnp.float32)
    acc2 = acc2 + jnp.dot(hpad_ref[2:H + 2, :], w2_ref[2],
                          preferred_element_type=jnp.float32)
    y = acc2 + b2_ref[...] + xp_ref[1:H + 1, :].astype(jnp.float32)  # + x in f32
    out_ref[...] = y.astype(out_ref.dtype)


def _head_kernel(flat_ref, act_ref, wc_ref, bc_ref, w0f_ref, w0a_ref, b0_ref,
                 w1_ref, b1_ref, w2_ref, b2_ref, w3_ref, b3_ref, out_ref):
    """relu -> cnn linear -> relu -> fused q1/q2 MLPs (one MXU matmul / layer)."""
    x = jnp.maximum(flat_ref[...], 0).astype(jnp.bfloat16)
    f = jnp.dot(x, wc_ref[...], preferred_element_type=jnp.float32) + bc_ref[...]
    f = jnp.maximum(f, 0.0).astype(jnp.bfloat16)
    a = act_ref[...].astype(jnp.bfloat16)
    h = (jnp.dot(f, w0f_ref[...], preferred_element_type=jnp.float32)
         + jnp.dot(a, w0a_ref[...], preferred_element_type=jnp.float32)
         + b0_ref[...])
    h = jnp.maximum(h, 0.0).astype(jnp.bfloat16)
    h = jnp.maximum(jnp.dot(h, w1_ref[...], preferred_element_type=jnp.float32)
                    + b1_ref[...], 0.0).astype(jnp.bfloat16)
    h = jnp.maximum(jnp.dot(h, w2_ref[...], preferred_element_type=jnp.float32)
                    + b2_ref[...], 0.0).astype(jnp.bfloat16)
    out_ref[...] = (jnp.dot(h, w3_ref[...], preferred_element_type=jnp.float32)
                    + b3_ref[...])


# ------------------------------ layer wrappers ------------------------------

def _stage_conv(x, p, scale=1.0):
    """nn.Conv2d(Cin, Cout, 3, padding=1) over (B, H, W*Cin) activations."""
    B, H, K = x.shape
    N = p["w"].shape[2]
    xp = jnp.pad(x, ((0, 0), (1, 1), (0, 0)))
    flops = 2 * B * 3 * H * K * N
    bytes_accessed = (int(xp.size) * xp.dtype.itemsize + int(p["w"].size) * 2
                      + int(p["b"].size) * 4 + B * H * N * 2)
    return pl.pallas_call(
        functools.partial(_conv_kernel, scale=scale),
        out_shape=jax.ShapeDtypeStruct((B, H, N), jnp.bfloat16),
        grid=(B,),
        in_specs=[
            pl.BlockSpec((None, H + 2, K), lambda b: (b, 0, 0)),
            pl.BlockSpec((3, K, N), lambda b: (0, 0, 0)),
            pl.BlockSpec((1, N), lambda b: (0, 0)),
        ],
        out_specs=pl.BlockSpec((None, H, N), lambda b: (b, 0, 0)),
        compiler_params=pltpu.CompilerParams(dimension_semantics=("parallel",)),
        cost_estimate=pl.CostEstimate(flops=flops, transcendentals=0,
                                      bytes_accessed=bytes_accessed),
    )(xp, p["w"], p["b"])


def _residual_block(x, p1, p2):
    """ImpalaResidual (relu->conv->relu->conv->+x) as ONE fused pallas_call."""
    B, H, K = x.shape
    xp = jnp.pad(x, ((0, 0), (1, 1), (0, 0)))
    flops = 2 * B * 6 * H * K * K
    bytes_accessed = (int(xp.size) * 2
                      + (int(p1["w"].size) + int(p2["w"].size)) * 2
                      + (int(p1["b"].size) + int(p2["b"].size)) * 4
                      + B * H * K * 2)
    return pl.pallas_call(
        _residual_kernel,
        out_shape=jax.ShapeDtypeStruct((B, H, K), jnp.bfloat16),
        grid=(B,),
        in_specs=[
            pl.BlockSpec((None, H + 2, K), lambda b: (b, 0, 0)),
            pl.BlockSpec((3, K, K), lambda b: (0, 0, 0)),
            pl.BlockSpec((1, K), lambda b: (0, 0)),
            pl.BlockSpec((3, K, K), lambda b: (0, 0, 0)),
            pl.BlockSpec((1, K), lambda b: (0, 0)),
        ],
        out_specs=pl.BlockSpec((None, H, K), lambda b: (b, 0, 0)),
        scratch_shapes=[pltpu.VMEM((H + 2, K), jnp.bfloat16)],
        compiler_params=pltpu.CompilerParams(dimension_semantics=("parallel",)),
        cost_estimate=pl.CostEstimate(flops=flops, transcendentals=0,
                                      bytes_accessed=bytes_accessed),
    )(xp, p1["w"], p1["b"], p2["w"], p2["b"])


def _maxpool(x, C):
    """nn.MaxPool2d(3, stride=2, padding=1).  Wrapper-level jnp.maximum tree of
    the 9 strided windows (XLA fuses it; avoids the 9x stacked HBM tensor)."""
    B, H, WC = x.shape
    W = WC // C
    Ho = (H - 1) // 2 + 1
    Wo = (W - 1) // 2 + 1
    x4 = x.reshape(B, H, W, C)
    xp = jnp.pad(x4, ((0, 0), (1, 1), (1, 1), (0, 0)), constant_values=-jnp.inf)
    m = None
    for kh in range(3):
        for kw in range(3):
            win = xp[:, kh:kh + 2 * Ho - 1:2, kw:kw + 2 * Wo - 1:2, :]
            m = win if m is None else jnp.maximum(m, win)
    return m.reshape(B, Ho, Wo * C)


def _head(flat, act, hp):
    """Flatten-relu -> cnn linear -> relu -> fused q1/q2 MLPs, one pallas_call."""
    B, dflat = flat.shape
    A = act.shape[1]
    TB = B if B <= 256 else 256
    names = ("w_cnn", "b_cnn", "w0f", "w0a", "b0", "w1", "b1", "w2", "b2",
             "w3", "b3")
    weights = [hp[n] for n in names]
    w_specs = [pl.BlockSpec(tuple(w.shape), lambda i: (0, 0)) for w in weights]
    flops = 2 * B * (dflat * 256 + 256 * 512 + A * 512 + 2 * 512 * 512 + 512 * 2)
    bytes_accessed = (int(flat.size) * 2 + int(act.size) * 4
                      + sum(int(w.size) * w.dtype.itemsize for w in weights)
                      + B * 2 * 4)
    return pl.pallas_call(
        _head_kernel,
        out_shape=jax.ShapeDtypeStruct((B, 2), jnp.float32),
        grid=(pl.cdiv(B, TB),),
        in_specs=[pl.BlockSpec((TB, dflat), lambda i: (i, 0)),
                  pl.BlockSpec((TB, A), lambda i: (i, 0))] + w_specs,
        out_specs=pl.BlockSpec((TB, 2), lambda i: (i, 0)),
        compiler_params=pltpu.CompilerParams(dimension_semantics=("parallel",)),
        cost_estimate=pl.CostEstimate(flops=flops, transcendentals=0,
                                      bytes_accessed=bytes_accessed),
    )(flat, act, *weights)


# ------------------------------ parameter init ------------------------------

def _uniform(key, shape, bound):
    return jax.random.uniform(key, shape, jnp.float32, -bound, bound)


def _expand_conv(w_hwio, W):
    """(3,3,Cin,Cout) conv weights -> banded (3, W*Cin, W*Cout) matmul weights.

    E[kh][wi*Cin+ci, wo*Cout+co] = w[kh, wi-wo+1, ci, co] when |wi-wo| <= 1 else 0,
    so the zero W-padding of Conv2d(padding=1) is encoded in the band and never
    materialized; the H-padding is handled by the kernels' row taps.
    """
    Cin, Cout = w_hwio.shape[2], w_hwio.shape[3]
    wi = jnp.arange(W)[:, None]
    wo = jnp.arange(W)[None, :]
    kw = wi - wo + 1
    valid = (kw >= 0) & (kw <= 2)
    g = jnp.take(w_hwio, jnp.clip(kw, 0, 2), axis=1)       # (3, W, W, Cin, Cout)
    g = jnp.where(valid[None, :, :, None, None], g, 0.0)
    return jnp.transpose(g, (0, 1, 3, 2, 4)).reshape(3, W * Cin, W * Cout)


def _init_conv(key, cin, cout, W):
    kw, kb = jax.random.split(key)
    bound = 1.0 / math.sqrt(cin * 9)
    w = _uniform(kw, (3, 3, cin, cout), bound)
    b = _uniform(kb, (cout,), bound)
    return {"w": _expand_conv(w, W).astype(jnp.bfloat16),
            "b": jnp.tile(b, W).reshape(1, W * cout)}          # bias stays f32


def _init_linear(key, din, dout):
    kw, kb = jax.random.split(key)
    bound = 1.0 / math.sqrt(din)
    return _uniform(kw, (din, dout), bound), _uniform(kb, (dout,), bound)


def _block_diag(a, b):
    za = jnp.zeros((a.shape[0], b.shape[1]), jnp.float32)
    zb = jnp.zeros((b.shape[0], a.shape[1]), jnp.float32)
    return jnp.concatenate([jnp.concatenate([a, za], axis=1),
                            jnp.concatenate([zb, b], axis=1)], axis=0)


def init_critic_cnn(key, obs_dim, act_dim):
    ks = iter(jax.random.split(key, 32))
    S, cin = obs_dim, 3
    stages = []
    for cout in DEPTHS:
        Sp = (S - 1) // 2 + 1                   # MaxPool2d(3, 2, 1) output size
        stages.append({
            "conv": _init_conv(next(ks), cin, cout, S),
            "res": [(_init_conv(next(ks), cout, cout, Sp),
                     _init_conv(next(ks), cout, cout, Sp)) for _ in range(2)],
        })
        S, cin = Sp, cout

    # CNN linear: permute its rows once so the NHWC flatten at runtime matches
    # PyTorch's NCHW x.view(B, -1) (no runtime transpose).
    flat_dim = S * S * cin
    w_lin, b_lin = _init_linear(next(ks), flat_dim, 256)
    hh, ww, cc = jnp.meshgrid(jnp.arange(S), jnp.arange(S), jnp.arange(cin),
                              indexing="ij")
    perm = (cc * S * S + hh * S + ww).reshape(-1)
    w_lin = w_lin[perm, :]

    # q1/q2 MLPs fused per layer: layer0 concatenated on the output dim, later
    # layers block-diagonal, so every hidden layer is one lane-dense 512-wide matmul.
    sizes = [256 + act_dim, 256, 256, 256, 1]
    q1 = [_init_linear(next(ks), sizes[i], sizes[i + 1]) for i in range(4)]
    q2 = [_init_linear(next(ks), sizes[i], sizes[i + 1]) for i in range(4)]
    head = {
        "w_cnn": w_lin.astype(jnp.bfloat16),
        "b_cnn": b_lin.reshape(1, -1),
        "w0f": jnp.concatenate([q1[0][0][:256], q2[0][0][:256]],
                               axis=1).astype(jnp.bfloat16),
        "w0a": jnp.concatenate([q1[0][0][256:], q2[0][0][256:]],
                               axis=1).astype(jnp.bfloat16),
        "b0": jnp.concatenate([q1[0][1], q2[0][1]]).reshape(1, -1),
        "w1": _block_diag(q1[1][0], q2[1][0]).astype(jnp.bfloat16),
        "b1": jnp.concatenate([q1[1][1], q2[1][1]]).reshape(1, -1),
        "w2": _block_diag(q1[2][0], q2[2][0]).astype(jnp.bfloat16),
        "b2": jnp.concatenate([q1[2][1], q2[2][1]]).reshape(1, -1),
        "w3": _block_diag(q1[3][0], q2[3][0]).astype(jnp.bfloat16),
        "b3": jnp.concatenate([q1[3][1], q2[3][1]]).reshape(1, -1),
    }
    return {"stages": stages, "head": head}


# -------------------------------- forward ----------------------------------

def critic_cnn_forward(params, obs, act):
    B, H, W, C = obs.shape
    x = obs.astype(jnp.float32).reshape(B, H, W * C)    # row-flattened NHWC
    scale = 1.0 / 255.0                                 # obs/255 fused into conv #1
    for stage, cout in zip(params["stages"], DEPTHS):
        x = _stage_conv(x, stage["conv"], scale=scale)
        scale = 1.0
        x = _maxpool(x, cout)
        for p1, p2 in stage["res"]:
            x = _residual_block(x, p1, p2)
    flat = x.reshape(B, -1)                             # NHWC flatten (see init)
    q = _head(flat, act.astype(jnp.float32), params["head"])
    return q[:, 0:1], q[:, 1:2]


# ---------------------------------- main ------------------------------------

if __name__ == "__main__":
    obs_dim, act_dim, batch = 16, 4, 2        # obs: (B, obs_dim, obs_dim, 3) NHWC
    key = jax.random.PRNGKey(0)
    kp, ko, ka = jax.random.split(key, 3)
    params = init_critic_cnn(kp, obs_dim, act_dim)
    obs = jax.random.uniform(ko, (batch, obs_dim, obs_dim, 3), jnp.float32,
                             0.0, 255.0)
    act = jax.random.normal(ka, (batch, act_dim), jnp.float32)

    fwd = jax.jit(critic_cnn_forward)
    q1, q2 = fwd(params, obs, act)
    jax.block_until_ready((q1, q2))
    assert q1.shape == (batch, 1) and q2.shape == (batch, 1)
    assert q1.dtype == jnp.float32 and q2.dtype == jnp.float32
    print("KERNEL_OK")
</pallas_src>

<mosaic_0001>
module attributes {stable_mosaic.version = 11 : i64} {
  func.func @_conv_kernel(%arg0: i32, %arg1: memref<1x18x48xf32, #tpu.memory_space<vmem>>, %arg2: memref<3x48x256xbf16, #tpu.memory_space<vmem>>, %arg3: memref<1x256xf32, #tpu.memory_space<vmem>>, %arg4: memref<1x16x256xbf16, #tpu.memory_space<vmem>>) attributes {dimension_semantics = [#tpu.dimension_semantics<parallel>], iteration_bounds = array<i64: 2>, scalar_prefetch = 0 : i64, scratch_operands = 0 : i64, tpu.core_type = #tpu.core_type<tc>, window_params = [{transform_indices = @transform_0, window_bounds = array<i64: 1, 18, 48>}, {pipeline_mode = #tpu.pipeline_mode<synchronous>, transform_indices = @transform_1, window_bounds = array<i64: 3, 48, 256>}, {pipeline_mode = #tpu.pipeline_mode<synchronous>, transform_indices = @transform_2, window_bounds = array<i64: 1, 256>}, {transform_indices = @transform_3, window_bounds = array<i64: 1, 16, 256>}]} {
    %c0 = arith.constant 0 : index
    %c0_0 = arith.constant 0 : index
    %c0_1 = arith.constant 0 : index
    %0 = vector.load %arg1[%c0, %c0_0, %c0_1] : memref<1x18x48xf32, #tpu.memory_space<vmem>>, vector<1x16x48xf32>
    %1 = vector.shape_cast %0 : vector<1x16x48xf32> to vector<16x48xf32>
    %2 = arith.truncf %1 : vector<16x48xf32> to vector<16x48xbf16>
    %c0_2 = arith.constant 0 : index
    %c0_3 = arith.constant 0 : index
    %c0_4 = arith.constant 0 : index
    %3 = vector.load %arg2[%c0_2, %c0_3, %c0_4] : memref<3x48x256xbf16, #tpu.memory_space<vmem>>, vector<1x48x256xbf16>
    %4 = vector.shape_cast %3 : vector<1x48x256xbf16> to vector<48x256xbf16>
    %cst = arith.constant dense<0.000000e+00> : vector<16x256xf32>
    %5 = tpu.matmul %2, %4, %cst {dimension_numbers = #tpu.dot_dimension_numbers<[1], [0], [0], [1], [0, 0, 1, 1], [], []>} : vector<16x48xbf16>, vector<48x256xbf16>, vector<16x256xf32> -> vector<16x256xf32>
    %c0_5 = arith.constant 0 : index
    %c1 = arith.constant 1 : index
    %c0_6 = arith.constant 0 : index
    %6 = vector.load %arg1[%c0_5, %c1, %c0_6] : memref<1x18x48xf32, #tpu.memory_space<vmem>>, vector<1x16x48xf32>
    %7 = vector.shape_cast %6 : vector<1x16x48xf32> to vector<16x48xf32>
    %8 = arith.truncf %7 : vector<16x48xf32> to vector<16x48xbf16>
    %c1_7 = arith.constant 1 : index
    %c0_8 = arith.constant 0 : index
    %c0_9 = arith.constant 0 : index
    %9 = vector.load %arg2[%c1_7, %c0_8, %c0_9] : memref<3x48x256xbf16, #tpu.memory_space<vmem>>, vector<1x48x256xbf16>
    %10 = vector.shape_cast %9 : vector<1x48x256xbf16> to vector<48x256xbf16>
    %cst_10 = arith.constant dense<0.000000e+00> : vector<16x256xf32>
    %11 = tpu.matmul %8, %10, %cst_10 {dimension_numbers = #tpu.dot_dimension_numbers<[1], [0], [0], [1], [0, 0, 1, 1], [], []>} : vector<16x48xbf16>, vector<48x256xbf16>, vector<16x256xf32> -> vector<16x256xf32>
    %12 = arith.addf %5, %11 : vector<16x256xf32>
    %c0_11 = arith.constant 0 : index
    %c2 = arith.constant 2 : index
    %c0_12 = arith.constant 0 : index
    %13 = vector.load %arg1[%c0_11, %c2, %c0_12] : memref<1x18x48xf32, #tpu.memory_space<vmem>>, vector<1x16x48xf32>
    %14 = vector.shape_cast %13 : vector<1x16x48xf32> to vector<16x48xf32>
    %15 = arith.truncf %14 : vector<16x48xf32> to vector<16x48xbf16>
    %c2_13 = arith.constant 2 : index
    %c0_14 = arith.constant 0 : index
    %c0_15 = arith.constant 0 : index
    %16 = vector.load %arg2[%c2_13, %c0_14, %c0_15] : memref<3x48x256xbf16, #tpu.memory_space<vmem>>, vector<1x48x256xbf16>
    %17 = vector.shape_cast %16 : vector<1x48x256xbf16> to vector<48x256xbf16>
    %cst_16 = arith.constant dense<0.000000e+00> : vector<16x256xf32>
    %18 = tpu.matmul %15, %17, %cst_16 {dimension_numbers = #tpu.dot_dimension_numbers<[1], [0], [0], [1], [0, 0, 1, 1], [], []>} : vector<16x48xbf16>, vector<48x256xbf16>, vector<16x256xf32> -> vector<16x256xf32>
    %19 = arith.addf %12, %18 : vector<16x256xf32>
    %cst_17 = arith.constant 0.00392156886 : f32
    %20 = vector.broadcast %cst_17 : f32 to vector<16x256xf32>
    %21 = arith.mulf %19, %20 : vector<16x256xf32>
    %c0_18 = arith.constant 0 : index
    %c0_19 = arith.constant 0 : index
    %22 = vector.load %arg3[%c0_18, %c0_19] : memref<1x256xf32, #tpu.memory_space<vmem>>, vector<1x256xf32>
    %23 = vector.broadcast %22 : vector<1x256xf32> to vector<16x256xf32>
    %24 = arith.addf %21, %23 : vector<16x256xf32>
    %25 = arith.truncf %24 : vector<16x256xf32> to vector<16x256xbf16>
    %c0_20 = arith.constant 0 : index
    %c0_21 = arith.constant 0 : index
    %c0_22 = arith.constant 0 : index
    %26 = vector.load %arg4[%c0_20, %c0_21, %c0_22] : memref<1x16x256xbf16, #tpu.memory_space<vmem>>, vector<1x16x256xbf16>
    %27 = vector.shape_cast %26 : vector<1x16x256xbf16> to vector<16x256xbf16>
    %28 = vector.shape_cast %25 : vector<16x256xbf16> to vector<1x16x256xbf16>
    tpu.vector_store %arg4[%c0_20, %c0_21, %c0_22], %28 {strides = array<i32>} : memref<1x16x256xbf16, #tpu.memory_space<vmem>>, vector<1x16x256xbf16>,
    return
  }
  func.func @transform_0(%arg0: i32) -> (i32, i32, i32) {
    %c0_i32 = arith.constant 0 : i32
    %c0_i32_0 = arith.constant 0 : i32
    %c0_i32_1 = arith.constant 0 : i32
    return %arg0, %c0_i32, %c0_i32_0 : i32, i32, i32
  }
  func.func @transform_1(%arg0: i32) -> (i32, i32, i32) {
    %c0_i32 = arith.constant 0 : i32
    %c0_i32_0 = arith.constant 0 : i32
    %c0_i32_1 = arith.constant 0 : i32
    %c0_i32_2 = arith.constant 0 : i32
    return %c0_i32, %c0_i32_0, %c0_i32_1 : i32, i32, i32
  }
  func.func @transform_2(%arg0: i32) -> (i32, i32) {
    %c0_i32 = arith.constant 0 : i32
    %c0_i32_0 = arith.constant 0 : i32
    %c0_i32_1 = arith.constant 0 : i32
    return %c0_i32, %c0_i32_0 : i32, i32
  }
  func.func @transform_3(%arg0: i32) -> (i32, i32, i32) {
    %c0_i32 = arith.constant 0 : i32
    %c0_i32_0 = arith.constant 0 : i32
    %c0_i32_1 = arith.constant 0 : i32
    return %arg0, %c0_i32, %c0_i32_0 : i32, i32, i32
  }
}

module attributes {stable_mosaic.version = 11 : i64} {
  func.func @_conv_kernel(%arg0: i32, %arg1: memref<1x10x128xbf16, #tpu.memory_space<vmem>>, %arg2: memref<3x128x256xbf16, #tpu.memory_space<vmem>>, %arg3: memref<1x256xf32, #tpu.memory_space<vmem>>, %arg4: memref<1x8x256xbf16, #tpu.memory_space<vmem>>) attributes {dimension_semantics = [#tpu.dimension_semantics<parallel>], iteration_bounds = array<i64: 2>, scalar_prefetch = 0 : i64, scratch_operands = 0 : i64, tpu.core_type = #tpu.core_type<tc>, window_params = [{transform_indices = @transform_0, window_bounds = array<i64: 1, 10, 128>}, {pipeline_mode = #tpu.pipeline_mode<synchronous>, transform_indices = @transform_1, window_bounds = array<i64: 3, 128, 256>}, {pipeline_mode = #tpu.pipeline_mode<synchronous>, transform_indices = @transform_2, window_bounds = array<i64: 1, 256>}, {transform_indices = @transform_3, window_bounds = array<i64: 1, 8, 256>}]} {
    %c0 = arith.constant 0 : index
    %c0_0 = arith.constant 0 : index
    %c0_1 = arith.constant 0 : index
    %0 = vector.load %arg1[%c0, %c0_0, %c0_1] : memref<1x10x128xbf16, #tpu.memory_space<vmem>>, vector<1x8x128xbf16>
    %1 = vector.shape_cast %0 : vector<1x8x128xbf16> to vector<8x128xbf16>
    %c0_2 = arith.constant 0 : index
    %c0_3 = arith.constant 0 : index
    %c0_4 = arith.constant 0 : index
    %2 = vector.load %arg2[%c0_2, %c0_3, %c0_4] : memref<3x128x256xbf16, #tpu.memory_space<vmem>>, vector<1x128x256xbf16>
    %3 = vector.shape_cast %2 : vector<1x128x256xbf16> to vector<128x256xbf16>
    %cst = arith.constant dense<0.000000e+00> : vector<8x256xf32>
    %4 = tpu.matmul %1, %3, %cst {dimension_numbers = #tpu.dot_dimension_numbers<[1], [0], [0], [1], [0, 0, 1, 1], [], []>} : vector<8x128xbf16>, vector<128x256xbf16>, vector<8x256xf32> -> vector<8x256xf32>
    %c0_5 = arith.constant 0 : index
    %c1 = arith.constant 1 : index
    %c0_6 = arith.constant 0 : index
    %5 = vector.load %arg1[%c0_5, %c1, %c0_6] : memref<1x10x128xbf16, #tpu.memory_space<vmem>>, vector<1x8x128xbf16>
    %6 = vector.shape_cast %5 : vector<1x8x128xbf16> to vector<8x128xbf16>
    %c1_7 = arith.constant 1 : index
    %c0_8 = arith.constant 0 : index
    %c0_9 = arith.constant 0 : index
    %7 = vector.load %arg2[%c1_7, %c0_8, %c0_9] : memref<3x128x256xbf16, #tpu.memory_space<vmem>>, vector<1x128x256xbf16>
    %8 = vector.shape_cast %7 : vector<1x128x256xbf16> to vector<128x256xbf16>
    %cst_10 = arith.constant dense<0.000000e+00> : vector<8x256xf32>
    %9 = tpu.matmul %6, %8, %cst_10 {dimension_numbers = #tpu.dot_dimension_numbers<[1], [0], [0], [1], [0, 0, 1, 1], [], []>} : vector<8x128xbf16>, vector<128x256xbf16>, vector<8x256xf32> -> vector<8x256xf32>
    %10 = arith.addf %4, %9 : vector<8x256xf32>
    %c0_11 = arith.constant 0 : index
    %c2 = arith.constant 2 : index
    %c0_12 = arith.constant 0 : index
    %11 = vector.load %arg1[%c0_11, %c2, %c0_12] : memref<1x10x128xbf16, #tpu.memory_space<vmem>>, vector<1x8x128xbf16>
    %12 = vector.shape_cast %11 : vector<1x8x128xbf16> to vector<8x128xbf16>
    %c2_13 = arith.constant 2 : index
    %c0_14 = arith.constant 0 : index
    %c0_15 = arith.constant 0 : index
    %13 = vector.load %arg2[%c2_13, %c0_14, %c0_15] : memref<3x128x256xbf16, #tpu.memory_space<vmem>>, vector<1x128x256xbf16>
    %14 = vector.shape_cast %13 : vector<1x128x256xbf16> to vector<128x256xbf16>
    %cst_16 = arith.constant dense<0.000000e+00> : vector<8x256xf32>
    %15 = tpu.matmul %12, %14, %cst_16 {dimension_numbers = #tpu.dot_dimension_numbers<[1], [0], [0], [1], [0, 0, 1, 1], [], []>} : vector<8x128xbf16>, vector<128x256xbf16>, vector<8x256xf32> -> vector<8x256xf32>
    %16 = arith.addf %10, %15 : vector<8x256xf32>
    %c0_17 = arith.constant 0 : index
    %c0_18 = arith.constant 0 : index
    %17 = vector.load %arg3[%c0_17, %c0_18] : memref<1x256xf32, #tpu.memory_space<vmem>>, vector<1x256xf32>
    %18 = vector.broadcast %17 : vector<1x256xf32> to vector<8x256xf32>
    %19 = arith.addf %16, %18 : vector<8x256xf32>
    %20 = arith.truncf %19 : vector<8x256xf32> to vector<8x256xbf16>
    %c0_19 = arith.constant 0 : index
    %c0_20 = arith.constant 0 : index
    %c0_21 = arith.constant 0 : index
    %21 = vector.load %arg4[%c0_19, %c0_20, %c0_21] : memref<1x8x256xbf16, #tpu.memory_space<vmem>>, vector<1x8x256xbf16>
    %22 = vector.shape_cast %21 : vector<1x8x256xbf16> to vector<8x256xbf16>
    %23 = vector.shape_cast %20 : vector<8x256xbf16> to vector<1x8x256xbf16>
    tpu.vector_store %arg4[%c0_19, %c0_20, %c0_21], %23 {strides = array<i32>} : memref<1x8x256xbf16, #tpu.memory_space<vmem>>, vector<1x8x256xbf16>,
    return
  }
  func.func @transform_0(%arg0: i32) -> (i32, i32, i32) {
    %c0_i32 = arith.constant 0 : i32
    %c0_i32_0 = arith.constant 0 : i32
    %c0_i32_1 = arith.constant 0 : i32
    return %arg0, %c0_i32, %c0_i32_0 : i32, i32, i32
  }
  func.func @transform_1(%arg0: i32) -> (i32, i32, i32) {
    %c0_i32 = arith.constant 0 : i32
    %c0_i32_0 = arith.constant 0 : i32
    %c0_i32_1 = arith.constant 0 : i32
    %c0_i32_2 = arith.constant 0 : i32
    return %c0_i32, %c0_i32_0, %c0_i32_1 : i32, i32, i32
  }
  func.func @transform_2(%arg0: i32) -> (i32, i32) {
    %c0_i32 = arith.constant 0 : i32
    %c0_i32_0 = arith.constant 0 : i32
    %c0_i32_1 = arith.constant 0 : i32
    return %c0_i32, %c0_i32_0 : i32, i32
  }
  func.func @transform_3(%arg0: i32) -> (i32, i32, i32) {
    %c0_i32 = arith.constant 0 : i32
    %c0_i32_0 = arith.constant 0 : i32
    %c0_i32_1 = arith.constant 0 : i32
    return %arg0, %c0_i32, %c0_i32_0 : i32, i32, i32
  }
}

module attributes {stable_mosaic.version = 11 : i64} {
  func.func @_residual_kernel(%arg0: i32, %arg1: memref<1x10x128xbf16, #tpu.memory_space<vmem>>, %arg2: memref<3x128x128xbf16, #tpu.memory_space<vmem>>, %arg3: memref<1x128xf32, #tpu.memory_space<vmem>>, %arg4: memref<3x128x128xbf16, #tpu.memory_space<vmem>>, %arg5: memref<1x128xf32, #tpu.memory_space<vmem>>, %arg6: memref<1x8x128xbf16, #tpu.memory_space<vmem>>, %arg7: memref<10x128xbf16, #tpu.memory_space<vmem>>) attributes {dimension_semantics = [#tpu.dimension_semantics<parallel>], iteration_bounds = array<i64: 2>, scalar_prefetch = 0 : i64, scratch_operands = 1 : i64, tpu.core_type = #tpu.core_type<tc>, window_params = [{transform_indices = @transform_0, window_bounds = array<i64: 1, 10, 128>}, {pipeline_mode = #tpu.pipeline_mode<synchronous>, transform_indices = @transform_1, window_bounds = array<i64: 3, 128, 128>}, {pipeline_mode = #tpu.pipeline_mode<synchronous>, transform_indices = @transform_2, window_bounds = array<i64: 1, 128>}, {pipeline_mode = #tpu.pipeline_mode<synchronous>, transform_indices = @transform_3, window_bounds = array<i64: 3, 128, 128>}, {pipeline_mode = #tpu.pipeline_mode<synchronous>, transform_indices = @transform_4, window_bounds = array<i64: 1, 128>}, {transform_indices = @transform_5, window_bounds = array<i64: 1, 8, 128>}]} {
    %c0 = arith.constant 0 : index
    %c0_0 = arith.constant 0 : index
    %c0_1 = arith.constant 0 : index
    %0 = vector.load %arg1[%c0, %c0_0, %c0_1] : memref<1x10x128xbf16, #tpu.memory_space<vmem>>, vector<1x8x128xbf16>
    %1 = vector.shape_cast %0 : vector<1x8x128xbf16> to vector<8x128xbf16>
    %cst = arith.constant 0.000000e+00 : bf16
    %2 = vector.broadcast %cst : bf16 to vector<8x128xbf16>
    %3 = arith.maximumf %1, %2 : vector<8x128xbf16>
    %c0_2 = arith.constant 0 : index
    %c0_3 = arith.constant 0 : index
    %c0_4 = arith.constant 0 : index
    %4 = vector.load %arg2[%c0_2, %c0_3, %c0_4] : memref<3x128x128xbf16, #tpu.memory_space<vmem>>, vector<1x128x128xbf16>
    %5 = vector.shape_cast %4 : vector<1x128x128xbf16> to vector<128x128xbf16>
    %cst_5 = arith.constant dense<0.000000e+00> : vector<8x128xf32>
    %6 = tpu.matmul %3, %5, %cst_5 {dimension_numbers = #tpu.dot_dimension_numbers<[1], [0], [0], [1], [0, 0, 1, 1], [], []>} : vector<8x128xbf16>, vector<128x128xbf16>, vector<8x128xf32> -> vector<8x128xf32>
    %c0_6 = arith.constant 0 : index
    %c1 = arith.constant 1 : index
    %c0_7 = arith.constant 0 : index
    %7 = vector.load %arg1[%c0_6, %c1, %c0_7] : memref<1x10x128xbf16, #tpu.memory_space<vmem>>, vector<1x8x128xbf16>
    %8 = vector.shape_cast %7 : vector<1x8x128xbf16> to vector<8x128xbf16>
    %cst_8 = arith.constant 0.000000e+00 : bf16
    %9 = vector.broadcast %cst_8 : bf16 to vector<8x128xbf16>
    %10 = arith.maximumf %8, %9 : vector<8x128xbf16>
    %c1_9 = arith.constant 1 : index
    %c0_10 = arith.constant 0 : index
    %c0_11 = arith.constant 0 : index
    %11 = vector.load %arg2[%c1_9, %c0_10, %c0_11] : memref<3x128x128xbf16, #tpu.memory_space<vmem>>, vector<1x128x128xbf16>
    %12 = vector.shape_cast %11 : vector<1x128x128xbf16> to vector<128x128xbf16>
    %cst_12 = arith.constant dense<0.000000e+00> : vector<8x128xf32>
    %13 = tpu.matmul %10, %12, %cst_12 {dimension_numbers = #tpu.dot_dimension_numbers<[1], [0], [0], [1], [0, 0, 1, 1], [], []>} : vector<8x128xbf16>, vector<128x128xbf16>, vector<8x128xf32> -> vector<8x128xf32>
    %14 = arith.addf %6, %13 : vector<8x128xf32>
    %c0_13 = arith.constant 0 : index
    %c2 = arith.constant 2 : index
    %c0_14 = arith.constant 0 : index
    %15 = vector.load %arg1[%c0_13, %c2, %c0_14] : memref<1x10x128xbf16, #tpu.memory_space<vmem>>, vector<1x8x128xbf16>
    %16 = vector.shape_cast %15 : vector<1x8x128xbf16> to vector<8x128xbf16>
    %cst_15 = arith.constant 0.000000e+00 : bf16
    %17 = vector.broadcast %cst_15 : bf16 to vector<8x128xbf16>
    %18 = arith.maximumf %16, %17 : vector<8x128xbf16>
    %c2_16 = arith.constant 2 : index
    %c0_17 = arith.constant 0 : index
    %c0_18 = arith.constant 0 : index
    %19 = vector.load %arg2[%c2_16, %c0_17, %c0_18] : memref<3x128x128xbf16, #tpu.memory_space<vmem>>, vector<1x128x128xbf16>
    %20 = vector.shape_cast %19 : vector<1x128x128xbf16> to vector<128x128xbf16>
    %cst_19 = arith.constant dense<0.000000e+00> : vector<8x128xf32>
    %21 = tpu.matmul %18, %20, %cst_19 {dimension_numbers = #tpu.dot_dimension_numbers<[1], [0], [0], [1], [0, 0, 1, 1], [], []>} : vector<8x128xbf16>, vector<128x128xbf16>, vector<8x128xf32> -> vector<8x128xf32>
    %22 = arith.addf %14, %21 : vector<8x128xf32>
    %c0_20 = arith.constant 0 : index
    %c0_21 = arith.constant 0 : index
    %23 = vector.load %arg3[%c0_20, %c0_21] : memref<1x128xf32, #tpu.memory_space<vmem>>, vector<1x128xf32>
    %24 = vector.broadcast %23 : vector<1x128xf32> to vector<8x128xf32>
    %25 = arith.addf %22, %24 : vector<8x128xf32>
    %cst_22 = arith.constant 0.000000e+00 : f32
    %26 = vector.broadcast %cst_22 : f32 to vector<8x128xf32>
    %27 = arith.maximumf %25, %26 : vector<8x128xf32>
    %cst_23 = arith.constant 0.000000e+00 : bf16
    %28 = vector.broadcast %cst_23 : bf16 to vector<10x128xbf16>
    %c0_24 = arith.constant 0 : index
    %c0_25 = arith.constant 0 : index
    %29 = vector.load %arg7[%c0_24, %c0_25] : memref<10x128xbf16, #tpu.memory_space<vmem>>, vector<10x128xbf16>
    tpu.vector_store %arg7[%c0_24, %c0_25], %28 {strides = array<i32>} : memref<10x128xbf16, #tpu.memory_space<vmem>>, vector<10x128xbf16>,
    %30 = arith.truncf %27 : vector<8x128xf32> to vector<8x128xbf16>
    %c1_26 = arith.constant 1 : index
    %c0_27 = arith.constant 0 : index
    %31 = vector.load %arg7[%c1_26, %c0_27] : memref<10x128xbf16, #tpu.memory_space<vmem>>, vector<8x128xbf16>
    tpu.vector_store %arg7[%c1_26, %c0_27], %30 {strides = array<i32>} : memref<10x128xbf16, #tpu.memory_space<vmem>>, vector<8x128xbf16>,
    %c0_28 = arith.constant 0 : index
    %c0_29 = arith.constant 0 : index
    %32 = vector.load %arg7[%c0_28, %c0_29] : memref<10x128xbf16, #tpu.memory_space<vmem>>, vector<8x128xbf16>
    %c0_30 = arith.constant 0 : index
    %c0_31 = arith.constant 0 : index
    %c0_32 = arith.constant 0 : index
    %33 = vector.load %arg4[%c0_30, %c0_31, %c0_32] : memref<3x128x128xbf16, #tpu.memory_space<vmem>>, vector<1x128x128xbf16>
    %34 = vector.shape_cast %33 : vector<1x128x128xbf16> to vector<128x128xbf16>
    %cst_33 = arith.constant dense<0.000000e+00> : vector<8x128xf32>
    %35 = tpu.matmul %32, %34, %cst_33 {dimension_numbers = #tpu.dot_dimension_numbers<[1], [0], [0], [1], [0, 0, 1, 1], [], []>} : vector<8x128xbf16>, vector<128x128xbf16>, vector<8x128xf32> -> vector<8x128xf32>
    %c1_34 = arith.constant 1 : index
    %c0_35 = arith.constant 0 : index
    %36 = vector.load %arg7[%c1_34, %c0_35] : memref<10x128xbf16, #tpu.memory_space<vmem>>, vector<8x128xbf16>
    %c1_36 = arith.constant 1 : index
    %c0_37 = arith.constant 0 : index
    %c0_38 = arith.constant 0 : index
    %37 = vector.load %arg4[%c1_36, %c0_37, %c0_38] : memref<3x128x128xbf16, #tpu.memory_space<vmem>>, vector<1x128x128xbf16>
    %38 = vector.shape_cast %37 : vector<1x128x128xbf16> to vector<128x128xbf16>
    %cst_39 = arith.constant dense<0.000000e+00> : vector<8x128xf32>
    %39 = tpu.matmul %36, %38, %cst_39 {dimension_numbers = #tpu.dot_dimension_numbers<[1], [0], [0], [1], [0, 0, 1, 1], [], []>} : vector<8x128xbf16>, vector<128x128xbf16>, vector<8x128xf32> -> vector<8x128xf32>
    %40 = arith.addf %35, %39 : vector<8x128xf32>
    %c2_40 = arith.constant 2 : index
    %c0_41 = arith.constant 0 : index
    %41 = vector.load %arg7[%c2_40, %c0_41] : memref<10x128xbf16, #tpu.memory_space<vmem>>, vector<8x128xbf16>
    %c2_42 = arith.constant 2 : index
    %c0_43 = arith.constant 0 : index
    %c0_44 = arith.constant 0 : index
    %42 = vector.load %arg4[%c2_42, %c0_43, %c0_44] : memref<3x128x128xbf16, #tpu.memory_space<vmem>>, vector<1x128x128xbf16>
    %43 = vector.shape_cast %42 : vector<1x128x128xbf16> to vector<128x128xbf16>
    %cst_45 = arith.constant dense<0.000000e+00> : vector<8x128xf32>
    %44 = tpu.matmul %41, %43, %cst_45 {dimension_numbers = #tpu.dot_dimension_numbers<[1], [0], [0], [1], [0, 0, 1, 1], [], []>} : vector<8x128xbf16>, vector<128x128xbf16>, vector<8x128xf32> -> vector<8x128xf32>
    %45 = arith.addf %40, %44 : vector<8x128xf32>
    %c0_46 = arith.constant 0 : index
    %c0_47 = arith.constant 0 : index
    %46 = vector.load %arg5[%c0_46, %c0_47] : memref<1x128xf32, #tpu.memory_space<vmem>>, vector<1x128xf32>
    %47 = vector.broadcast %46 : vector<1x128xf32> to vector<8x128xf32>
    %48 = arith.addf %45, %47 : vector<8x128xf32>
    %c0_48 = arith.constant 0 : index
    %c1_49 = arith.constant 1 : index
    %c0_50 = arith.constant 0 : index
    %49 = vector.load %arg1[%c0_48, %c1_49, %c0_50] : memref<1x10x128xbf16, #tpu.memory_space<vmem>>, vector<1x8x128xbf16>
    %50 = vector.shape_cast %49 : vector<1x8x128xbf16> to vector<8x128xbf16>
    %51 = arith.extf %50 : vector<8x128xbf16> to vector<8x128xf32>
    %52 = arith.addf %48, %51 : vector<8x128xf32>
    %53 = arith.truncf %52 : vector<8x128xf32> to vector<8x128xbf16>
    %c0_51 = arith.constant 0 : index
    %c0_52 = arith.constant 0 : index
    %c0_53 = arith.constant 0 : index
    %54 = vector.load %arg6[%c0_51, %c0_52, %c0_53] : memref<1x8x128xbf16, #tpu.memory_space<vmem>>, vector<1x8x128xbf16>
    %55 = vector.shape_cast %54 : vector<1x8x128xbf16> to vector<8x128xbf16>
    %56 = vector.shape_cast %53 : vector<8x128xbf16> to vector<1x8x128xbf16>
    tpu.vector_store %arg6[%c0_51, %c0_52, %c0_53], %56 {strides = array<i32>} : memref<1x8x128xbf16, #tpu.memory_space<vmem>>, vector<1x8x128xbf16>,
    return
  }
  func.func @transform_0(%arg0: i32) -> (i32, i32, i32) {
    %c0_i32 = arith.constant 0 : i32
    %c0_i32_0 = arith.constant 0 : i32
    %c0_i32_1 = arith.constant 0 : i32
    return %arg0, %c0_i32, %c0_i32_0 : i32, i32, i32
  }
  func.func @transform_1(%arg0: i32) -> (i32, i32, i32) {
    %c0_i32 = arith.constant 0 : i32
    %c0_i32_0 = arith.constant 0 : i32
    %c0_i32_1 = arith.constant 0 : i32
    %c0_i32_2 = arith.constant 0 : i32
    return %c0_i32, %c0_i32_0, %c0_i32_1 : i32, i32, i32
  }
  func.func @transform_2(%arg0: i32) -> (i32, i32) {
    %c0_i32 = arith.constant 0 : i32
    %c0_i32_0 = arith.constant 0 : i32
    %c0_i32_1 = arith.constant 0 : i32
    return %c0_i32, %c0_i32_0 : i32, i32
  }
  func.func @transform_3(%arg0: i32) -> (i32, i32, i32) {
    %c0_i32 = arith.constant 0 : i32
    %c0_i32_0 = arith.constant 0 : i32
    %c0_i32_1 = arith.constant 0 : i32
    %c0_i32_2 = arith.constant 0 : i32
    return %c0_i32, %c0_i32_0, %c0_i32_1 : i32, i32, i32
  }
  func.func @transform_4(%arg0: i32) -> (i32, i32) {
    %c0_i32 = arith.constant 0 : i32
    %c0_i32_0 = arith.constant 0 : i32
    %c0_i32_1 = arith.constant 0 : i32
    return %c0_i32, %c0_i32_0 : i32, i32
  }
  func.func @transform_5(%arg0: i32) -> (i32, i32, i32) {
    %c0_i32 = arith.constant 0 : i32
    %c0_i32_0 = arith.constant 0 : i32
    %c0_i32_1 = arith.constant 0 : i32
    return %arg0, %c0_i32, %c0_i32_0 : i32, i32, i32
  }
}

module attributes {stable_mosaic.version = 11 : i64} {
  func.func @_residual_kernel(%arg0: i32, %arg1: memref<1x6x128xbf16, #tpu.memory_space<vmem>>, %arg2: memref<3x128x128xbf16, #tpu.memory_space<vmem>>, %arg3: memref<1x128xf32, #tpu.memory_space<vmem>>, %arg4: memref<3x128x128xbf16, #tpu.memory_space<vmem>>, %arg5: memref<1x128xf32, #tpu.memory_space<vmem>>, %arg6: memref<1x4x128xbf16, #tpu.memory_space<vmem>>, %arg7: memref<6x128xbf16, #tpu.memory_space<vmem>>) attributes {dimension_semantics = [#tpu.dimension_semantics<parallel>], iteration_bounds = array<i64: 2>, scalar_prefetch = 0 : i64, scratch_operands = 1 : i64, tpu.core_type = #tpu.core_type<tc>, window_params = [{transform_indices = @transform_0, window_bounds = array<i64: 1, 6, 128>}, {pipeline_mode = #tpu.pipeline_mode<synchronous>, transform_indices = @transform_1, window_bounds = array<i64: 3, 128, 128>}, {pipeline_mode = #tpu.pipeline_mode<synchronous>, transform_indices = @transform_2, window_bounds = array<i64: 1, 128>}, {pipeline_mode = #tpu.pipeline_mode<synchronous>, transform_indices = @transform_3, window_bounds = array<i64: 3, 128, 128>}, {pipeline_mode = #tpu.pipeline_mode<synchronous>, transform_indices = @transform_4, window_bounds = array<i64: 1, 128>}, {transform_indices = @transform_5, window_bounds = array<i64: 1, 4, 128>}]} {
    %c0 = arith.constant 0 : index
    %c0_0 = arith.constant 0 : index
    %c0_1 = arith.constant 0 : index
    %0 = vector.load %arg1[%c0, %c0_0, %c0_1] : memref<1x6x128xbf16, #tpu.memory_space<vmem>>, vector<1x4x128xbf16>
    %1 = vector.shape_cast %0 : vector<1x4x128xbf16> to vector<4x128xbf16>
    %cst = arith.constant 0.000000e+00 : bf16
    %2 = vector.broadcast %cst : bf16 to vector<4x128xbf16>
    %3 = arith.maximumf %1, %2 : vector<4x128xbf16>
    %c0_2 = arith.constant 0 : index
    %c0_3 = arith.constant 0 : index
    %c0_4 = arith.constant 0 : index
    %4 = vector.load %arg2[%c0_2, %c0_3, %c0_4] : memref<3x128x128xbf16, #tpu.memory_space<vmem>>, vector<1x128x128xbf16>
    %5 = vector.shape_cast %4 : vector<1x128x128xbf16> to vector<128x128xbf16>
    %cst_5 = arith.constant dense<0.000000e+00> : vector<4x128xf32>
    %6 = tpu.matmul %3, %5, %cst_5 {dimension_numbers = #tpu.dot_dimension_numbers<[1], [0], [0], [1], [0, 0, 1, 1], [], []>} : vector<4x128xbf16>, vector<128x128xbf16>, vector<4x128xf32> -> vector<4x128xf32>
    %c0_6 = arith.constant 0 : index
    %c1 = arith.constant 1 : index
    %c0_7 = arith.constant 0 : index
    %7 = vector.load %arg1[%c0_6, %c1, %c0_7] : memref<1x6x128xbf16, #tpu.memory_space<vmem>>, vector<1x4x128xbf16>
    %8 = vector.shape_cast %7 : vector<1x4x128xbf16> to vector<4x128xbf16>
    %cst_8 = arith.constant 0.000000e+00 : bf16
    %9 = vector.broadcast %cst_8 : bf16 to vector<4x128xbf16>
    %10 = arith.maximumf %8, %9 : vector<4x128xbf16>
    %c1_9 = arith.constant 1 : index
    %c0_10 = arith.constant 0 : index
    %c0_11 = arith.constant 0 : index
    %11 = vector.load %arg2[%c1_9, %c0_10, %c0_11] : memref<3x128x128xbf16, #tpu.memory_space<vmem>>, vector<1x128x128xbf16>
    %12 = vector.shape_cast %11 : vector<1x128x128xbf16> to vector<128x128xbf16>
    %cst_12 = arith.constant dense<0.000000e+00> : vector<4x128xf32>
    %13 = tpu.matmul %10, %12, %cst_12 {dimension_numbers = #tpu.dot_dimension_numbers<[1], [0], [0], [1], [0, 0, 1, 1], [], []>} : vector<4x128xbf16>, vector<128x128xbf16>, vector<4x128xf32> -> vector<4x128xf32>
    %14 = arith.addf %6, %13 : vector<4x128xf32>
    %c0_13 = arith.constant 0 : index
    %c2 = arith.constant 2 : index
    %c0_14 = arith.constant 0 : index
    %15 = vector.load %arg1[%c0_13, %c2, %c0_14] : memref<1x6x128xbf16, #tpu.memory_space<vmem>>, vector<1x4x128xbf16>
    %16 = vector.shape_cast %15 : vector<1x4x128xbf16> to vector<4x128xbf16>
    %cst_15 = arith.constant 0.000000e+00 : bf16
    %17 = vector.broadcast %cst_15 : bf16 to vector<4x128xbf16>
    %18 = arith.maximumf %16, %17 : vector<4x128xbf16>
    %c2_16 = arith.constant 2 : index
    %c0_17 = arith.constant 0 : index
    %c0_18 = arith.constant 0 : index
    %19 = vector.load %arg2[%c2_16, %c0_17, %c0_18] : memref<3x128x128xbf16, #tpu.memory_space<vmem>>, vector<1x128x128xbf16>
    %20 = vector.shape_cast %19 : vector<1x128x128xbf16> to vector<128x128xbf16>
    %cst_19 = arith.constant dense<0.000000e+00> : vector<4x128xf32>
    %21 = tpu.matmul %18, %20, %cst_19 {dimension_numbers = #tpu.dot_dimension_numbers<[1], [0], [0], [1], [0, 0, 1, 1], [], []>} : vector<4x128xbf16>, vector<128x128xbf16>, vector<4x128xf32> -> vector<4x128xf32>
    %22 = arith.addf %14, %21 : vector<4x128xf32>
    %c0_20 = arith.constant 0 : index
    %c0_21 = arith.constant 0 : index
    %23 = vector.load %arg3[%c0_20, %c0_21] : memref<1x128xf32, #tpu.memory_space<vmem>>, vector<1x128xf32>
    %24 = vector.broadcast %23 : vector<1x128xf32> to vector<4x128xf32>
    %25 = arith.addf %22, %24 : vector<4x128xf32>
    %cst_22 = arith.constant 0.000000e+00 : f32
    %26 = vector.broadcast %cst_22 : f32 to vector<4x128xf32>
    %27 = arith.maximumf %25, %26 : vector<4x128xf32>
    %cst_23 = arith.constant 0.000000e+00 : bf16
    %28 = vector.broadcast %cst_23 : bf16 to vector<6x128xbf16>
    %c0_24 = arith.constant 0 : index
    %c0_25 = arith.constant 0 : index
    %29 = vector.load %arg7[%c0_24, %c0_25] : memref<6x128xbf16, #tpu.memory_space<vmem>>, vector<6x128xbf16>
    tpu.vector_store %arg7[%c0_24, %c0_25], %28 {strides = array<i32>} : memref<6x128xbf16, #tpu.memory_space<vmem>>, vector<6x128xbf16>,
    %30 = arith.truncf %27 : vector<4x128xf32> to vector<4x128xbf16>
    %c1_26 = arith.constant 1 : index
    %c0_27 = arith.constant 0 : index
    %31 = vector.load %arg7[%c1_26, %c0_27] : memref<6x128xbf16, #tpu.memory_space<vmem>>, vector<4x128xbf16>
    tpu.vector_store %arg7[%c1_26, %c0_27], %30 {strides = array<i32>} : memref<6x128xbf16, #tpu.memory_space<vmem>>, vector<4x128xbf16>,
    %c0_28 = arith.constant 0 : index
    %c0_29 = arith.constant 0 : index
    %32 = vector.load %arg7[%c0_28, %c0_29] : memref<6x128xbf16, #tpu.memory_space<vmem>>, vector<4x128xbf16>
    %c0_30 = arith.constant 0 : index
    %c0_31 = arith.constant 0 : index
    %c0_32 = arith.constant 0 : index
    %33 = vector.load %arg4[%c0_30, %c0_31, %c0_32] : memref<3x128x128xbf16, #tpu.memory_space<vmem>>, vector<1x128x128xbf16>
    %34 = vector.shape_cast %33 : vector<1x128x128xbf16> to vector<128x128xbf16>
    %cst_33 = arith.constant dense<0.000000e+00> : vector<4x128xf32>
    %35 = tpu.matmul %32, %34, %cst_33 {dimension_numbers = #tpu.dot_dimension_numbers<[1], [0], [0], [1], [0, 0, 1, 1], [], []>} : vector<4x128xbf16>, vector<128x128xbf16>, vector<4x128xf32> -> vector<4x128xf32>
    %c1_34 = arith.constant 1 : index
    %c0_35 = arith.constant 0 : index
    %36 = vector.load %arg7[%c1_34, %c0_35] : memref<6x128xbf16, #tpu.memory_space<vmem>>, vector<4x128xbf16>
    %c1_36 = arith.constant 1 : index
    %c0_37 = arith.constant 0 : index
    %c0_38 = arith.constant 0 : index
    %37 = vector.load %arg4[%c1_36, %c0_37, %c0_38] : memref<3x128x128xbf16, #tpu.memory_space<vmem>>, vector<1x128x128xbf16>
    %38 = vector.shape_cast %37 : vector<1x128x128xbf16> to vector<128x128xbf16>
    %cst_39 = arith.constant dense<0.000000e+00> : vector<4x128xf32>
    %39 = tpu.matmul %36, %38, %cst_39 {dimension_numbers = #tpu.dot_dimension_numbers<[1], [0], [0], [1], [0, 0, 1, 1], [], []>} : vector<4x128xbf16>, vector<128x128xbf16>, vector<4x128xf32> -> vector<4x128xf32>
    %40 = arith.addf %35, %39 : vector<4x128xf32>
    %c2_40 = arith.constant 2 : index
    %c0_41 = arith.constant 0 : index
    %41 = vector.load %arg7[%c2_40, %c0_41] : memref<6x128xbf16, #tpu.memory_space<vmem>>, vector<4x128xbf16>
    %c2_42 = arith.constant 2 : index
    %c0_43 = arith.constant 0 : index
    %c0_44 = arith.constant 0 : index
    %42 = vector.load %arg4[%c2_42, %c0_43, %c0_44] : memref<3x128x128xbf16, #tpu.memory_space<vmem>>, vector<1x128x128xbf16>
    %43 = vector.shape_cast %42 : vector<1x128x128xbf16> to vector<128x128xbf16>
    %cst_45 = arith.constant dense<0.000000e+00> : vector<4x128xf32>
    %44 = tpu.matmul %41, %43, %cst_45 {dimension_numbers = #tpu.dot_dimension_numbers<[1], [0], [0], [1], [0, 0, 1, 1], [], []>} : vector<4x128xbf16>, vector<128x128xbf16>, vector<4x128xf32> -> vector<4x128xf32>
    %45 = arith.addf %40, %44 : vector<4x128xf32>
    %c0_46 = arith.constant 0 : index
    %c0_47 = arith.constant 0 : index
    %46 = vector.load %arg5[%c0_46, %c0_47] : memref<1x128xf32, #tpu.memory_space<vmem>>, vector<1x128xf32>
    %47 = vector.broadcast %46 : vector<1x128xf32> to vector<4x128xf32>
    %48 = arith.addf %45, %47 : vector<4x128xf32>
    %c0_48 = arith.constant 0 : index
    %c1_49 = arith.constant 1 : index
    %c0_50 = arith.constant 0 : index
    %49 = vector.load %arg1[%c0_48, %c1_49, %c0_50] : memref<1x6x128xbf16, #tpu.memory_space<vmem>>, vector<1x4x128xbf16>
    %50 = vector.shape_cast %49 : vector<1x4x128xbf16> to vector<4x128xbf16>
    %51 = arith.extf %50 : vector<4x128xbf16> to vector<4x128xf32>
    %52 = arith.addf %48, %51 : vector<4x128xf32>
    %53 = arith.truncf %52 : vector<4x128xf32> to vector<4x128xbf16>
    %c0_51 = arith.constant 0 : index
    %c0_52 = arith.constant 0 : index
    %c0_53 = arith.constant 0 : index
    %54 = vector.load %arg6[%c0_51, %c0_52, %c0_53] : memref<1x4x128xbf16, #tpu.memory_space<vmem>>, vector<1x4x128xbf16>
    %55 = vector.shape_cast %54 : vector<1x4x128xbf16> to vector<4x128xbf16>
    %56 = vector.shape_cast %53 : vector<4x128xbf16> to vector<1x4x128xbf16>
    tpu.vector_store %arg6[%c0_51, %c0_52, %c0_53], %56 {strides = array<i32>} : memref<1x4x128xbf16, #tpu.memory_space<vmem>>, vector<1x4x128xbf16>,
    return
  }
  func.func @transform_0(%arg0: i32) -> (i32, i32, i32) {
    %c0_i32 = arith.constant 0 : i32
    %c0_i32_0 = arith.constant 0 : i32
    %c0_i32_1 = arith.constant 0 : i32
    return %arg0, %c0_i32, %c0_i32_0 : i32, i32, i32
  }
  func.func @transform_1(%arg0: i32) -> (i32, i32, i32) {
    %c0_i32 = arith.constant 0 : i32
    %c0_i32_0 = arith.constant 0 : i32
    %c0_i32_1 = arith.constant 0 : i32
    %c0_i32_2 = arith.constant 0 : i32
    return %c0_i32, %c0_i32_0, %c0_i32_1 : i32, i32, i32
  }
  func.func @transform_2(%arg0: i32) -> (i32, i32) {
    %c0_i32 = arith.constant 0 : i32
    %c0_i32_0 = arith.constant 0 : i32
    %c0_i32_1 = arith.constant 0 : i32
    return %c0_i32, %c0_i32_0 : i32, i32
  }
  func.func @transform_3(%arg0: i32) -> (i32, i32, i32) {
    %c0_i32 = arith.constant 0 : i32
    %c0_i32_0 = arith.constant 0 : i32
    %c0_i32_1 = arith.constant 0 : i32
    %c0_i32_2 = arith.constant 0 : i32
    return %c0_i32, %c0_i32_0, %c0_i32_1 : i32, i32, i32
  }
  func.func @transform_4(%arg0: i32) -> (i32, i32) {
    %c0_i32 = arith.constant 0 : i32
    %c0_i32_0 = arith.constant 0 : i32
    %c0_i32_1 = arith.constant 0 : i32
    return %c0_i32, %c0_i32_0 : i32, i32
  }
  func.func @transform_5(%arg0: i32) -> (i32, i32, i32) {
    %c0_i32 = arith.constant 0 : i32
    %c0_i32_0 = arith.constant 0 : i32
    %c0_i32_1 = arith.constant 0 : i32
    return %arg0, %c0_i32, %c0_i32_0 : i32, i32, i32
  }
}

module attributes {stable_mosaic.version = 11 : i64} {
  func.func @_conv_kernel(%arg0: i32, %arg1: memref<1x6x128xbf16, #tpu.memory_space<vmem>>, %arg2: memref<3x128x128xbf16, #tpu.memory_space<vmem>>, %arg3: memref<1x128xf32, #tpu.memory_space<vmem>>, %arg4: memref<1x4x128xbf16, #tpu.memory_space<vmem>>) attributes {dimension_semantics = [#tpu.dimension_semantics<parallel>], iteration_bounds = array<i64: 2>, scalar_prefetch = 0 : i64, scratch_operands = 0 : i64, tpu.core_type = #tpu.core_type<tc>, window_params = [{transform_indices = @transform_0, window_bounds = array<i64: 1, 6, 128>}, {pipeline_mode = #tpu.pipeline_mode<synchronous>, transform_indices = @transform_1, window_bounds = array<i64: 3, 128, 128>}, {pipeline_mode = #tpu.pipeline_mode<synchronous>, transform_indices = @transform_2, window_bounds = array<i64: 1, 128>}, {transform_indices = @transform_3, window_bounds = array<i64: 1, 4, 128>}]} {
    %c0 = arith.constant 0 : index
    %c0_0 = arith.constant 0 : index
    %c0_1 = arith.constant 0 : index
    %0 = vector.load %arg1[%c0, %c0_0, %c0_1] : memref<1x6x128xbf16, #tpu.memory_space<vmem>>, vector<1x4x128xbf16>
    %1 = vector.shape_cast %0 : vector<1x4x128xbf16> to vector<4x128xbf16>
    %c0_2 = arith.constant 0 : index
    %c0_3 = arith.constant 0 : index
    %c0_4 = arith.constant 0 : index
    %2 = vector.load %arg2[%c0_2, %c0_3, %c0_4] : memref<3x128x128xbf16, #tpu.memory_space<vmem>>, vector<1x128x128xbf16>
    %3 = vector.shape_cast %2 : vector<1x128x128xbf16> to vector<128x128xbf16>
    %cst = arith.constant dense<0.000000e+00> : vector<4x128xf32>
    %4 = tpu.matmul %1, %3, %cst {dimension_numbers = #tpu.dot_dimension_numbers<[1], [0], [0], [1], [0, 0, 1, 1], [], []>} : vector<4x128xbf16>, vector<128x128xbf16>, vector<4x128xf32> -> vector<4x128xf32>
    %c0_5 = arith.constant 0 : index
    %c1 = arith.constant 1 : index
    %c0_6 = arith.constant 0 : index
    %5 = vector.load %arg1[%c0_5, %c1, %c0_6] : memref<1x6x128xbf16, #tpu.memory_space<vmem>>, vector<1x4x128xbf16>
    %6 = vector.shape_cast %5 : vector<1x4x128xbf16> to vector<4x128xbf16>
    %c1_7 = arith.constant 1 : index
    %c0_8 = arith.constant 0 : index
    %c0_9 = arith.constant 0 : index
    %7 = vector.load %arg2[%c1_7, %c0_8, %c0_9] : memref<3x128x128xbf16, #tpu.memory_space<vmem>>, vector<1x128x128xbf16>
    %8 = vector.shape_cast %7 : vector<1x128x128xbf16> to vector<128x128xbf16>
    %cst_10 = arith.constant dense<0.000000e+00> : vector<4x128xf32>
    %9 = tpu.matmul %6, %8, %cst_10 {dimension_numbers = #tpu.dot_dimension_numbers<[1], [0], [0], [1], [0, 0, 1, 1], [], []>} : vector<4x128xbf16>, vector<128x128xbf16>, vector<4x128xf32> -> vector<4x128xf32>
    %10 = arith.addf %4, %9 : vector<4x128xf32>
    %c0_11 = arith.constant 0 : index
    %c2 = arith.constant 2 : index
    %c0_12 = arith.constant 0 : index
    %11 = vector.load %arg1[%c0_11, %c2, %c0_12] : memref<1x6x128xbf16, #tpu.memory_space<vmem>>, vector<1x4x128xbf16>
    %12 = vector.shape_cast %11 : vector<1x4x128xbf16> to vector<4x128xbf16>
    %c2_13 = arith.constant 2 : index
    %c0_14 = arith.constant 0 : index
    %c0_15 = arith.constant 0 : index
    %13 = vector.load %arg2[%c2_13, %c0_14, %c0_15] : memref<3x128x128xbf16, #tpu.memory_space<vmem>>, vector<1x128x128xbf16>
    %14 = vector.shape_cast %13 : vector<1x128x128xbf16> to vector<128x128xbf16>
    %cst_16 = arith.constant dense<0.000000e+00> : vector<4x128xf32>
    %15 = tpu.matmul %12, %14, %cst_16 {dimension_numbers = #tpu.dot_dimension_numbers<[1], [0], [0], [1], [0, 0, 1, 1], [], []>} : vector<4x128xbf16>, vector<128x128xbf16>, vector<4x128xf32> -> vector<4x128xf32>
    %16 = arith.addf %10, %15 : vector<4x128xf32>
    %c0_17 = arith.constant 0 : index
    %c0_18 = arith.constant 0 : index
    %17 = vector.load %arg3[%c0_17, %c0_18] : memref<1x128xf32, #tpu.memory_space<vmem>>, vector<1x128xf32>
    %18 = vector.broadcast %17 : vector<1x128xf32> to vector<4x128xf32>
    %19 = arith.addf %16, %18 : vector<4x128xf32>
    %20 = arith.truncf %19 : vector<4x128xf32> to vector<4x128xbf16>
    %c0_19 = arith.constant 0 : index
    %c0_20 = arith.constant 0 : index
    %c0_21 = arith.constant 0 : index
    %21 = vector.load %arg4[%c0_19, %c0_20, %c0_21] : memref<1x4x128xbf16, #tpu.memory_space<vmem>>, vector<1x4x128xbf16>
    %22 = vector.shape_cast %21 : vector<1x4x128xbf16> to vector<4x128xbf16>
    %23 = vector.shape_cast %20 : vector<4x128xbf16> to vector<1x4x128xbf16>
    tpu.vector_store %arg4[%c0_19, %c0_20, %c0_21], %23 {strides = array<i32>} : memref<1x4x128xbf16, #tpu.memory_space<vmem>>, vector<1x4x128xbf16>,
    return
  }
  func.func @transform_0(%arg0: i32) -> (i32, i32, i32) {
    %c0_i32 = arith.constant 0 : i32
    %c0_i32_0 = arith.constant 0 : i32
    %c0_i32_1 = arith.constant 0 : i32
    return %arg0, %c0_i32, %c0_i32_0 : i32, i32, i32
  }
  func.func @transform_1(%arg0: i32) -> (i32, i32, i32) {
    %c0_i32 = arith.constant 0 : i32
    %c0_i32_0 = arith.constant 0 : i32
    %c0_i32_1 = arith.constant 0 : i32
    %c0_i32_2 = arith.constant 0 : i32
    return %c0_i32, %c0_i32_0, %c0_i32_1 : i32, i32, i32
  }
  func.func @transform_2(%arg0: i32) -> (i32, i32) {
    %c0_i32 = arith.constant 0 : i32
    %c0_i32_0 = arith.constant 0 : i32
    %c0_i32_1 = arith.constant 0 : i32
    return %c0_i32, %c0_i32_0 : i32, i32
  }
  func.func @transform_3(%arg0: i32) -> (i32, i32, i32) {
    %c0_i32 = arith.constant 0 : i32
    %c0_i32_0 = arith.constant 0 : i32
    %c0_i32_1 = arith.constant 0 : i32
    return %arg0, %c0_i32, %c0_i32_0 : i32, i32, i32
  }
}

module attributes {stable_mosaic.version = 11 : i64} {
  func.func @_residual_kernel(%arg0: i32, %arg1: memref<1x4x64xbf16, #tpu.memory_space<vmem>>, %arg2: memref<3x64x64xbf16, #tpu.memory_space<vmem>>, %arg3: memref<1x64xf32, #tpu.memory_space<vmem>>, %arg4: memref<3x64x64xbf16, #tpu.memory_space<vmem>>, %arg5: memref<1x64xf32, #tpu.memory_space<vmem>>, %arg6: memref<1x2x64xbf16, #tpu.memory_space<vmem>>, %arg7: memref<4x64xbf16, #tpu.memory_space<vmem>>) attributes {dimension_semantics = [#tpu.dimension_semantics<parallel>], iteration_bounds = array<i64: 2>, scalar_prefetch = 0 : i64, scratch_operands = 1 : i64, tpu.core_type = #tpu.core_type<tc>, window_params = [{transform_indices = @transform_0, window_bounds = array<i64: 1, 4, 64>}, {pipeline_mode = #tpu.pipeline_mode<synchronous>, transform_indices = @transform_1, window_bounds = array<i64: 3, 64, 64>}, {pipeline_mode = #tpu.pipeline_mode<synchronous>, transform_indices = @transform_2, window_bounds = array<i64: 1, 64>}, {pipeline_mode = #tpu.pipeline_mode<synchronous>, transform_indices = @transform_3, window_bounds = array<i64: 3, 64, 64>}, {pipeline_mode = #tpu.pipeline_mode<synchronous>, transform_indices = @transform_4, window_bounds = array<i64: 1, 64>}, {transform_indices = @transform_5, window_bounds = array<i64: 1, 2, 64>}]} {
    %c0 = arith.constant 0 : index
    %c0_0 = arith.constant 0 : index
    %c0_1 = arith.constant 0 : index
    %0 = vector.load %arg1[%c0, %c0_0, %c0_1] : memref<1x4x64xbf16, #tpu.memory_space<vmem>>, vector<1x2x64xbf16>
    %1 = vector.shape_cast %0 : vector<1x2x64xbf16> to vector<2x64xbf16>
    %cst = arith.constant 0.000000e+00 : bf16
    %2 = vector.broadcast %cst : bf16 to vector<2x64xbf16>
    %3 = arith.maximumf %1, %2 : vector<2x64xbf16>
    %c0_2 = arith.constant 0 : index
    %c0_3 = arith.constant 0 : index
    %c0_4 = arith.constant 0 : index
    %4 = vector.load %arg2[%c0_2, %c0_3, %c0_4] : memref<3x64x64xbf16, #tpu.memory_space<vmem>>, vector<1x64x64xbf16>
    %5 = vector.shape_cast %4 : vector<1x64x64xbf16> to vector<64x64xbf16>
    %cst_5 = arith.constant dense<0.000000e+00> : vector<2x64xf32>
    %6 = tpu.matmul %3, %5, %cst_5 {dimension_numbers = #tpu.dot_dimension_numbers<[1], [0], [0], [1], [0, 0, 1, 1], [], []>} : vector<2x64xbf16>, vector<64x64xbf16>, vector<2x64xf32> -> vector<2x64xf32>
    %c0_6 = arith.constant 0 : index
    %c1 = arith.constant 1 : index
    %c0_7 = arith.constant 0 : index
    %7 = vector.load %arg1[%c0_6, %c1, %c0_7] : memref<1x4x64xbf16, #tpu.memory_space<vmem>>, vector<1x2x64xbf16>
    %8 = vector.shape_cast %7 : vector<1x2x64xbf16> to vector<2x64xbf16>
    %cst_8 = arith.constant 0.000000e+00 : bf16
    %9 = vector.broadcast %cst_8 : bf16 to vector<2x64xbf16>
    %10 = arith.maximumf %8, %9 : vector<2x64xbf16>
    %c1_9 = arith.constant 1 : index
    %c0_10 = arith.constant 0 : index
    %c0_11 = arith.constant 0 : index
    %11 = vector.load %arg2[%c1_9, %c0_10, %c0_11] : memref<3x64x64xbf16, #tpu.memory_space<vmem>>, vector<1x64x64xbf16>
    %12 = vector.shape_cast %11 : vector<1x64x64xbf16> to vector<64x64xbf16>
    %cst_12 = arith.constant dense<0.000000e+00> : vector<2x64xf32>
    %13 = tpu.matmul %10, %12, %cst_12 {dimension_numbers = #tpu.dot_dimension_numbers<[1], [0], [0], [1], [0, 0, 1, 1], [], []>} : vector<2x64xbf16>, vector<64x64xbf16>, vector<2x64xf32> -> vector<2x64xf32>
    %14 = arith.addf %6, %13 : vector<2x64xf32>
    %c0_13 = arith.constant 0 : index
    %c2 = arith.constant 2 : index
    %c0_14 = arith.constant 0 : index
    %15 = vector.load %arg1[%c0_13, %c2, %c0_14] : memref<1x4x64xbf16, #tpu.memory_space<vmem>>, vector<1x2x64xbf16>
    %16 = vector.shape_cast %15 : vector<1x2x64xbf16> to vector<2x64xbf16>
    %cst_15 = arith.constant 0.000000e+00 : bf16
    %17 = vector.broadcast %cst_15 : bf16 to vector<2x64xbf16>
    %18 = arith.maximumf %16, %17 : vector<2x64xbf16>
    %c2_16 = arith.constant 2 : index
    %c0_17 = arith.constant 0 : index
    %c0_18 = arith.constant 0 : index
    %19 = vector.load %arg2[%c2_16, %c0_17, %c0_18] : memref<3x64x64xbf16, #tpu.memory_space<vmem>>, vector<1x64x64xbf16>
    %20 = vector.shape_cast %19 : vector<1x64x64xbf16> to vector<64x64xbf16>
    %cst_19 = arith.constant dense<0.000000e+00> : vector<2x64xf32>
    %21 = tpu.matmul %18, %20, %cst_19 {dimension_numbers = #tpu.dot_dimension_numbers<[1], [0], [0], [1], [0, 0, 1, 1], [], []>} : vector<2x64xbf16>, vector<64x64xbf16>, vector<2x64xf32> -> vector<2x64xf32>
    %22 = arith.addf %14, %21 : vector<2x64xf32>
    %c0_20 = arith.constant 0 : index
    %c0_21 = arith.constant 0 : index
    %23 = vector.load %arg3[%c0_20, %c0_21] : memref<1x64xf32, #tpu.memory_space<vmem>>, vector<1x64xf32>
    %24 = vector.broadcast %23 : vector<1x64xf32> to vector<2x64xf32>
    %25 = arith.addf %22, %24 : vector<2x64xf32>
    %cst_22 = arith.constant 0.000000e+00 : f32
    %26 = vector.broadcast %cst_22 : f32 to vector<2x64xf32>
    %27 = arith.maximumf %25, %26 : vector<2x64xf32>
    %cst_23 = arith.constant 0.000000e+00 : bf16
    %28 = vector.broadcast %cst_23 : bf16 to vector<4x64xbf16>
    %c0_24 = arith.constant 0 : index
    %c0_25 = arith.constant 0 : index
    %29 = vector.load %arg7[%c0_24, %c0_25] : memref<4x64xbf16, #tpu.memory_space<vmem>>, vector<4x64xbf16>
    tpu.vector_store %arg7[%c0_24, %c0_25], %28 {strides = array<i32>} : memref<4x64xbf16, #tpu.memory_space<vmem>>, vector<4x64xbf16>,
    %30 = arith.truncf %27 : vector<2x64xf32> to vector<2x64xbf16>
    %c1_26 = arith.constant 1 : index
    %c0_27 = arith.constant 0 : index
    %31 = vector.load %arg7[%c1_26, %c0_27] : memref<4x64xbf16, #tpu.memory_space<vmem>>, vector<2x64xbf16>
    tpu.vector_store %arg7[%c1_26, %c0_27], %30 {strides = array<i32>} : memref<4x64xbf16, #tpu.memory_space<vmem>>, vector<2x64xbf16>,
    %c0_28 = arith.constant 0 : index
    %c0_29 = arith.constant 0 : index
    %32 = vector.load %arg7[%c0_28, %c0_29] : memref<4x64xbf16, #tpu.memory_space<vmem>>, vector<2x64xbf16>
    %c0_30 = arith.constant 0 : index
    %c0_31 = arith.constant 0 : index
    %c0_32 = arith.constant 0 : index
    %33 = vector.load %arg4[%c0_30, %c0_31, %c0_32] : memref<3x64x64xbf16, #tpu.memory_space<vmem>>, vector<1x64x64xbf16>
    %34 = vector.shape_cast %33 : vector<1x64x64xbf16> to vector<64x64xbf16>
    %cst_33 = arith.constant dense<0.000000e+00> : vector<2x64xf32>
    %35 = tpu.matmul %32, %34, %cst_33 {dimension_numbers = #tpu.dot_dimension_numbers<[1], [0], [0], [1], [0, 0, 1, 1], [], []>} : vector<2x64xbf16>, vector<64x64xbf16>, vector<2x64xf32> -> vector<2x64xf32>
    %c1_34 = arith.constant 1 : index
    %c0_35 = arith.constant 0 : index
    %36 = vector.load %arg7[%c1_34, %c0_35] : memref<4x64xbf16, #tpu.memory_space<vmem>>, vector<2x64xbf16>
    %c1_36 = arith.constant 1 : index
    %c0_37 = arith.constant 0 : index
    %c0_38 = arith.constant 0 : index
    %37 = vector.load %arg4[%c1_36, %c0_37, %c0_38] : memref<3x64x64xbf16, #tpu.memory_space<vmem>>, vector<1x64x64xbf16>
    %38 = vector.shape_cast %37 : vector<1x64x64xbf16> to vector<64x64xbf16>
    %cst_39 = arith.constant dense<0.000000e+00> : vector<2x64xf32>
    %39 = tpu.matmul %36, %38, %cst_39 {dimension_numbers = #tpu.dot_dimension_numbers<[1], [0], [0], [1], [0, 0, 1, 1], [], []>} : vector<2x64xbf16>, vector<64x64xbf16>, vector<2x64xf32> -> vector<2x64xf32>
    %40 = arith.addf %35, %39 : vector<2x64xf32>
    %c2_40 = arith.constant 2 : index
    %c0_41 = arith.constant 0 : index
    %41 = vector.load %arg7[%c2_40, %c0_41] : memref<4x64xbf16, #tpu.memory_space<vmem>>, vector<2x64xbf16>
    %c2_42 = arith.constant 2 : index
    %c0_43 = arith.constant 0 : index
    %c0_44 = arith.constant 0 : index
    %42 = vector.load %arg4[%c2_42, %c0_43, %c0_44] : memref<3x64x64xbf16, #tpu.memory_space<vmem>>, vector<1x64x64xbf16>
    %43 = vector.shape_cast %42 : vector<1x64x64xbf16> to vector<64x64xbf16>
    %cst_45 = arith.constant dense<0.000000e+00> : vector<2x64xf32>
    %44 = tpu.matmul %41, %43, %cst_45 {dimension_numbers = #tpu.dot_dimension_numbers<[1], [0], [0], [1], [0, 0, 1, 1], [], []>} : vector<2x64xbf16>, vector<64x64xbf16>, vector<2x64xf32> -> vector<2x64xf32>
    %45 = arith.addf %40, %44 : vector<2x64xf32>
    %c0_46 = arith.constant 0 : index
    %c0_47 = arith.constant 0 : index
    %46 = vector.load %arg5[%c0_46, %c0_47] : memref<1x64xf32, #tpu.memory_space<vmem>>, vector<1x64xf32>
    %47 = vector.broadcast %46 : vector<1x64xf32> to vector<2x64xf32>
    %48 = arith.addf %45, %47 : vector<2x64xf32>
    %c0_48 = arith.constant 0 : index
    %c1_49 = arith.constant 1 : index
    %c0_50 = arith.constant 0 : index
    %49 = vector.load %arg1[%c0_48, %c1_49, %c0_50] : memref<1x4x64xbf16, #tpu.memory_space<vmem>>, vector<1x2x64xbf16>
    %50 = vector.shape_cast %49 : vector<1x2x64xbf16> to vector<2x64xbf16>
    %51 = arith.extf %50 : vector<2x64xbf16> to vector<2x64xf32>
    %52 = arith.addf %48, %51 : vector<2x64xf32>
    %53 = arith.truncf %52 : vector<2x64xf32> to vector<2x64xbf16>
    %c0_51 = arith.constant 0 : index
    %c0_52 = arith.constant 0 : index
    %c0_53 = arith.constant 0 : index
    %54 = vector.load %arg6[%c0_51, %c0_52, %c0_53] : memref<1x2x64xbf16, #tpu.memory_space<vmem>>, vector<1x2x64xbf16>
    %55 = vector.shape_cast %54 : vector<1x2x64xbf16> to vector<2x64xbf16>
    %56 = vector.shape_cast %53 : vector<2x64xbf16> to vector<1x2x64xbf16>
    tpu.vector_store %arg6[%c0_51, %c0_52, %c0_53], %56 {strides = array<i32>} : memref<1x2x64xbf16, #tpu.memory_space<vmem>>, vector<1x2x64xbf16>,
    return
  }
  func.func @transform_0(%arg0: i32) -> (i32, i32, i32) {
    %c0_i32 = arith.constant 0 : i32
    %c0_i32_0 = arith.constant 0 : i32
    %c0_i32_1 = arith.constant 0 : i32
    return %arg0, %c0_i32, %c0_i32_0 : i32, i32, i32
  }
  func.func @transform_1(%arg0: i32) -> (i32, i32, i32) {
    %c0_i32 = arith.constant 0 : i32
    %c0_i32_0 = arith.constant 0 : i32
    %c0_i32_1 = arith.constant 0 : i32
    %c0_i32_2 = arith.constant 0 : i32
    return %c0_i32, %c0_i32_0, %c0_i32_1 : i32, i32, i32
  }
  func.func @transform_2(%arg0: i32) -> (i32, i32) {
    %c0_i32 = arith.constant 0 : i32
    %c0_i32_0 = arith.constant 0 : i32
    %c0_i32_1 = arith.constant 0 : i32
    return %c0_i32, %c0_i32_0 : i32, i32
  }
  func.func @transform_3(%arg0: i32) -> (i32, i32, i32) {
    %c0_i32 = arith.constant 0 : i32
    %c0_i32_0 = arith.constant 0 : i32
    %c0_i32_1 = arith.constant 0 : i32
    %c0_i32_2 = arith.constant 0 : i32
    return %c0_i32, %c0_i32_0, %c0_i32_1 : i32, i32, i32
  }
  func.func @transform_4(%arg0: i32) -> (i32, i32) {
    %c0_i32 = arith.constant 0 : i32
    %c0_i32_0 = arith.constant 0 : i32
    %c0_i32_1 = arith.constant 0 : i32
    return %c0_i32, %c0_i32_0 : i32, i32
  }
  func.func @transform_5(%arg0: i32) -> (i32, i32, i32) {
    %c0_i32 = arith.constant 0 : i32
    %c0_i32_0 = arith.constant 0 : i32
    %c0_i32_1 = arith.constant 0 : i32
    return %arg0, %c0_i32, %c0_i32_0 : i32, i32, i32
  }
}

module attributes {stable_mosaic.version = 11 : i64} {
  func.func @_head_kernel(%arg0: i32, %arg1: memref<2x128xbf16, #tpu.memory_space<vmem>>, %arg2: memref<2x4xf32, #tpu.memory_space<vmem>>, %arg3: memref<128x256xbf16, #tpu.memory_space<vmem>>, %arg4: memref<1x256xf32, #tpu.memory_space<vmem>>, %arg5: memref<256x512xbf16, #tpu.memory_space<vmem>>, %arg6: memref<4x512xbf16, #tpu.memory_space<vmem>>, %arg7: memref<1x512xf32, #tpu.memory_space<vmem>>, %arg8: memref<512x512xbf16, #tpu.memory_space<vmem>>, %arg9: memref<1x512xf32, #tpu.memory_space<vmem>>, %arg10: memref<512x512xbf16, #tpu.memory_space<vmem>>, %arg11: memref<1x512xf32, #tpu.memory_space<vmem>>, %arg12: memref<512x2xbf16, #tpu.memory_space<vmem>>, %arg13: memref<1x2xf32, #tpu.memory_space<vmem>>, %arg14: memref<2x2xf32, #tpu.memory_space<vmem>>) attributes {dimension_semantics = [#tpu.dimension_semantics<parallel>], iteration_bounds = array<i64: 1>, scalar_prefetch = 0 : i64, scratch_operands = 0 : i64, tpu.core_type = #tpu.core_type<tc>, window_params = [{transform_indices = @transform_0, window_bounds = array<i64: 2, 128>}, {transform_indices = @transform_1, window_bounds = array<i64: 2, 4>}, {pipeline_mode = #tpu.pipeline_mode<synchronous>, transform_indices = @transform_2, window_bounds = array<i64: 128, 256>}, {pipeline_mode = #tpu.pipeline_mode<synchronous>, transform_indices = @transform_3, window_bounds = array<i64: 1, 256>}, {pipeline_mode = #tpu.pipeline_mode<synchronous>, transform_indices = @transform_4, window_bounds = array<i64: 256, 512>}, {pipeline_mode = #tpu.pipeline_mode<synchronous>, transform_indices = @transform_5, window_bounds = array<i64: 4, 512>}, {pipeline_mode = #tpu.pipeline_mode<synchronous>, transform_indices = @transform_6, window_bounds = array<i64: 1, 512>}, {pipeline_mode = #tpu.pipeline_mode<synchronous>, transform_indices = @transform_7, window_bounds = array<i64: 512, 512>}, {pipeline_mode = #tpu.pipeline_mode<synchronous>, transform_indices = @transform_8, window_bounds = array<i64: 1, 512>}, {pipeline_mode = #tpu.pipeline_mode<synchronous>, transform_indices = @transform_9, window_bounds = array<i64: 512, 512>}, {pipeline_mode = #tpu.pipeline_mode<synchronous>, transform_indices = @transform_10, window_bounds = array<i64: 1, 512>}, {pipeline_mode = #tpu.pipeline_mode<synchronous>, transform_indices = @transform_11, window_bounds = array<i64: 512, 2>}, {pipeline_mode = #tpu.pipeline_mode<synchronous>, transform_indices = @transform_12, window_bounds = array<i64: 1, 2>}, {transform_indices = @transform_13, window_bounds = array<i64: 2, 2>}]} {
    %c0 = arith.constant 0 : index
    %c0_0 = arith.constant 0 : index
    %0 = vector.load %arg1[%c0, %c0_0] : memref<2x128xbf16, #tpu.memory_space<vmem>>, vector<2x128xbf16>
    %cst = arith.constant 0.000000e+00 : bf16
    %1 = vector.broadcast %cst : bf16 to vector<2x128xbf16>
    %2 = arith.maximumf %0, %1 : vector<2x128xbf16>
    %c0_1 = arith.constant 0 : index
    %c0_2 = arith.constant 0 : index
    %3 = vector.load %arg3[%c0_1, %c0_2] : memref<128x256xbf16, #tpu.memory_space<vmem>>, vector<128x256xbf16>
    %cst_3 = arith.constant dense<0.000000e+00> : vector<2x256xf32>
    %4 = tpu.matmul %2, %3, %cst_3 {dimension_numbers = #tpu.dot_dimension_numbers<[1], [0], [0], [1], [0, 0, 1, 1], [], []>} : vector<2x128xbf16>, vector<128x256xbf16>, vector<2x256xf32> -> vector<2x256xf32>
    %c0_4 = arith.constant 0 : index
    %c0_5 = arith.constant 0 : index
    %5 = vector.load %arg4[%c0_4, %c0_5] : memref<1x256xf32, #tpu.memory_space<vmem>>, vector<1x256xf32>
    %6 = vector.broadcast %5 : vector<1x256xf32> to vector<2x256xf32>
    %7 = arith.addf %4, %6 : vector<2x256xf32>
    %cst_6 = arith.constant 0.000000e+00 : f32
    %8 = vector.broadcast %cst_6 : f32 to vector<2x256xf32>
    %9 = arith.maximumf %7, %8 : vector<2x256xf32>
    %10 = arith.truncf %9 : vector<2x256xf32> to vector<2x256xbf16>
    %c0_7 = arith.constant 0 : index
    %c0_8 = arith.constant 0 : index
    %11 = vector.load %arg2[%c0_7, %c0_8] : memref<2x4xf32, #tpu.memory_space<vmem>>, vector<2x4xf32>
    %12 = arith.truncf %11 : vector<2x4xf32> to vector<2x4xbf16>
    %c0_9 = arith.constant 0 : index
    %c0_10 = arith.constant 0 : index
    %13 = vector.load %arg5[%c0_9, %c0_10] : memref<256x512xbf16, #tpu.memory_space<vmem>>, vector<256x512xbf16>
    %cst_11 = arith.constant dense<0.000000e+00> : vector<2x512xf32>
    %14 = tpu.matmul %10, %13, %cst_11 {dimension_numbers = #tpu.dot_dimension_numbers<[1], [0], [0], [1], [0, 0, 1, 1], [], []>} : vector<2x256xbf16>, vector<256x512xbf16>, vector<2x512xf32> -> vector<2x512xf32>
    %c0_12 = arith.constant 0 : index
    %c0_13 = arith.constant 0 : index
    %15 = vector.load %arg6[%c0_12, %c0_13] : memref<4x512xbf16, #tpu.memory_space<vmem>>, vector<4x512xbf16>
    %cst_14 = arith.constant dense<0.000000e+00> : vector<2x512xf32>
    %16 = tpu.matmul %12, %15, %cst_14 {dimension_numbers = #tpu.dot_dimension_numbers<[1], [0], [0], [1], [0, 0, 1, 1], [], []>} : vector<2x4xbf16>, vector<4x512xbf16>, vector<2x512xf32> -> vector<2x512xf32>
    %17 = arith.addf %14, %16 : vector<2x512xf32>
    %c0_15 = arith.constant 0 : index
    %c0_16 = arith.constant 0 : index
    %18 = vector.load %arg7[%c0_15, %c0_16] : memref<1x512xf32, #tpu.memory_space<vmem>>, vector<1x512xf32>
    %19 = vector.broadcast %18 : vector<1x512xf32> to vector<2x512xf32>
    %20 = arith.addf %17, %19 : vector<2x512xf32>
    %cst_17 = arith.constant 0.000000e+00 : f32
    %21 = vector.broadcast %cst_17 : f32 to vector<2x512xf32>
    %22 = arith.maximumf %20, %21 : vector<2x512xf32>
    %23 = arith.truncf %22 : vector<2x512xf32> to vector<2x512xbf16>
    %c0_18 = arith.constant 0 : index
    %c0_19 = arith.constant 0 : index
    %24 = vector.load %arg8[%c0_18, %c0_19] : memref<512x512xbf16, #tpu.memory_space<vmem>>, vector<512x512xbf16>
    %cst_20 = arith.constant dense<0.000000e+00> : vector<2x512xf32>
    %25 = tpu.matmul %23, %24, %cst_20 {dimension_numbers = #tpu.dot_dimension_numbers<[1], [0], [0], [1], [0, 0, 1, 1], [], []>} : vector<2x512xbf16>, vector<512x512xbf16>, vector<2x512xf32> -> vector<2x512xf32>
    %c0_21 = arith.constant 0 : index
    %c0_22 = arith.constant 0 : index
    %26 = vector.load %arg9[%c0_21, %c0_22] : memref<1x512xf32, #tpu.memory_space<vmem>>, vector<1x512xf32>
    %27 = vector.broadcast %26 : vector<1x512xf32> to vector<2x512xf32>
    %28 = arith.addf %25, %27 : vector<2x512xf32>
    %cst_23 = arith.constant 0.000000e+00 : f32
    %29 = vector.broadcast %cst_23 : f32 to vector<2x512xf32>
    %30 = arith.maximumf %28, %29 : vector<2x512xf32>
    %31 = arith.truncf %30 : vector<2x512xf32> to vector<2x512xbf16>
    %c0_24 = arith.constant 0 : index
    %c0_25 = arith.constant 0 : index
    %32 = vector.load %arg10[%c0_24, %c0_25] : memref<512x512xbf16, #tpu.memory_space<vmem>>, vector<512x512xbf16>
    %cst_26 = arith.constant dense<0.000000e+00> : vector<2x512xf32>
    %33 = tpu.matmul %31, %32, %cst_26 {dimension_numbers = #tpu.dot_dimension_numbers<[1], [0], [0], [1], [0, 0, 1, 1], [], []>} : vector<2x512xbf16>, vector<512x512xbf16>, vector<2x512xf32> -> vector<2x512xf32>
    %c0_27 = arith.constant 0 : index
    %c0_28 = arith.constant 0 : index
    %34 = vector.load %arg11[%c0_27, %c0_28] : memref<1x512xf32, #tpu.memory_space<vmem>>, vector<1x512xf32>
    %35 = vector.broadcast %34 : vector<1x512xf32> to vector<2x512xf32>
    %36 = arith.addf %33, %35 : vector<2x512xf32>
    %cst_29 = arith.constant 0.000000e+00 : f32
    %37 = vector.broadcast %cst_29 : f32 to vector<2x512xf32>
    %38 = arith.maximumf %36, %37 : vector<2x512xf32>
    %39 = arith.truncf %38 : vector<2x512xf32> to vector<2x512xbf16>
    %c0_30 = arith.constant 0 : index
    %c0_31 = arith.constant 0 : index
    %40 = vector.load %arg12[%c0_30, %c0_31] : memref<512x2xbf16, #tpu.memory_space<vmem>>, vector<512x2xbf16>
    %cst_32 = arith.constant dense<0.000000e+00> : vector<2x2xf32>
    %41 = tpu.matmul %39, %40, %cst_32 {dimension_numbers = #tpu.dot_dimension_numbers<[1], [0], [0], [1], [0, 0, 1, 1], [], []>} : vector<2x512xbf16>, vector<512x2xbf16>, vector<2x2xf32> -> vector<2x2xf32>
    %c0_33 = arith.constant 0 : index
    %c0_34 = arith.constant 0 : index
    %42 = vector.load %arg13[%c0_33, %c0_34] : memref<1x2xf32, #tpu.memory_space<vmem>>, vector<1x2xf32>
    %43 = vector.broadcast %42 : vector<1x2xf32> to vector<2x2xf32>
    %44 = arith.addf %41, %43 : vector<2x2xf32>
    %c0_35 = arith.constant 0 : index
    %c0_36 = arith.constant 0 : index
    %45 = vector.load %arg14[%c0_35, %c0_36] : memref<2x2xf32, #tpu.memory_space<vmem>>, vector<2x2xf32>
    tpu.vector_store %arg14[%c0_35, %c0_36], %44 {strides = array<i32>} : memref<2x2xf32, #tpu.memory_space<vmem>>, vector<2x2xf32>,
    return
  }
  func.func @transform_0(%arg0: i32) -> (i32, i32) {
    %c0_i32 = arith.constant 0 : i32
    %c0_i32_0 = arith.constant 0 : i32
    return %arg0, %c0_i32 : i32, i32
  }
  func.func @transform_1(%arg0: i32) -> (i32, i32) {
    %c0_i32 = arith.constant 0 : i32
    %c0_i32_0 = arith.constant 0 : i32
    return %arg0, %c0_i32 : i32, i32
  }
  func.func @transform_2(%arg0: i32) -> (i32, i32) {
    %c0_i32 = arith.constant 0 : i32
    %c0_i32_0 = arith.constant 0 : i32
    %c0_i32_1 = arith.constant 0 : i32
    return %c0_i32, %c0_i32_0 : i32, i32
  }
  func.func @transform_3(%arg0: i32) -> (i32, i32) {
    %c0_i32 = arith.constant 0 : i32
    %c0_i32_0 = arith.constant 0 : i32
    %c0_i32_1 = arith.constant 0 : i32
    return %c0_i32, %c0_i32_0 : i32, i32
  }
  func.func @transform_4(%arg0: i32) -> (i32, i32) {
    %c0_i32 = arith.constant 0 : i32
    %c0_i32_0 = arith.constant 0 : i32
    %c0_i32_1 = arith.constant 0 : i32
    return %c0_i32, %c0_i32_0 : i32, i32
  }
  func.func @transform_5(%arg0: i32) -> (i32, i32) {
    %c0_i32 = arith.constant 0 : i32
    %c0_i32_0 = arith.constant 0 : i32
    %c0_i32_1 = arith.constant 0 : i32
    return %c0_i32, %c0_i32_0 : i32, i32
  }
  func.func @transform_6(%arg0: i32) -> (i32, i32) {
    %c0_i32 = arith.constant 0 : i32
    %c0_i32_0 = arith.constant 0 : i32
    %c0_i32_1 = arith.constant 0 : i32
    return %c0_i32, %c0_i32_0 : i32, i32
  }
  func.func @transform_7(%arg0: i32) -> (i32, i32) {
    %c0_i32 = arith.constant 0 : i32
    %c0_i32_0 = arith.constant 0 : i32
    %c0_i32_1 = arith.constant 0 : i32
    return %c0_i32, %c0_i32_0 : i32, i32
  }
  func.func @transform_8(%arg0: i32) -> (i32, i32) {
    %c0_i32 = arith.constant 0 : i32
    %c0_i32_0 = arith.constant 0 : i32
    %c0_i32_1 = arith.constant 0 : i32
    return %c0_i32, %c0_i32_0 : i32, i32
  }
  func.func @transform_9(%arg0: i32) -> (i32, i32) {
    %c0_i32 = arith.constant 0 : i32
    %c0_i32_0 = arith.constant 0 : i32
    %c0_i32_1 = arith.constant 0 : i32
    return %c0_i32, %c0_i32_0 : i32, i32
  }
  func.func @transform_10(%arg0: i32) -> (i32, i32) {
    %c0_i32 = arith.constant 0 : i32
    %c0_i32_0 = arith.constant 0 : i32
    %c0_i32_1 = arith.constant 0 : i32
    return %c0_i32, %c0_i32_0 : i32, i32
  }
  func.func @transform_11(%arg0: i32) -> (i32, i32) {
    %c0_i32 = arith.constant 0 : i32
    %c0_i32_0 = arith.constant 0 : i32
    %c0_i32_1 = arith.constant 0 : i32
    return %c0_i32, %c0_i32_0 : i32, i32
  }
  func.func @transform_12(%arg0: i32) -> (i32, i32) {
    %c0_i32 = arith.constant 0 : i32
    %c0_i32_0 = arith.constant 0 : i32
    %c0_i32_1 = arith.constant 0 : i32
    return %c0_i32, %c0_i32_0 : i32, i32
  }
  func.func @transform_13(%arg0: i32) -> (i32, i32) {
    %c0_i32 = arith.constant 0 : i32
    %c0_i32_0 = arith.constant 0 : i32
    return %arg0, %c0_i32 : i32, i32
  }
}

</mosaic_0001>

<bundles_post_ra>
// kernel: critic_cnn_forward.10
= control target key start
LH: loop header
LB: loop body
LE: loop exit
PB: predicated region body
PF: predicated region fallthrough
CT: control target
= control target key end

     0   :  { %s637_s12 = smov 0   ;;  %s726_s0 = inlined_call_operand.vmem [shape: f32[2,18,48], index: 0, kind: input, shape index: {}]   ;;  %s727_s1 = inlined_call_operand.vmem [shape: bf16[3,48,256], index: 1, kind: input, shape index: {}]   ;;  %s728_s2 = inlined_call_operand.vmem [shape: f32[1,256], index: 2, kind: input, shape index: {}]   ;;  %s729_s3 = inlined_call_operand.vmem [shape: bf16[2,16,256], index: 3, kind: output, shape index: {}]  }
   0x1 LB: > { %s523_s13 = sadd.s32 4294967295, %s614_s12   ;;  %p527_p0 = scmp.ge.s32.totalorder %s614_s12, 1  ;;  %s614_s12 = sphi %s637_s12, %s13_s12  }
   0x2   : > { %p137_p1 = scmp.lt.s32.totalorder %s614_s12, 3 }
   0x4   : > { %p138_p2 = pnand %p527_p0, %p137_p1 }
   0x5   : > { %p161_p3 = scmp.lt.s32.totalorder (!%p138_p2), %s523_s13, 1 }
   0x6   : > { %141 = sbr.rel (%p138_p2) target bundleno = 245 (0xf5), region = 32 }
   0xb   : > { %v581_v0 = vld [vmem:[%s727_s1 + $0x54] ss:$8 sps:$4 sm:$0xff]   ;;  %v583_v1 = vld [vmem:[%s727_s1 + $0x24] ss:$8 sps:$4 sm:$0xff]   ;;  %v616_v2 = vmov 0   ;;  %s731_s13 = smov (!%p161_p3, %s523_s13), 1  ;;  %v440_v31 = vlaneseq }
   0xc   : > { %257 = vmatprep.mubr.bf16.mxu0 %v616_v2  ;;  %333 = vmatprep.mubr.bf16.mxu1 %v616_v2  ;;  %v585_v3 = vld [vmem:[%s727_s1 + $0x50] ss:$8 sps:$4 sm:$0xff]   ;;  %v586_v4 = vld [vmem:[%s727_s1 + $0x20] ss:$8 sps:$4 sm:$0xff]   ;;  %v587_v5 = vld [vmem:[%s727_s1 + $0x44] ss:$8 sps:$4 sm:$0xff]  }
   0xd   : > { %235 = vmatprep.subr.bf16.mxu0 %v581_v0  ;;  %311 = vmatprep.subr.bf16.mxu1 %v583_v1  ;;  %v589_v6 = vld [vmem:[%s727_s1 + $0x14] ss:$8 sps:$4 sm:$0xff]   ;;  %v591_v7 = vld [vmem:[%s727_s1 + $0x40] ss:$8 sps:$4 sm:$0xff]   ;;  %s571_s28 = smul.u32 24, %s731_s13  ;;  %vm221_vm0 = vcmask 392192  }
   0xe   : > { %236 = vmatpush1.bf16.msra.mxu0 %v585_v3  ;;  %312 = vmatpush1.bf16.msra.mxu1 %v586_v4  ;;  %v592_v8 = vld [vmem:[%s727_s1 + $0x10] ss:$8 sps:$4 sm:$0xff]   ;;  %v593_v9 = vld [vmem:[%s727_s1 + $0x34] ss:$8 sps:$4 sm:$0xff]   ;;  %v595_v10 = vld [vmem:[%s727_s1 + $0x4] ss:$8 sps:$4 sm:$0xff]  }
   0xf   : > { %237 = vmatprep.subr.bf16.mxu0 %v587_v5  ;;  %313 = vmatprep.subr.bf16.mxu1 %v589_v6  ;;  %s678_s8 = scalar_lea.vmem %s726_s0, %s571_s28  ;;  %v597_v11 = vld [vmem:[%s727_s1 + $0x30] ss:$8 sps:$4 sm:$0xff]   ;;  %v598_v12 = vld [vmem:[%s727_s1] ss:$8 sps:$4 sm:$0xff]   ;;  %v601_v17 = vld [vmem:[%s727_s1 + $0x84] ss:$8 sps:$4 sm:$0xff]  }
  0x10   : > { %v181_v13 = vld [vmem:[%s678_s8 + $0x1] sm:$0xff]  ;;  %v182_v14 = vld [vmem:[%s678_s8 + $0x9] sm:$0xff]  ;;  %v604_v21 = vld [vmem:[%s727_s1 + $0x74] ss:$8 sps:$4 sm:$0xff]   ;;  %v441_v34 = vshrl.u32 %v440_v31, 7  ;;  %s568_s4 = sshll.u32 %s731_s13, 4 }
  0x11   : > { %v172_v15 = vld [vmem:[%s678_s8] sm:$0xff]  ;;  %v173_v16 = vld [vmem:[%s678_s8 + $0x8] sm:$0xff]  ;;  %v183_v18 = vpack.c.bf16 %v182_v14, %v181_v13  ;;  %v602_v22 = vld [vmem:[%s727_s1 + $0x70] ss:$8 sps:$4 sm:$0xff]   ;;  %s170_s7 = scalar_lea.vmem %s729_s3, %s568_s4 }
  0x12   : > { %238 = vmatpush1.bf16.msra.mxu0 %v591_v7  ;;  %314 = vmatpush1.bf16.msra.mxu1 %v592_v8  ;;  %v174_v19 = vpack.c.bf16 %v173_v16, %v172_v15  ;;  %v599_v20 = vld [vmem:[%s727_s1 + $0x80] ss:$8 sps:$4 sm:$0xff]   ;;  %v607_v23 = vld [vmem:[%s727_s1 + $0x64] ss:$8 sps:$4 sm:$0xff]   ;;  %v442_v37 = vsub.s32 0, %v441_v34  ;;  %v446_v40 = vsub.s32 1, %v441_v34 }
  0x13   : > { %239 = vmatprep.subr.bf16.mxu0 %v593_v9  ;;  %315 = vmatprep.subr.bf16.mxu1 %v595_v10  ;;  %v605_v24 = vld [vmem:[%s727_s1 + $0x60] ss:$8 sps:$4 sm:$0xff]  }
  0x14   : > { %v344_v25 = vld [vmem:[%s678_s8 + $0x2] sm:$0xff]  ;;  %v345_v26 = vld [vmem:[%s678_s8 + $0xa] sm:$0xff]  ;;  %v438_v39 = vld [vmem:[%s728_s2] sm:$0x3] }
  0x15   : > { %v346_v27 = vpack.c.bf16 %v345_v26, %v344_v25  ;;  %v443_v45 = vrot.slane %v438_v39, %v442_v37  ;;  %v447_v50 = vrot.slane %v438_v39, %v446_v40 }
  0x16   : > { %240 = vmatpush1.bf16.msra.mxu0 %v597_v11  ;;  %316 = vmatpush1.bf16.msra.mxu1 %v598_v12 }
  0x17   : > { %397 = vmatprep.subr.bf16.mxu0 %v601_v17 }
  0x19   : > { %543 = vmatmul.mubr.msk.bf16.vlgmr.msra.gmra.mxu0 %vm221_vm0, %v183_v18  ;;  %550 = vmatmul.mubr.msk.bf16.vlgmr.msra.gmra.mxu1 %vm221_vm0, %v174_v19 }
  0x1a   : > { %398 = vmatpush1.bf16.msra.mxu0 %v599_v20  ;;  %419 = vmatprep.mubr.bf16.mxu0 %v616_v2 }
  0x1b   : > { %399 = vmatprep.subr.bf16.mxu0 %v604_v21 }
  0x1e   : > { %400 = vmatpush1.bf16.msra.mxu0 %v602_v22 }
  0x1f   : > { %401 = vmatprep.subr.bf16.mxu0 %v607_v23 }
  0x22   : > { %402 = vmatpush1.bf16.msra.mxu0 %v605_v24 }
  0x25   : > { %563 = vmatmul.mubr.msk.bf16.vlgmr.msra.gmra.mxu0 %vm221_vm0, %v346_v27 }
  0xd9   : > { %v259_v28 = vpop.f32.mrf.mxu0  ;;  %v335_v29 = vpop.f32.mrf.mxu1 }
  0xda   : > { %v336_v38 = vadd.f32 %v335_v29, %v259_v28 }
  0xdb   : > { %v261_v30 = vpop.f32.mrf.mxu0  ;;  %v337_v32 = vpop.f32.mrf.mxu1 }
  0xdc   : > { %v338_v42 = vadd.f32 %v337_v32, %v261_v30 }
  0xdd   : > { %v263_v33 = vpop.f32.mrf.mxu0  ;;  %v339_v35 = vpop.f32.mrf.mxu1 }
  0xde   : > { %v340_v47 = vadd.f32 %v339_v35, %v263_v33 }
  0xdf   : > { %v265_v36 = vpop.f32.mrf.mxu0  ;;  %v341_v44 = vpop.f32.mrf.mxu1 }
  0xe0   : > { %v342_v52 = vadd.f32 %v341_v44, %v265_v36 }
  0xe5   : > { %v421_v41 = vpop.f32.mrf.mxu0 }
  0xe6   : > { %v430_v43 = vadd.f32 %v421_v41, %v336_v38 }
  0xe7   : > { %v423_v46 = vpop.f32.mrf.mxu0 }
  0xe8   : > { %v434_v48 = vmul.f32 0.003921569, %v430_v43  ;;  %v431_v49 = vadd.f32 %v423_v46, %v338_v42 }
  0xe9   : > { %v425_v51 = vpop.f32.mrf.mxu0 }
  0xea   : > { %v435_v53 = vmul.f32 0.003921569, %v431_v49  ;;  %v432_v54 = vadd.f32 %v425_v51, %v340_v47  ;;  %v450_v56 = vadd.f32 %v443_v45, %v434_v48 }
  0xeb   : > { %v427_v55 = vpop.f32.mrf.mxu0 }
  0xec   : > { %v451_v57 = vadd.f32 %v447_v50, %v435_v53  ;;  %v436_v58 = vmul.f32 0.003921569, %v432_v54  ;;  %v433_v59 = vadd.f32 %v427_v55, %v342_v52 }
  0xee   : > { %v569_v60 = vpack.c.bf16 %v451_v57, %v450_v56  ;;  %v437_v61 = vmul.f32 0.003921569, %v433_v59  ;;  %v452_v62 = vadd.f32 %v443_v45, %v436_v58 }
  0xf0   : > { %466 = vst [vmem:[%s170_s7] sm:$0xff] %v569_v60  ;;  %v453_v63 = vadd.f32 %v447_v50, %v437_v61 }
  0xf2   : > { %v570_v0 = vpack.c.bf16 %v453_v63, %v452_v62 }
  0xf4   : > { %467 = vst [vmem:[%s170_s7 + $0x8] sm:$0xff] %v570_v0 }
  0xf5 PF: > { %s13_s12 = sadd.s32 1, %s614_s12  }
  0xf6   : > { %p10_p4 = scmp.ge.s32.totalorder %s13_s12, 4  }
  0xf8   :  { %12 = sbr.rel (!%p10_p4) target bundleno = 1 (0x1), region = 64 }

// kernel: critic_cnn_forward.13
= control target key start
LH: loop header
LB: loop body
LE: loop exit
PB: predicated region body
PF: predicated region fallthrough
CT: control target
= control target key end

     0   :  { %s895_s12 = smov 0   ;;  %s1078_s0 = inlined_call_operand.vmem [shape: bf16[2,10,128], index: 0, kind: input, shape index: {}]   ;;  %s1079_s1 = inlined_call_operand.vmem [shape: bf16[3,128,256], index: 1, kind: input, shape index: {}]   ;;  %s1080_s2 = inlined_call_operand.vmem [shape: f32[1,256], index: 2, kind: input, shape index: {}]   ;;  %s1081_s3 = inlined_call_operand.vmem [shape: bf16[2,8,256], index: 3, kind: output, shape index: {}]  }
   0x1 LB: > { %s686_s13 = sadd.s32 4294967295, %s872_s12   ;;  %p690_p0 = scmp.ge.s32.totalorder %s872_s12, 1  ;;  %s872_s12 = sphi %s895_s12, %s13_s12  }
   0x2   : > { %p137_p1 = scmp.lt.s32.totalorder %s872_s12, 3 }
   0x4   : > { %p138_p2 = pnand %p690_p0, %p137_p1 }
   0x5   : > { %p161_p3 = scmp.lt.s32.totalorder (!%p138_p2), %s686_s13, 1 }
   0x6   : > { %141 = sbr.rel (%p138_p2) target bundleno = 279 (0x117), region = 32 }
   0xb   : > { %v792_v0 = vld [vmem:[%s1079_s1 + $0xf4] ss:$8 sps:$4 sm:$0xff]   ;;  %v874_v2 = vmov 0   ;;  %v796_v3 = vld [vmem:[%s1079_s1 + $0xf0] ss:$8 sps:$4 sm:$0xff]   ;;  %s1083_s13 = smov (!%p161_p3, %s686_s13), 1 }
   0xc   : > { %v794_v1 = vld [vmem:[%s1079_s1 + $0x74] ss:$8 sps:$4 sm:$0xff]   ;;  %332 = vmatprep.mubr.bf16.mxu0 %v874_v2  ;;  %453 = vmatprep.mubr.bf16.mxu1 %v874_v2  ;;  %v797_v4 = vld [vmem:[%s1079_s1 + $0x70] ss:$8 sps:$4 sm:$0xff]   ;;  %v798_v5 = vld [vmem:[%s1079_s1 + $0xe4] ss:$8 sps:$4 sm:$0xff]  }
   0xd   : > { %300 = vmatprep.subr.bf16.mxu0 %v792_v0  ;;  %421 = vmatprep.subr.bf16.mxu1 %v794_v1  ;;  %v800_v6 = vld [vmem:[%s1079_s1 + $0x64] ss:$8 sps:$4 sm:$0xff]   ;;  %v802_v7 = vld [vmem:[%s1079_s1 + $0xe0] ss:$8 sps:$4 sm:$0xff]   ;;  %v804_v9 = vld [vmem:[%s1079_s1 + $0xd4] ss:$8 sps:$4 sm:$0xff]  }
   0xe   : > { %301 = vmatpush1.bf16.msra.mxu0 %v796_v3  ;;  %422 = vmatpush1.bf16.msra.mxu1 %v797_v4  ;;  %v803_v8 = vld [vmem:[%s1079_s1 + $0x60] ss:$8 sps:$4 sm:$0xff]   ;;  %v806_v10 = vld [vmem:[%s1079_s1 + $0x54] ss:$8 sps:$4 sm:$0xff]   ;;  %v808_v11 = vld [vmem:[%s1079_s1 + $0xd0] ss:$8 sps:$4 sm:$0xff]   ;;  %v610_v3 = vlaneseq }
   0xf   : > { %302 = vmatprep.subr.bf16.mxu0 %v798_v5  ;;  %423 = vmatprep.subr.bf16.mxu1 %v800_v6  ;;  %v809_v12 = vld [vmem:[%s1079_s1 + $0x50] ss:$8 sps:$4 sm:$0xff]   ;;  %v810_v13 = vld [vmem:[%s1079_s1 + $0xc4] ss:$8 sps:$4 sm:$0xff]   ;;  %v814_v15 = vld [vmem:[%s1079_s1 + $0xc0] ss:$8 sps:$4 sm:$0xff]  }
  0x10   : > { %v812_v14 = vld [vmem:[%s1079_s1 + $0x44] ss:$8 sps:$4 sm:$0xff]   ;;  %v815_v16 = vld [vmem:[%s1079_s1 + $0x40] ss:$8 sps:$4 sm:$0xff]   ;;  %v816_v17 = vld [vmem:[%s1079_s1 + $0xb4] ss:$8 sps:$4 sm:$0xff]  }
  0x11   : > { %v818_v18 = vld [vmem:[%s1079_s1 + $0x34] ss:$8 sps:$4 sm:$0xff]   ;;  %v820_v19 = vld [vmem:[%s1079_s1 + $0xb0] ss:$8 sps:$4 sm:$0xff]   ;;  %s780_s29 = sshll.u32 %s1083_s13, 3  ;;  %v611_v4 = vshrl.u32 %v610_v3, 7 }
  0x12   : > { %303 = vmatpush1.bf16.msra.mxu0 %v802_v7  ;;  %424 = vmatpush1.bf16.msra.mxu1 %v803_v8  ;;  %v821_v20 = vld [vmem:[%s1079_s1 + $0x30] ss:$8 sps:$4 sm:$0xff]   ;;  %v822_v21 = vld [vmem:[%s1079_s1 + $0xa4] ss:$8 sps:$4 sm:$0xff]   ;;  %s983_s9 = scalar_lea.vmem %s1078_s0, %s780_s29  ;;  %v826_v23 = vld [vmem:[%s1079_s1 + $0xa0] ss:$8 sps:$4 sm:$0xff]   ;;  %s170_s21 = scalar_lea.vmem %s1081_s3, %s780_s29 }
  0x13   : > { %304 = vmatprep.subr.bf16.mxu0 %v804_v9  ;;  %425 = vmatprep.subr.bf16.mxu1 %v806_v10  ;;  %v824_v22 = vld [vmem:[%s1079_s1 + $0x24] ss:$8 sps:$4 sm:$0xff]   ;;  %v827_v24 = vld [vmem:[%s1079_s1 + $0x20] ss:$8 sps:$4 sm:$0xff]   ;;  %v828_v25 = vld [vmem:[%s1079_s1 + $0x94] ss:$8 sps:$4 sm:$0xff]  }
  0x14   : > { %v830_v26 = vld [vmem:[%s1079_s1 + $0x14] ss:$8 sps:$4 sm:$0xff]   ;;  %v172_v27 = vld [vmem:[%s983_s9] sm:$0xf]  ;;  %v189_v28 = vld [vmem:[%s983_s9 + $0x4] sm:$0x1] }
  0x15   : > { %v711_v29 = vcombine.low %v172_v27, %v189_v28  ;;  %v832_v30 = vld [vmem:[%s1079_s1 + $0x90] ss:$8 sps:$4 sm:$0xff]   ;;  %v834_v32 = vld [vmem:[%s1079_s1 + $0x84] ss:$8 sps:$4 sm:$0xff]   ;;  %v838_v37 = vld [vmem:[%s1079_s1 + $0x80] ss:$8 sps:$4 sm:$0xff]  }
  0x16   : > { %305 = vmatpush1.bf16.msra.mxu0 %v808_v11  ;;  %426 = vmatpush1.bf16.msra.mxu1 %v809_v12  ;;  %v833_v31 = vld [vmem:[%s1079_s1 + $0x10] ss:$8 sps:$4 sm:$0xff]   ;;  %v836_v34 = vld [vmem:[%s1079_s1 + $0x4] ss:$8 sps:$4 sm:$0xff]   ;;  %v839_v38 = vld [vmem:[%s1079_s1] ss:$8 sps:$4 sm:$0xff]  }
  0x17   : > { %306 = vmatprep.subr.bf16.mxu0 %v810_v13  ;;  %427 = vmatprep.subr.bf16.mxu1 %v812_v14  ;;  %v215_v33 = vshll.u32 %v711_v29, 16  ;;  %v213_v35 = vshrl.u32 %v711_v29, 16  ;;  %v843_v39 = vld [vmem:[%s1079_s1 + $0x174] ss:$8 sps:$4 sm:$0xff]   ;;  %v841_v41 = vld [vmem:[%s1079_s1 + $0x170] ss:$8 sps:$4 sm:$0xff]  }
  0x18   : > { %v846_v42 = vld [vmem:[%s1079_s1 + $0x164] ss:$8 sps:$4 sm:$0xff]   ;;  %v844_v43 = vld [vmem:[%s1079_s1 + $0x160] ss:$8 sps:$4 sm:$0xff]   ;;  %v849_v44 = vld [vmem:[%s1079_s1 + $0x154] ss:$8 sps:$4 sm:$0xff]  }
  0x19   : > { %v217_v36 = vrot.slane %v215_v33, 1  ;;  %v847_v45 = vld [vmem:[%s1079_s1 + $0x150] ss:$8 sps:$4 sm:$0xff]   ;;  %v852_v46 = vld [vmem:[%s1079_s1 + $0x144] ss:$8 sps:$4 sm:$0xff]   ;;  %v612_v5 = vsub.s32 0, %v611_v4 }
  0x1a   : > { %307 = vmatpush1.bf16.msra.mxu0 %v814_v15  ;;  %428 = vmatpush1.bf16.msra.mxu1 %v815_v16  ;;  %v850_v47 = vld [vmem:[%s1079_s1 + $0x140] ss:$8 sps:$4 sm:$0xff]   ;;  %v855_v48 = vld [vmem:[%s1079_s1 + $0x134] ss:$8 sps:$4 sm:$0xff]   ;;  %v853_v49 = vld [vmem:[%s1079_s1 + $0x130] ss:$8 sps:$4 sm:$0xff]  }
  0x1b   : > { %308 = vmatprep.subr.bf16.mxu0 %v816_v17  ;;  %429 = vmatprep.subr.bf16.mxu1 %v818_v18  ;;  %v218_v40 = vor.u32 %v217_v36, %v213_v35  ;;  %v858_v50 = vld [vmem:[%s1079_s1 + $0x124] ss:$8 sps:$4 sm:$0xff]   ;;  %v856_v51 = vld [vmem:[%s1079_s1 + $0x120] ss:$8 sps:$4 sm:$0xff]   ;;  %v861_v52 = vld [vmem:[%s1079_s1 + $0x114] ss:$8 sps:$4 sm:$0xff]  }
  0x1c   : > { %v859_v53 = vld [vmem:[%s1079_s1 + $0x110] ss:$8 sps:$4 sm:$0xff]   ;;  %v462_v54 = vld [vmem:[%s983_s9] sm:$0xe]  ;;  %v864_v55 = vld [vmem:[%s1079_s1 + $0x104] ss:$8 sps:$4 sm:$0xff]  }
  0x1d   : > { %v760_v56 = vcombine.low %v462_v54, %v189_v28  ;;  %v862_v57 = vld [vmem:[%s1079_s1 + $0x100] ss:$8 sps:$4 sm:$0xff]   ;;  %v616_v6 = vsub.s32 1, %v611_v4 }
  0x1e   : > { %309 = vmatpush1.bf16.msra.mxu0 %v820_v19  ;;  %430 = vmatpush1.bf16.msra.mxu1 %v821_v20  ;;  %v608_v7 = vld [vmem:[%s1080_s2] sm:$0x3] }
  0x1f   : > { %310 = vmatprep.subr.bf16.mxu0 %v822_v21  ;;  %431 = vmatprep.subr.bf16.mxu1 %v824_v22  ;;  %v483_v58 = vrot.slane %v760_v56, 1  ;;  %v613_v12 = vrot.slane %v608_v7, %v612_v5  ;;  %v617_v13 = vrot.slane %v608_v7, %v616_v6 }
  0x22   : > { %311 = vmatpush1.bf16.msra.mxu0 %v826_v23  ;;  %432 = vmatpush1.bf16.msra.mxu1 %v827_v24 }
  0x23   : > { %312 = vmatprep.subr.bf16.mxu0 %v828_v25  ;;  %433 = vmatprep.subr.bf16.mxu1 %v830_v26 }
  0x26   : > { %313 = vmatpush1.bf16.msra.mxu0 %v832_v30  ;;  %434 = vmatpush1.bf16.msra.mxu1 %v833_v31 }
  0x27   : > { %314 = vmatprep.subr.bf16.mxu0 %v834_v32  ;;  %435 = vmatprep.subr.bf16.mxu1 %v836_v34 }
  0x2a   : > { %315 = vmatpush1.bf16.msra.mxu0 %v838_v37  ;;  %436 = vmatpush1.bf16.msra.mxu1 %v839_v38 }
  0x2b   : > { %565 = vmatprep.subr.bf16.mxu0 %v843_v39 }
  0x2d   : > { %333 = vmatmul.mubr.bf16.vlgmr.msra.gmra.mxu0 %v218_v40  ;;  %454 = vmatmul.mubr.bf16.vlgmr.msra.gmra.mxu1 %v172_v27 }
  0x2e   : > { %566 = vmatpush1.bf16.msra.mxu0 %v841_v41  ;;  %597 = vmatprep.mubr.bf16.mxu0 %v874_v2 }
  0x2f   : > { %567 = vmatprep.subr.bf16.mxu0 %v846_v42 }
  0x32   : > { %568 = vmatpush1.bf16.msra.mxu0 %v844_v43 }
  0x33   : > { %569 = vmatprep.subr.bf16.mxu0 %v849_v44 }
  0x36   : > { %570 = vmatpush1.bf16.msra.mxu0 %v847_v45 }
  0x37   : > { %571 = vmatprep.subr.bf16.mxu0 %v852_v46 }
  0x3a   : > { %572 = vmatpush1.bf16.msra.mxu0 %v850_v47 }
  0x3b   : > { %573 = vmatprep.subr.bf16.mxu0 %v855_v48 }
  0x3e   : > { %574 = vmatpush1.bf16.msra.mxu0 %v853_v49 }
  0x3f   : > { %575 = vmatprep.subr.bf16.mxu0 %v858_v50 }
  0x42   : > { %576 = vmatpush1.bf16.msra.mxu0 %v856_v51 }
  0x43   : > { %577 = vmatprep.subr.bf16.mxu0 %v861_v52 }
  0x46   : > { %578 = vmatpush1.bf16.msra.mxu0 %v859_v53 }
  0x47   : > { %579 = vmatprep.subr.bf16.mxu0 %v864_v55 }
  0x4a   : > { %580 = vmatpush1.bf16.msra.mxu0 %v862_v57 }
  0x4d   : > { %598 = vmatmul.mubr.bf16.vlgmr.msra.gmra.mxu0 %v483_v58 }
  0xed   : > { %v334_v59 = vpop.f32.mrf.mxu0  ;;  %v455_v60 = vpop.f32.mrf.mxu1 }
  0xee   : > { %v456_v8 = vadd.f32 %v455_v60, %v334_v59 }
  0xef   : > { %v336_v61 = vpop.f32.mrf.mxu0  ;;  %v457_v62 = vpop.f32.mrf.mxu1 }
  0xf0   : > { %v458_v10 = vadd.f32 %v457_v62, %v336_v61 }
  0xf1   : > { %v338_v63 = vpop.f32.mrf.mxu0  ;;  %v459_v0 = vpop.f32.mrf.mxu1 }
  0xf3   : > { %v339_v1 = vpop.f32.mrf.mxu0  ;;  %v460_v2 = vpop.f32.mrf.mxu1 }
 0x10d   : > { %v599_v9 = vpop.f32.mrf.mxu0 }
 0x10e   : > { %v606_v11 = vadd.f32 %v599_v9, %v456_v8 }
 0x10f   : > { %v601_v14 = vpop.f32.mrf.mxu0 }
 0x110   : > { %v607_v15 = vadd.f32 %v601_v14, %v458_v10  ;;  %v620_v17 = vadd.f32 %v613_v12, %v606_v11 }
 0x111   : > { %v603_v16 = vpop.f32.mrf.mxu0 }
 0x112   : > { %v621_v18 = vadd.f32 %v617_v13, %v607_v15 }
 0x113   : > { %v604_v19 = vpop.f32.mrf.mxu0 }
 0x114   : > { %v782_v20 = vpack.c.bf16 %v621_v18, %v620_v17 }
 0x116   : > { %630 = vst [vmem:[%s170_s21] sm:$0xff] %v782_v20 }
 0x117 PF: > { %s13_s12 = sadd.s32 1, %s872_s12  }
 0x118   : > { %p10_p4 = scmp.ge.s32.totalorder %s13_s12, 4  }
 0x11a   :  { %12 = sbr.rel (!%p10_p4) target bundleno = 1 (0x1), region = 64 }

// kernel: critic_cnn_forward.11
= control target key start
LH: loop header
LB: loop body
LE: loop exit
PB: predicated region body
PF: predicated region fallthrough
CT: control target
= control target key end

     0   :  { %s1418_s18 = smov 0   ;;  %s1661_s0 = inlined_call_operand.vmem [shape: bf16[2,10,128], index: 0, kind: input, shape index: {}]   ;;  %s1662_s1 = inlined_call_operand.vmem [shape: bf16[3,128,128], index: 1, kind: input, shape index: {}]   ;;  %s1663_s2 = inlined_call_operand.vmem [shape: f32[1,128], index: 2, kind: input, shape index: {}]   ;;  %s1664_s3 = inlined_call_operand.vmem [shape: bf16[3,128,128], index: 3, kind: input, shape index: {}]   ;;  %s1665_s4 = inlined_call_operand.vmem [shape: f32[1,128], index: 4, kind: input, shape index: {}]   ;;  %s1666_s5 = inlined_call_operand.vmem [shape: bf16[2,8,128], index: 5, kind: output, shape index: {}]  }
   0x1 LB: > { %s1011_s19 = sadd.s32 4294967295, %s1383_s18   ;;  %p1015_p0 = scmp.ge.s32.totalorder %s1383_s18, 1  ;;  %s1383_s18 = sphi %s1418_s18, %s15_s18  }
   0x2   : > { %p187_p1 = scmp.lt.s32.totalorder %s1383_s18, 3 }
   0x4   : > { %p188_p2 = pnand %p1015_p0, %p187_p1 }
   0x5   : > { %p214_p3 = scmp.lt.s32.totalorder (!%p188_p2), %s1011_s19, 1 }
   0x6   : > { %191 = sbr.rel (%p188_p2) target bundleno = 534 (0x216), region = 40 }
   0xb   : > { %v1327_v0 = vld [vmem:[%s1662_s1 + $0x78] sm:$0xff]   ;;  %v1385_v1 = vmov 0.0   ;;  %v1329_v3 = vld [vmem:[%s1662_s1 + $0x70] sm:$0xff]   ;;  %vm1386_vm0 = vmmov 0   ;;  %v1387_v5 = vmov 0   ;;  %v1331_v6 = vld [vmem:[%s1662_s1 + $0x68] sm:$0xff]  }
   0xc   : > { %1196 = vmatprep.subr.bf16.mxu0 %v1385_v1  ;;  %1216 = vmatprep.subr.bf16.mxu1 %v1385_v1  ;;  %v1328_v2 = vld [vmem:[%s1662_s1 + $0x38] sm:$0xff]   ;;  %v1330_v4 = vld [vmem:[%s1662_s1 + $0x30] sm:$0xff]   ;;  %572 = vst [vmem:[#allocation2] sm:$0xf] %v1387_v5  ;;  %573 = vst [vmem:[#allocation2 + $0x4] sm:$0x1] %v1387_v5 }
   0xd   : > { %1197 = vmatpush3.bf16.msra.mxu0 %v1327_v0  ;;  %1212 = vmatprep.mubr.msk.bf16.mxu0 %vm1386_vm0, %v1385_v1  ;;  %s1668_s19 = smov (!%p214_p3, %s1011_s19), 1  ;;  %v1332_v7 = vld [vmem:[%s1662_s1 + $0x28] sm:$0xff]   ;;  %v1333_v8 = vld [vmem:[%s1662_s1 + $0x60] sm:$0xff]   ;;  %v1335_v10 = vld [vmem:[%s1662_s1 + $0x58] sm:$0xff]   ;;  %vm588_vm1 = vcmask 1043456   ;;  %vm594_vm3 = vcmask 1040384  }
   0xe   : > { %1217 = vmatpush3.bf16.msra.mxu1 %v1328_v2  ;;  %1198 = vmatprep.subr.bf16.mxu0 %v1385_v1  ;;  %s1140_s9 = sshll.u32 %s1668_s19, 3  ;;  %v1334_v9 = vld [vmem:[%s1662_s1 + $0x20] sm:$0xff]   ;;  %v1336_v11 = vld [vmem:[%s1662_s1 + $0x18] sm:$0xff]   ;;  %v1337_v16 = vld [vmem:[%s1662_s1 + $0x50] sm:$0xff]   ;;  %vm589_vm2 = vsmask.f32 7938 }
   0xf   : > { %1218 = vmatprep.subr.bf16.mxu1 %v1385_v1  ;;  %1232 = vmatprep.mubr.msk.bf16.mxu1 %vm1386_vm0, %v1385_v1  ;;  %s1470_s14 = scalar_lea.vmem %s1661_s0, %s1140_s9  ;;  %v1338_v17 = vld [vmem:[%s1662_s1 + $0x10] sm:$0xff]   ;;  %v1339_v19 = vld [vmem:[%s1662_s1 + $0x48] sm:$0xff]   ;;  %v1341_v22 = vld [vmem:[%s1662_s1 + $0x40] sm:$0xff]   ;;  %vm595_vm4 = vsmask.f32 256  ;;  %vm950_vm7 = vcmask 1046528  }
  0x10   : > { %v224_v12 = vld [vmem:[%s1470_s14] sm:$0xf]  ;;  %v242_v13 = vld [vmem:[%s1470_s14 + $0x4] sm:$0x1]  ;;  %v1340_v21 = vld [vmem:[%s1662_s1 + $0x8] sm:$0xff]   ;;  %s1018_s10 = sshll.u32 %s1668_s19, 2 }
  0x11   : > { %1199 = vmatpush3.bf16.msra.mxu0 %v1329_v3  ;;  %v225_v14 = vmax.bf16 %v1387_v5, %v224_v12  ;;  %v243_v15 = vmax.bf16 %v1387_v5, %v242_v13  ;;  %v1342_v25 = vld [vmem:[%s1662_s1] sm:$0xff]   ;;  %v1343_v27 = vld [vmem:[%s1662_s1 + $0xb8] sm:$0xff]   ;;  %v1344_v28 = vld [vmem:[%s1662_s1 + $0xb0] sm:$0xff]   ;;  %s222_s12 = scalar_lea.vmem %s1666_s5, %s1018_s10 }
  0x12   : > { %1219 = vmatpush3.bf16.msra.mxu1 %v1330_v4  ;;  %1200 = vmatprep.subr.bf16.mxu0 %v1385_v1  ;;  %v1345_v29 = vld [vmem:[%s1662_s1 + $0xa8] sm:$0xff]   ;;  %v1346_v30 = vld [vmem:[%s1662_s1 + $0xa0] sm:$0xff]   ;;  %v1347_v31 = vld [vmem:[%s1662_s1 + $0x98] sm:$0xff]  }
  0x13   : > { %1220 = vmatprep.subr.bf16.mxu1 %v1385_v1  ;;  %v1035_v18 = vcombine.low %v225_v14, %v243_v15  ;;  %v1348_v32 = vld [vmem:[%s1662_s1 + $0x90] sm:$0xff]   ;;  %v450_v33 = vld [vmem:[%s1470_s14] sm:$0xe]  ;;  %v1349_v35 = vld [vmem:[%s1662_s1 + $0x88] sm:$0xff]  }
  0x14   : > { %v451_v34 = vmax.bf16 %v1387_v5, %v450_v33  ;;  %v1350_v37 = vld [vmem:[%s1662_s1 + $0x80] sm:$0xff]   ;;  %v1351_v39 = vld [vmem:[%s1664_s3 + $0x38] sm:$0xff]   ;;  %v1352_v40 = vld [vmem:[%s1664_s3 + $0x30] sm:$0xff]  }
  0x15   : > { %1201 = vmatpush3.bf16.msra.mxu0 %v1331_v6  ;;  %v269_v20 = vshll.u32 %v1035_v18, 16  ;;  %v267_v23 = vshrl.u32 %v1035_v18, 16  ;;  %v1353_v41 = vld [vmem:[%s1664_s3 + $0x78] sm:$0xff]   ;;  %v1354_v42 = vld [vmem:[%s1664_s3 + $0x28] sm:$0xff]   ;;  %v1355_v43 = vld [vmem:[%s1664_s3 + $0x70] sm:$0xff]  }
  0x16   : > { %1221 = vmatpush3.bf16.msra.mxu1 %v1332_v7  ;;  %1202 = vmatprep.subr.bf16.mxu0 %v1385_v1  ;;  %v1068_v36 = vcombine.low %v451_v34, %v243_v15  ;;  %v1356_v44 = vld [vmem:[%s1664_s3 + $0x20] sm:$0xff]   ;;  %v1357_v45 = vld [vmem:[%s1664_s3 + $0x68] sm:$0xff]   ;;  %v1358_v46 = vld [vmem:[%s1664_s3 + $0x18] sm:$0xff]  }
  0x17   : > { %1222 = vmatprep.subr.bf16.mxu1 %v1385_v1  ;;  %v271_v24 = vrot.slane %v269_v20, 1  ;;  %v1359_v47 = vld [vmem:[%s1664_s3 + $0x60] sm:$0xff]   ;;  %v1360_v48 = vld [vmem:[%s1664_s3 + $0x10] sm:$0xff]   ;;  %v1361_v49 = vld [vmem:[%s1664_s3 + $0x58] sm:$0xff]  }
  0x18   : > { %v472_v38 = vrot.slane %v1068_v36, 1  ;;  %v1362_v50 = vld [vmem:[%s1664_s3 + $0x8] sm:$0xff]   ;;  %v1363_v51 = vld [vmem:[%s1664_s3 + $0x50] sm:$0xff]   ;;  %v1364_v52 = vld [vmem:[%s1664_s3] sm:$0xff]  }
  0x19   : > { %1203 = vmatpush3.bf16.msra.mxu0 %v1333_v8  ;;  %v272_v26 = vor.u32 %v271_v24, %v267_v23  ;;  %v1365_v53 = vld [vmem:[%s1664_s3 + $0x48] sm:$0xff]   ;;  %v1368_v54 = vld [vmem:[%s1664_s3 + $0x40] sm:$0xff]   ;;  %vm590_vm5 = vmand %vm588_vm1, %vm589_vm2 }
  0x1a   : > { %1223 = vmatpush3.bf16.msra.mxu1 %v1334_v9  ;;  %1204 = vmatprep.subr.bf16.mxu0 %v1385_v1  ;;  %v1077_v2 = vld [vmem:[%s1663_s2] ss:$0 sm:$0xff]  ;;  %vm596_vm6 = vmand %vm594_vm3, %vm595_vm4 }
  0x1b   : > { %1224 = vmatprep.subr.bf16.mxu1 %v1385_v1  ;;  %v591_v13 = vld [vmem:[#allocation2] sm:$0xf] }
  0x1c   : > { %v1376_v34 = vld [vmem:[%s1664_s3 + $0x80] sm:$0xff]  }
  0x1d   : > { %1205 = vmatpush3.bf16.msra.mxu0 %v1335_v10 }
  0x1e   : > { %1225 = vmatpush3.bf16.msra.mxu1 %v1336_v11  ;;  %1206 = vmatprep.subr.bf16.mxu0 %v1385_v1 }
  0x1f   : > { %1226 = vmatprep.subr.bf16.mxu1 %v1385_v1 }
  0x21   : > { %1207 = vmatpush3.bf16.msra.mxu0 %v1337_v16 }
  0x22   : > { %1227 = vmatpush3.bf16.msra.mxu1 %v1338_v17  ;;  %1208 = vmatprep.subr.bf16.mxu0 %v1385_v1 }
  0x23   : > { %1228 = vmatprep.subr.bf16.mxu1 %v1385_v1 }
  0x25   : > { %1209 = vmatpush3.bf16.msra.mxu0 %v1339_v19 }
  0x26   : > { %1229 = vmatpush3.bf16.msra.mxu1 %v1340_v21  ;;  %1210 = vmatprep.subr.bf16.mxu0 %v1385_v1 }
  0x27   : > { %1230 = vmatprep.subr.bf16.mxu1 %v1385_v1 }
  0x29   : > { %1211 = vmatpush3.bf16.msra.mxu0 %v1341_v22 }
  0x2a   : > { %1231 = vmatpush3.bf16.msra.mxu1 %v1342_v25  ;;  %1236 = vmatprep.subr.bf16.mxu0 %v1385_v1  ;;  %v1369_v25 = vld [vmem:[%s1664_s3 + $0xb8] sm:$0xff]  }
  0x2b   : > { %1256 = vmatprep.subr.bf16.mxu1 %v1385_v1 }
  0x2c   : > { %1213 = vmatmul.mubr.bf16.vlgmr.msra.gmra.mxu0 %v272_v26 }
  0x2d   : > { %1233 = vmatmul.mubr.bf16.vlgmr.msra.gmra.mxu1 %v225_v14  ;;  %1237 = vmatpush3.bf16.msra.mxu0 %v1343_v27  ;;  %v597_v14 = vld [vmem:[#allocation2 + $0x4] sm:$0x1]  ;;  %v1370_v27 = vld [vmem:[%s1664_s3 + $0xb0] sm:$0xff]  }
  0x2e   : > { %1238 = vmatprep.subr.bf16.mxu0 %v1385_v1  ;;  %1252 = vmatprep.mubr.msk.bf16.mxu0 %vm1386_vm0, %v1385_v1 }
  0x2f   : > { %1272 = vmatprep.mubr.msk.bf16.mxu1 %vm1386_vm0, %v1385_v1  ;;  %1257 = vmatpush3.bf16.msra.mxu1 %v1353_v41 }
  0x30   : > { %1258 = vmatprep.subr.bf16.mxu1 %v1385_v1 }
  0x31   : > { %1239 = vmatpush3.bf16.msra.mxu0 %v1344_v28  ;;  %v1371_v28 = vld [vmem:[%s1664_s3 + $0xa8] sm:$0xff]  }
  0x32   : > { %1240 = vmatprep.subr.bf16.mxu0 %v1385_v1 }
  0x33   : > { %1259 = vmatpush3.bf16.msra.mxu1 %v1355_v43 }
  0x34   : > { %1260 = vmatprep.subr.bf16.mxu1 %v1385_v1 }
  0x35   : > { %1241 = vmatpush3.bf16.msra.mxu0 %v1345_v29  ;;  %v1372_v29 = vld [vmem:[%s1664_s3 + $0xa0] sm:$0xff]  }
  0x36   : > { %1242 = vmatprep.subr.bf16.mxu0 %v1385_v1 }
  0x37   : > { %1261 = vmatpush3.bf16.msra.mxu1 %v1357_v45  ;;  %v944_v45 = vld [vmem:[%s1470_s14] sm:$0xf] }
  0x38   : > { %1262 = vmatprep.subr.bf16.mxu1 %v1385_v1 }
  0x39   : > { %1243 = vmatpush3.bf16.msra.mxu0 %v1346_v30  ;;  %v1373_v30 = vld [vmem:[%s1664_s3 + $0x98] sm:$0xff]  }
  0x3a   : > { %1244 = vmatprep.subr.bf16.mxu0 %v1385_v1 }
  0x3b   : > { %1263 = vmatpush3.bf16.msra.mxu1 %v1359_v47  ;;  %v946_v47 = vunpack.c.l.bf16 %v944_v45 }
  0x3c   : > { %1264 = vmatprep.subr.bf16.mxu1 %v1385_v1 }
  0x3d   : > { %1245 = vmatpush3.bf16.msra.mxu0 %v1347_v31  ;;  %v1374_v31 = vld [vmem:[%s1664_s3 + $0x90] sm:$0xff]  }
  0x3e   : > { %1246 = vmatprep.subr.bf16.mxu0 %v1385_v1 }
  0x3f   : > { %1265 = vmatpush3.bf16.msra.mxu1 %v1361_v49  ;;  %v951_v49 = vrot.slane %v946_v47, 1 }
  0x40   : > { %1266 = vmatprep.subr.bf16.mxu1 %v1385_v1 }
  0x41   : > { %1247 = vmatpush3.bf16.msra.mxu0 %v1348_v32  ;;  %v1375_v32 = vld [vmem:[%s1664_s3 + $0x88] sm:$0xff]  }
  0x42   : > { %1248 = vmatprep.subr.bf16.mxu0 %v1385_v1 }
  0x43   : > { %1267 = vmatpush3.bf16.msra.mxu1 %v1363_v51 }
  0x44   : > { %1268 = vmatprep.subr.bf16.mxu1 %v1385_v1 }
  0x45   : > { %1249 = vmatpush3.bf16.msra.mxu0 %v1349_v35 }
  0x46   : > { %1250 = vmatprep.subr.bf16.mxu0 %v1385_v1 }
  0x47   : > { %1269 = vmatpush3.bf16.msra.mxu1 %v1365_v53 }
  0x48   : > { %1270 = vmatprep.subr.bf16.mxu1 %v1385_v1 }
  0x49   : > { %1251 = vmatpush3.bf16.msra.mxu0 %v1350_v37 }
  0x4a   : > { %1276 = vmatprep.subr.bf16.mxu0 %v1385_v1 }
  0x4b   : > { %1271 = vmatpush3.bf16.msra.mxu1 %v1368_v54 }
  0x4c   : > { %1253 = vmatmul.mubr.bf16.vlgmr.msra.gmra.mxu0 %v472_v38  ;;  %1296 = vmatprep.subr.bf16.mxu1 %v1385_v1 }
  0x4d   : > { %1292 = vmatprep.mubr.msk.bf16.mxu0 %vm1386_vm0, %v1385_v1  ;;  %1277 = vmatpush3.bf16.msra.mxu0 %v1351_v39 }
  0x4e   : > { %1278 = vmatprep.subr.bf16.mxu0 %v1385_v1 }
  0x51   : > { %1279 = vmatpush3.bf16.msra.mxu0 %v1352_v40 }
  0x52   : > { %1280 = vmatprep.subr.bf16.mxu0 %v1385_v1 }
  0x55   : > { %1281 = vmatpush3.bf16.msra.mxu0 %v1354_v42 }
  0x56   : > { %1282 = vmatprep.subr.bf16.mxu0 %v1385_v1 }
  0x59   : > { %1283 = vmatpush3.bf16.msra.mxu0 %v1356_v44 }
  0x5a   : > { %1284 = vmatprep.subr.bf16.mxu0 %v1385_v1 }
  0x5d   : > { %1285 = vmatpush3.bf16.msra.mxu0 %v1358_v46  ;;  %v945_v46 = vld [vmem:[%s1470_s14 + $0x4] sm:$0x1] }
  0x5e   : > { %1286 = vmatprep.subr.bf16.mxu0 %v1385_v1 }
  0x61   : > { %1287 = vmatpush3.bf16.msra.mxu0 %v1360_v48  ;;  %v947_v48 = vunpack.c.l.bf16 %v945_v46 }
  0x62   : > { %1288 = vmatprep.subr.bf16.mxu0 %v1385_v1 }
  0x65   : > { %1289 = vmatpush3.bf16.msra.mxu0 %v1362_v50  ;;  %v952_v50 = vrot.slane %v947_v48, 1 }
  0x66   : > { %1290 = vmatprep.subr.bf16.mxu0 %v1385_v1 }
  0x67   : > { %v953_v54 = vsel %vm950_vm7, %v951_v49, %v952_v50 }
  0x69   : > { %1291 = vmatpush3.bf16.msra.mxu0 %v1364_v52  ;;  %v1137_v52 = vld [vmem:[%s1665_s4] ss:$0 sm:$0xff] }
  0xec   : > { %v356_v55 = vpop.f32.mrf.mxu0 }
  0xed   : > { %v444_v56 = vpop.f32.mrf.mxu1 }
  0xee   : > { %v1214_v57 = vpop.f32.mrf.mxu0  ;;  %v445_v63 = vadd.f32 %v444_v56, %v356_v55 }
  0xef   : > { %v1234_v58 = vpop.f32.mrf.mxu1 }
  0xf0   : > { %v359_v59 = vpop.f32.mrf.mxu0 }
  0xf1   : > { %v447_v60 = vpop.f32.mrf.mxu1 }
  0xf2   : > { %v1215_v61 = vpop.f32.mrf.mxu0 }
  0xf3   : > { %v1235_v62 = vpop.f32.mrf.mxu1 }
 0x10c   : > { %v556_v0 = vpop.f32.mrf.mxu0 }
 0x10d   : > { %v562_v3 = vadd.f32 %v556_v0, %v445_v63 }
 0x10e   : > { %v1254_v4 = vpop.f32.mrf.mxu0 }
 0x10f   : > { %v570_v5 = vadd.f32 %v1077_v2, %v562_v3 }
 0x110   : > { %v559_v6 = vpop.f32.mrf.mxu0 }
 0x111   : > { %v571_v7 = vmax.f32 %v570_v5, 0.0 }
 0x112   : > { %v1255_v8 = vpop.f32.mrf.mxu0 }
 0x113   : > { %v1141_v9 = vpack.c.bf16 %v571_v7, %v571_v7 }
 0x115   : > { %v579_v10 = vshrl.u32 %v1141_v9, 16  ;;  %v582_v12 = vshll.u32 %v1141_v9, 16 }
 0x117   : > { %v581_v11 = vrot.slane %v579_v10, 7 }
 0x119   : > { %v584_v15 = vor.u32 %v582_v12, %v581_v11  ;;  %v585_v16 = vrot.slane %v581_v11, 4 }
 0x11b   : > { %v592_v17 = vsel %vm590_vm5, %v584_v15, %v591_v13  ;;  %v598_v18 = vsel %vm596_vm6, %v585_v16, %v597_v14 }
 0x11c   : > { %593 = vst [vmem:[#allocation2] sm:$0xf] %v592_v17  ;;  %599 = vst [vmem:[#allocation2 + $0x4] sm:$0x1] %v598_v18 }
 0x123   : > { %v600_v19 = vld [vmem:[#allocation2] sm:$0xf]  ;;  %v617_v20 = vld [vmem:[#allocation2 + $0x4] sm:$0x1] }
 0x124   : > { %v1095_v21 = vcombine.low %v600_v19, %v617_v20  ;;  %1293 = vmatmul.mubr.bf16.vlgmr.msra.gmra.mxu0 %v600_v19  ;;  %v824_v33 = vld [vmem:[#allocation2] sm:$0xe] }
 0x125   : > { %v1128_v35 = vcombine.low %v824_v33, %v617_v20 }
 0x126   : > { %v643_v22 = vshll.u32 %v1095_v21, 16  ;;  %v641_v23 = vshrl.u32 %v1095_v21, 16 }
 0x127   : > { %v845_v36 = vrot.slane %v1128_v35, 1 }
 0x128   : > { %v645_v24 = vrot.slane %v643_v22, 1 }
 0x12a   : > { %v646_v26 = vor.u32 %v645_v24, %v641_v23 }
 0x12c   : > { %1273 = vmatmul.mubr.bf16.vlgmr.msra.gmra.mxu1 %v646_v26 }
 0x12d   : > { %1297 = vmatpush3.bf16.msra.mxu1 %v1369_v25  ;;  %1312 = vmatprep.mubr.msk.bf16.mxu1 %vm1386_vm0, %v1385_v1 }
 0x12e   : > { %1298 = vmatprep.subr.bf16.mxu1 %v1385_v1 }
 0x131   : > { %1299 = vmatpush3.bf16.msra.mxu1 %v1370_v27 }
 0x132   : > { %1300 = vmatprep.subr.bf16.mxu1 %v1385_v1 }
 0x135   : > { %1301 = vmatpush3.bf16.msra.mxu1 %v1371_v28 }
 0x136   : > { %1302 = vmatprep.subr.bf16.mxu1 %v1385_v1 }
 0x139   : > { %1303 = vmatpush3.bf16.msra.mxu1 %v1372_v29 }
 0x13a   : > { %1304 = vmatprep.subr.bf16.mxu1 %v1385_v1 }
 0x13d   : > { %1305 = vmatpush3.bf16.msra.mxu1 %v1373_v30 }
 0x13e   : > { %1306 = vmatprep.subr.bf16.mxu1 %v1385_v1 }
 0x141   : > { %1307 = vmatpush3.bf16.msra.mxu1 %v1374_v31 }
 0x142   : > { %1308 = vmatprep.subr.bf16.mxu1 %v1385_v1 }
 0x145   : > { %1309 = vmatpush3.bf16.msra.mxu1 %v1375_v32 }
 0x146   : > { %1310 = vmatprep.subr.bf16.mxu1 %v1385_v1 }
 0x149   : > { %1311 = vmatpush3.bf16.msra.mxu1 %v1376_v34 }
 0x14c   : > { %1313 = vmatmul.mubr.bf16.vlgmr.msra.gmra.mxu1 %v845_v36 }
 0x1e4   : > { %v818_v37 = vpop.f32.mrf.mxu0 }
 0x1e6   : > { %v1294_v38 = vpop.f32.mrf.mxu0 }
 0x1e8   : > { %v821_v39 = vpop.f32.mrf.mxu0 }
 0x1ea   : > { %v1295_v40 = vpop.f32.mrf.mxu0 }
 0x1ec   : > { %v730_v41 = vpop.f32.mrf.mxu1 }
 0x1ed   : > { %v819_v51 = vadd.f32 %v818_v37, %v730_v41 }
 0x1ee   : > { %v1274_v42 = vpop.f32.mrf.mxu1 }
 0x1f0   : > { %v733_v43 = vpop.f32.mrf.mxu1 }
 0x1f2   : > { %v1275_v44 = vpop.f32.mrf.mxu1 }
 0x20c   : > { %v929_v1 = vpop.f32.mrf.mxu1 }
 0x20d   : > { %v935_v53 = vadd.f32 %v929_v1, %v819_v51 }
 0x20e   : > { %v1314_v55 = vpop.f32.mrf.mxu1 }
 0x20f   : > { %v943_v56 = vadd.f32 %v1137_v52, %v935_v53 }
 0x210   : > { %v932_v57 = vpop.f32.mrf.mxu1 }
 0x211   : > { %v955_v58 = vadd.f32 %v953_v54, %v943_v56 }
 0x212   : > { %v1315_v59 = vpop.f32.mrf.mxu1 }
 0x213   : > { %v956_v60 = vpack.c.bf16 %v955_v58, %v955_v58 }
 0x215   : > { %957 = vst [vmem:[%s222_s12] sm:$0xf] %v956_v60 }
 0x216 PF: > { %s15_s18 = sadd.s32 1, %s1383_s18  }
 0x217   : > { %p12_p4 = scmp.ge.s32.totalorder %s15_s18, 4  }
 0x219   :  { %14 = sbr.rel (!%p12_p4) target bundleno = 1 (0x1), region = 74 }

// kernel: critic_cnn_forward.16
= control target key start
LH: loop header
LB: loop body
LE: loop exit
PB: predicated region body
PF: predicated region fallthrough
CT: control target
= control target key end

     0   :  { %s785_s12 = smov 0   ;;  %s916_s0 = inlined_call_operand.vmem [shape: bf16[2,6,128], index: 0, kind: input, shape index: {}]   ;;  %s917_s1 = inlined_call_operand.vmem [shape: bf16[3,128,128], index: 1, kind: input, shape index: {}]   ;;  %s918_s2 = inlined_call_operand.vmem [shape: f32[1,128], index: 2, kind: input, shape index: {}]   ;;  %s919_s3 = inlined_call_operand.vmem [shape: bf16[2,4,128], index: 3, kind: output, shape index: {}]  }
   0x1 LB: > { %s564_s13 = sadd.s32 4294967295, %s761_s12   ;;  %p568_p0 = scmp.ge.s32.totalorder %s761_s12, 1  ;;  %s761_s12 = sphi %s785_s12, %s13_s12  }
   0x2   : > { %p136_p1 = scmp.lt.s32.totalorder %s761_s12, 3 }
   0x4   : > { %p137_p2 = pnand %p568_p0, %p136_p1 }
   0x5   : > { %p158_p3 = scmp.lt.s32.totalorder (!%p137_p2), %s564_s13, 1 }
   0x6   : > { %140 = sbr.rel (%p137_p2) target bundleno = 276 (0x114), region = 32 }
   0xb   : > { %v729_v0 = vld [vmem:[%s917_s1 + $0x78] sm:$0xff]   ;;  %v763_v1 = vmov 0.0   ;;  %v731_v3 = vld [vmem:[%s917_s1 + $0x70] sm:$0xff]   ;;  %vm764_vm0 = vmmov 0   ;;  %v733_v5 = vld [vmem:[%s917_s1 + $0x68] sm:$0xff]   ;;  %s921_s13 = smov (!%p158_p3, %s564_s13), 1 }
   0xc   : > { %659 = vmatprep.subr.bf16.mxu0 %v763_v1  ;;  %679 = vmatprep.subr.bf16.mxu1 %v763_v1  ;;  %v730_v2 = vld [vmem:[%s917_s1 + $0x38] sm:$0xff]   ;;  %v732_v4 = vld [vmem:[%s917_s1 + $0x30] sm:$0xff]   ;;  %v734_v6 = vld [vmem:[%s917_s1 + $0x28] sm:$0xff]   ;;  %s569_s28 = sshll.u32 %s921_s13, 2  ;;  %s570_s18 = sshll.u32 %s921_s13, 1 }
   0xd   : > { %660 = vmatpush3.bf16.msra.mxu0 %v729_v0  ;;  %675 = vmatprep.mubr.msk.bf16.mxu0 %vm764_vm0, %v763_v1  ;;  %v735_v7 = vld [vmem:[%s917_s1 + $0x60] sm:$0xff]   ;;  %s835_s6 = scalar_lea.vmem %s916_s0, %s569_s28  ;;  %v737_v9 = vld [vmem:[%s917_s1 + $0x58] sm:$0xff]   ;;  %v739_v12 = vld [vmem:[%s917_s1 + $0x50] sm:$0xff]   ;;  %s165_s21 = scalar_lea.vmem %s919_s3, %s570_s18 }
   0xe   : > { %680 = vmatpush3.bf16.msra.mxu1 %v730_v2  ;;  %661 = vmatprep.subr.bf16.mxu0 %v763_v1  ;;  %v736_v8 = vld [vmem:[%s917_s1 + $0x20] sm:$0xff]   ;;  %v738_v10 = vld [vmem:[%s917_s1 + $0x18] sm:$0xff]   ;;  %v740_v13 = vld [vmem:[%s917_s1 + $0x10] sm:$0xff]  }
   0xf   : > { %681 = vmatprep.subr.bf16.mxu1 %v763_v1  ;;  %695 = vmatprep.mubr.msk.bf16.mxu1 %vm764_vm0, %v763_v1  ;;  %v745_v11 = vld [vmem:[%s835_s6] ss:$0 sps:$4 sm:$0x77]   ;;  %v741_v15 = vld [vmem:[%s917_s1 + $0x48] sm:$0xff]   ;;  %v746_v22 = vld [vmem:[%s917_s1 + $0xb8] sm:$0xff]  }
  0x10   : > { %v208_v14 = vshll.u32 %v745_v11, 16  ;;  %v742_v16 = vld [vmem:[%s917_s1 + $0x8] sm:$0xff]   ;;  %v206_v17 = vshrl.u32 %v745_v11, 16  ;;  %v743_v19 = vld [vmem:[%s917_s1 + $0x40] sm:$0xff]   ;;  %v747_v24 = vld [vmem:[%s917_s1 + $0xb0] sm:$0xff]  }
  0x11   : > { %662 = vmatpush3.bf16.msra.mxu0 %v731_v3  ;;  %v744_v20 = vld [vmem:[%s917_s1] sm:$0xff]   ;;  %v748_v25 = vld [vmem:[%s917_s1 + $0xa8] sm:$0xff]   ;;  %v750_v27 = vld [vmem:[%s917_s1 + $0x98] sm:$0xff]  }
  0x12   : > { %682 = vmatpush3.bf16.msra.mxu1 %v732_v4  ;;  %663 = vmatprep.subr.bf16.mxu0 %v763_v1  ;;  %v210_v18 = vrot.slane %v208_v14, 1  ;;  %v167_v23 = vld [vmem:[%s835_s6] sm:$0x3]  ;;  %v751_v28 = vld [vmem:[%s917_s1 + $0x90] sm:$0xff]   ;;  %v752_v29 = vld [vmem:[%s917_s1 + $0x88] sm:$0xff]  }
  0x13   : > { %683 = vmatprep.subr.bf16.mxu1 %v763_v1  ;;  %v749_v26 = vld [vmem:[%s917_s1 + $0xa0] sm:$0xff]  }
  0x14   : > { %v211_v21 = vor.u32 %v210_v18, %v206_v17  ;;  %v754_v30 = vld [vmem:[%s835_s6] ss:$0 sps:$4 sm:$0x66]  }
  0x15   : > { %664 = vmatpush3.bf16.msra.mxu0 %v733_v5  ;;  %v753_v31 = vld [vmem:[%s917_s1 + $0x80] sm:$0xff]   ;;  %v410_v32 = vrot.slane %v754_v30, 1 }
  0x16   : > { %684 = vmatpush3.bf16.msra.mxu1 %v734_v6  ;;  %665 = vmatprep.subr.bf16.mxu0 %v763_v1  ;;  %v629_v43 = vld [vmem:[%s918_s2] ss:$0 sm:$0xff] }
  0x17   : > { %685 = vmatprep.subr.bf16.mxu1 %v763_v1 }
  0x19   : > { %666 = vmatpush3.bf16.msra.mxu0 %v735_v7 }
  0x1a   : > { %686 = vmatpush3.bf16.msra.mxu1 %v736_v8  ;;  %667 = vmatprep.subr.bf16.mxu0 %v763_v1 }
  0x1b   : > { %687 = vmatprep.subr.bf16.mxu1 %v763_v1 }
  0x1d   : > { %668 = vmatpush3.bf16.msra.mxu0 %v737_v9 }
  0x1e   : > { %688 = vmatpush3.bf16.msra.mxu1 %v738_v10  ;;  %669 = vmatprep.subr.bf16.mxu0 %v763_v1 }
  0x1f   : > { %689 = vmatprep.subr.bf16.mxu1 %v763_v1 }
  0x21   : > { %670 = vmatpush3.bf16.msra.mxu0 %v739_v12 }
  0x22   : > { %690 = vmatpush3.bf16.msra.mxu1 %v740_v13  ;;  %671 = vmatprep.subr.bf16.mxu0 %v763_v1 }
  0x23   : > { %691 = vmatprep.subr.bf16.mxu1 %v763_v1 }
  0x25   : > { %672 = vmatpush3.bf16.msra.mxu0 %v741_v15 }
  0x26   : > { %692 = vmatpush3.bf16.msra.mxu1 %v742_v16  ;;  %673 = vmatprep.subr.bf16.mxu0 %v763_v1 }
  0x27   : > { %693 = vmatprep.subr.bf16.mxu1 %v763_v1 }
  0x29   : > { %674 = vmatpush3.bf16.msra.mxu0 %v743_v19 }
  0x2a   : > { %694 = vmatpush3.bf16.msra.mxu1 %v744_v20  ;;  %699 = vmatprep.subr.bf16.mxu0 %v763_v1 }
  0x2c   : > { %676 = vmatmul.mubr.bf16.vlgmr.msra.gmra.mxu0 %v211_v21 }
  0x2d   : > { %696 = vmatmul.mubr.bf16.vlgmr.msra.gmra.mxu1 %v167_v23  ;;  %700 = vmatpush3.bf16.msra.mxu0 %v746_v22 }
  0x2e   : > { %701 = vmatprep.subr.bf16.mxu0 %v763_v1  ;;  %715 = vmatprep.mubr.msk.bf16.mxu0 %vm764_vm0, %v763_v1 }
  0x31   : > { %702 = vmatpush3.bf16.msra.mxu0 %v747_v24 }
  0x32   : > { %703 = vmatprep.subr.bf16.mxu0 %v763_v1 }
  0x35   : > { %704 = vmatpush3.bf16.msra.mxu0 %v748_v25 }
  0x36   : > { %705 = vmatprep.subr.bf16.mxu0 %v763_v1 }
  0x39   : > { %706 = vmatpush3.bf16.msra.mxu0 %v749_v26 }
  0x3a   : > { %707 = vmatprep.subr.bf16.mxu0 %v763_v1 }
  0x3d   : > { %708 = vmatpush3.bf16.msra.mxu0 %v750_v27 }
  0x3e   : > { %709 = vmatprep.subr.bf16.mxu0 %v763_v1 }
  0x41   : > { %710 = vmatpush3.bf16.msra.mxu0 %v751_v28 }
  0x42   : > { %711 = vmatprep.subr.bf16.mxu0 %v763_v1 }
  0x45   : > { %712 = vmatpush3.bf16.msra.mxu0 %v752_v29 }
  0x46   : > { %713 = vmatprep.subr.bf16.mxu0 %v763_v1 }
  0x49   : > { %714 = vmatpush3.bf16.msra.mxu0 %v753_v31 }
  0x4c   : > { %716 = vmatmul.mubr.bf16.vlgmr.msra.gmra.mxu0 %v410_v32 }
  0xec   : > { %v295_v33 = vpop.f32.mrf.mxu0 }
  0xed   : > { %v383_v34 = vpop.f32.mrf.mxu1 }
  0xee   : > { %v677_v35 = vpop.f32.mrf.mxu0  ;;  %v384_v41 = vadd.f32 %v383_v34, %v295_v33 }
  0xef   : > { %v697_v36 = vpop.f32.mrf.mxu1 }
  0xf0   : > { %v298_v37 = vpop.f32.mrf.mxu0 }
  0xf1   : > { %v386_v38 = vpop.f32.mrf.mxu1 }
  0xf2   : > { %v678_v39 = vpop.f32.mrf.mxu0 }
  0xf3   : > { %v698_v40 = vpop.f32.mrf.mxu1 }
 0x10c   : > { %v494_v42 = vpop.f32.mrf.mxu0 }
 0x10d   : > { %v500_v44 = vadd.f32 %v494_v42, %v384_v41 }
 0x10e   : > { %v717_v45 = vpop.f32.mrf.mxu0 }
 0x10f   : > { %v508_v46 = vadd.f32 %v629_v43, %v500_v44 }
 0x110   : > { %v497_v47 = vpop.f32.mrf.mxu0 }
 0x111   : > { %v509_v48 = vpack.c.bf16 %v508_v46, %v508_v46 }
 0x112   : > { %v718_v49 = vpop.f32.mrf.mxu0 }
 0x113   : > { %510 = vst [vmem:[%s165_s21] sm:$0x3] %v509_v48 }
 0x114 PF: > { %s13_s12 = sadd.s32 1, %s761_s12  }
 0x115   : > { %p10_p4 = scmp.ge.s32.totalorder %s13_s12, 4  }
 0x117   :  { %12 = sbr.rel (!%p10_p4) target bundleno = 1 (0x1), region = 64 }

// kernel: critic_cnn_forward.14
= control target key start
LH: loop header
LB: loop body
LE: loop exit
PB: predicated region body
PF: predicated region fallthrough
CT: control target
= control target key end

     0   :  { %s1394_s18 = smov 0   ;;  %s1635_s0 = inlined_call_operand.vmem [shape: bf16[2,6,128], index: 0, kind: input, shape index: {}]   ;;  %s1636_s1 = inlined_call_operand.vmem [shape: bf16[3,128,128], index: 1, kind: input, shape index: {}]   ;;  %s1637_s2 = inlined_call_operand.vmem [shape: f32[1,128], index: 2, kind: input, shape index: {}]   ;;  %s1638_s3 = inlined_call_operand.vmem [shape: bf16[3,128,128], index: 3, kind: input, shape index: {}]   ;;  %s1639_s4 = inlined_call_operand.vmem [shape: f32[1,128], index: 4, kind: input, shape index: {}]   ;;  %s1640_s5 = inlined_call_operand.vmem [shape: bf16[2,4,128], index: 5, kind: output, shape index: {}]  }
   0x1 LB: > { %s989_s19 = sadd.s32 4294967295, %s1359_s18   ;;  %p993_p0 = scmp.ge.s32.totalorder %s1359_s18, 1  ;;  %s1359_s18 = sphi %s1394_s18, %s15_s18  }
   0x2   : > { %p186_p1 = scmp.lt.s32.totalorder %s1359_s18, 3 }
   0x4   : > { %p187_p2 = pnand %p993_p0, %p186_p1 }
   0x5   : > { %p212_p3 = scmp.lt.s32.totalorder (!%p187_p2), %s989_s19, 1 }
   0x6   : > { %190 = sbr.rel (%p187_p2) target bundleno = 533 (0x215), region = 40 }
   0xb   : > { %v1303_v0 = vld [vmem:[%s1636_s1 + $0x78] sm:$0xff]   ;;  %v1361_v1 = vmov 0.0   ;;  %v1305_v3 = vld [vmem:[%s1636_s1 + $0x70] sm:$0xff]   ;;  %vm1362_vm0 = vmmov 0   ;;  %v1363_v5 = vmov 0   ;;  %v1307_v6 = vld [vmem:[%s1636_s1 + $0x68] sm:$0xff]  }
   0xc   : > { %1172 = vmatprep.subr.bf16.mxu0 %v1361_v1  ;;  %1192 = vmatprep.subr.bf16.mxu1 %v1361_v1  ;;  %v1304_v2 = vld [vmem:[%s1636_s1 + $0x38] sm:$0xff]   ;;  %v1306_v4 = vld [vmem:[%s1636_s1 + $0x30] sm:$0xff]   ;;  %567 = vst [vmem:[#allocation2] sm:$0x7] %v1363_v5  ;;  %s1642_s19 = smov (!%p212_p3, %s989_s19), 1  ;;  %v1308_v7 = vld [vmem:[%s1636_s1 + $0x28] sm:$0xff]  }
   0xd   : > { %1173 = vmatpush3.bf16.msra.mxu0 %v1303_v0  ;;  %1188 = vmatprep.mubr.msk.bf16.mxu0 %vm1362_vm0, %v1361_v1  ;;  %v1309_v8 = vld [vmem:[%s1636_s1 + $0x60] sm:$0xff]   ;;  %s994_s9 = sshll.u32 %s1642_s19, 2  ;;  %v1311_v10 = vld [vmem:[%s1636_s1 + $0x58] sm:$0xff]   ;;  %v1313_v14 = vld [vmem:[%s1636_s1 + $0x50] sm:$0xff]   ;;  %vm580_vm1 = vcmask 1042432   ;;  %s995_s10 = sshll.u32 %s1642_s19, 1 }
   0xe   : > { %1193 = vmatpush3.bf16.msra.mxu1 %v1304_v2  ;;  %1174 = vmatprep.subr.bf16.mxu0 %v1361_v1  ;;  %v1310_v9 = vld [vmem:[%s1636_s1 + $0x20] sm:$0xff]   ;;  %s1445_s14 = scalar_lea.vmem %s1635_s0, %s994_s9  ;;  %v1312_v11 = vld [vmem:[%s1636_s1 + $0x18] sm:$0xff]   ;;  %v1314_v15 = vld [vmem:[%s1636_s1 + $0x10] sm:$0xff]   ;;  %vm581_vm2 = vsmask.f32 2306  ;;  %s219_s13 = scalar_lea.vmem %s1640_s5, %s995_s10 }
   0xf   : > { %1194 = vmatprep.subr.bf16.mxu1 %v1361_v1  ;;  %1208 = vmatprep.mubr.msk.bf16.mxu1 %vm1362_vm0, %v1361_v1  ;;  %v239_v12 = vld [vmem:[%s1445_s14] sm:$0x7]  ;;  %v1315_v17 = vld [vmem:[%s1636_s1 + $0x48] sm:$0xff]   ;;  %v1319_v26 = vld [vmem:[%s1636_s1 + $0xb8] sm:$0xff]  }
  0x10   : > { %v240_v13 = vmax.bf16 %v1363_v5, %v239_v12  ;;  %v1316_v19 = vld [vmem:[%s1636_s1 + $0x8] sm:$0xff]   ;;  %v1317_v20 = vld [vmem:[%s1636_s1 + $0x40] sm:$0xff]   ;;  %v1320_v28 = vld [vmem:[%s1636_s1 + $0xb0] sm:$0xff]  }
  0x11   : > { %1175 = vmatpush3.bf16.msra.mxu0 %v1305_v3  ;;  %v1318_v23 = vld [vmem:[%s1636_s1] sm:$0xff]   ;;  %v1321_v29 = vld [vmem:[%s1636_s1 + $0xa8] sm:$0xff]   ;;  %v1323_v31 = vld [vmem:[%s1636_s1 + $0x98] sm:$0xff]  }
  0x12   : > { %1195 = vmatpush3.bf16.msra.mxu1 %v1306_v4  ;;  %1176 = vmatprep.subr.bf16.mxu0 %v1361_v1  ;;  %v1012_v16 = vcombine.low %v240_v13, %v240_v13  ;;  %v221_v24 = vld [vmem:[%s1445_s14] sm:$0x3]  ;;  %v1324_v32 = vld [vmem:[%s1636_s1 + $0x90] sm:$0xff]   ;;  %v1325_v35 = vld [vmem:[%s1636_s1 + $0x88] sm:$0xff]  }
  0x13   : > { %1196 = vmatprep.subr.bf16.mxu1 %v1361_v1  ;;  %v222_v27 = vmax.bf16 %v1363_v5, %v221_v24  ;;  %v1322_v30 = vld [vmem:[%s1636_s1 + $0xa0] sm:$0xff]   ;;  %v1327_v39 = vld [vmem:[%s1638_s3 + $0x38] sm:$0xff]   ;;  %v1328_v40 = vld [vmem:[%s1638_s3 + $0x30] sm:$0xff]  }
  0x14   : > { %v264_v18 = vshll.u32 %v1012_v16, 16  ;;  %v262_v21 = vshrl.u32 %v1012_v16, 16  ;;  %v445_v33 = vld [vmem:[%s1445_s14] sm:$0x6]  ;;  %v1329_v41 = vld [vmem:[%s1638_s3 + $0x78] sm:$0xff]   ;;  %v1330_v42 = vld [vmem:[%s1638_s3 + $0x28] sm:$0xff]  }
  0x15   : > { %1177 = vmatpush3.bf16.msra.mxu0 %v1307_v6  ;;  %v446_v34 = vmax.bf16 %v1363_v5, %v445_v33  ;;  %v1326_v37 = vld [vmem:[%s1636_s1 + $0x80] sm:$0xff]   ;;  %v1331_v43 = vld [vmem:[%s1638_s3 + $0x70] sm:$0xff]   ;;  %v1333_v45 = vld [vmem:[%s1638_s3 + $0x68] sm:$0xff]  }
  0x16   : > { %1197 = vmatpush3.bf16.msra.mxu1 %v1308_v7  ;;  %1178 = vmatprep.subr.bf16.mxu0 %v1361_v1  ;;  %v266_v22 = vrot.slane %v264_v18, 1  ;;  %v1332_v44 = vld [vmem:[%s1638_s3 + $0x20] sm:$0xff]   ;;  %v1334_v46 = vld [vmem:[%s1638_s3 + $0x18] sm:$0xff]   ;;  %v1336_v48 = vld [vmem:[%s1638_s3 + $0x10] sm:$0xff]  }
  0x17   : > { %1198 = vmatprep.subr.bf16.mxu1 %v1361_v1  ;;  %v1045_v36 = vcombine.low %v446_v34, %v446_v34  ;;  %v1335_v47 = vld [vmem:[%s1638_s3 + $0x60] sm:$0xff]   ;;  %v1337_v49 = vld [vmem:[%s1638_s3 + $0x58] sm:$0xff]   ;;  %v1338_v50 = vld [vmem:[%s1638_s3 + $0x8] sm:$0xff]  }
  0x18   : > { %v267_v25 = vor.u32 %v266_v22, %v262_v21  ;;  %v1339_v51 = vld [vmem:[%s1638_s3 + $0x50] sm:$0xff]   ;;  %v1340_v52 = vld [vmem:[%s1638_s3] sm:$0xff]   ;;  %v1341_v53 = vld [vmem:[%s1638_s3 + $0x48] sm:$0xff]  }
  0x19   : > { %1179 = vmatpush3.bf16.msra.mxu0 %v1309_v8  ;;  %v467_v38 = vrot.slane %v1045_v36, 1  ;;  %v1342_v54 = vld [vmem:[%s1638_s3 + $0x40] sm:$0xff]   ;;  %vm582_vm3 = vmand %vm580_vm1, %vm581_vm2  ;;  %v1344_v21 = vld [vmem:[%s1638_s3 + $0xb8] sm:$0xff]  }
  0x1a   : > { %1199 = vmatpush3.bf16.msra.mxu1 %v1310_v9  ;;  %1180 = vmatprep.subr.bf16.mxu0 %v1361_v1  ;;  %v1054_v2 = vld [vmem:[%s1637_s2] ss:$0 sm:$0xff]  ;;  %v1346_v24 = vld [vmem:[%s1638_s3 + $0xa8] sm:$0xff]  }
  0x1b   : > { %1200 = vmatprep.subr.bf16.mxu1 %v1361_v1  ;;  %v583_v13 = vld [vmem:[#allocation2] sm:$0x7] }
  0x1d   : > { %1181 = vmatpush3.bf16.msra.mxu0 %v1311_v10 }
  0x1e   : > { %1201 = vmatpush3.bf16.msra.mxu1 %v1312_v11  ;;  %1182 = vmatprep.subr.bf16.mxu0 %v1361_v1 }
  0x1f   : > { %1202 = vmatprep.subr.bf16.mxu1 %v1361_v1 }
  0x21   : > { %1183 = vmatpush3.bf16.msra.mxu0 %v1313_v14 }
  0x22   : > { %1203 = vmatpush3.bf16.msra.mxu1 %v1314_v15  ;;  %1184 = vmatprep.subr.bf16.mxu0 %v1361_v1 }
  0x23   : > { %1204 = vmatprep.subr.bf16.mxu1 %v1361_v1 }
  0x25   : > { %1185 = vmatpush3.bf16.msra.mxu0 %v1315_v17 }
  0x26   : > { %1205 = vmatpush3.bf16.msra.mxu1 %v1316_v19  ;;  %1186 = vmatprep.subr.bf16.mxu0 %v1361_v1 }
  0x27   : > { %1206 = vmatprep.subr.bf16.mxu1 %v1361_v1 }
  0x29   : > { %1187 = vmatpush3.bf16.msra.mxu0 %v1317_v20 }
  0x2a   : > { %1207 = vmatpush3.bf16.msra.mxu1 %v1318_v23  ;;  %1212 = vmatprep.subr.bf16.mxu0 %v1361_v1  ;;  %v1345_v23 = vld [vmem:[%s1638_s3 + $0xb0] sm:$0xff]  }
  0x2b   : > { %1232 = vmatprep.subr.bf16.mxu1 %v1361_v1 }
  0x2c   : > { %1189 = vmatmul.mubr.bf16.vlgmr.msra.gmra.mxu0 %v267_v25  ;;  %v1347_v25 = vld [vmem:[%s1638_s3 + $0xa0] sm:$0xff]  }
  0x2d   : > { %1209 = vmatmul.mubr.bf16.vlgmr.msra.gmra.mxu1 %v222_v27  ;;  %1213 = vmatpush3.bf16.msra.mxu0 %v1319_v26  ;;  %v1348_v26 = vld [vmem:[%s1638_s3 + $0x98] sm:$0xff]   ;;  %v1349_v27 = vld [vmem:[%s1638_s3 + $0x90] sm:$0xff]  }
  0x2e   : > { %1214 = vmatprep.subr.bf16.mxu0 %v1361_v1  ;;  %1228 = vmatprep.mubr.msk.bf16.mxu0 %vm1362_vm0, %v1361_v1 }
  0x2f   : > { %1248 = vmatprep.mubr.msk.bf16.mxu1 %vm1362_vm0, %v1361_v1  ;;  %1233 = vmatpush3.bf16.msra.mxu1 %v1329_v41 }
  0x30   : > { %1234 = vmatprep.subr.bf16.mxu1 %v1361_v1 }
  0x31   : > { %1215 = vmatpush3.bf16.msra.mxu0 %v1320_v28  ;;  %v1350_v28 = vld [vmem:[%s1638_s3 + $0x88] sm:$0xff]  }
  0x32   : > { %1216 = vmatprep.subr.bf16.mxu0 %v1361_v1 }
  0x33   : > { %1235 = vmatpush3.bf16.msra.mxu1 %v1331_v43 }
  0x34   : > { %1236 = vmatprep.subr.bf16.mxu1 %v1361_v1 }
  0x35   : > { %1217 = vmatpush3.bf16.msra.mxu0 %v1321_v29  ;;  %v1351_v29 = vld [vmem:[%s1638_s3 + $0x80] sm:$0xff]  }
  0x36   : > { %1218 = vmatprep.subr.bf16.mxu0 %v1361_v1 }
  0x37   : > { %1237 = vmatpush3.bf16.msra.mxu1 %v1333_v45 }
  0x38   : > { %1238 = vmatprep.subr.bf16.mxu1 %v1361_v1 }
  0x39   : > { %1219 = vmatpush3.bf16.msra.mxu0 %v1322_v30 }
  0x3a   : > { %1220 = vmatprep.subr.bf16.mxu0 %v1361_v1 }
  0x3b   : > { %1239 = vmatpush3.bf16.msra.mxu1 %v1335_v47 }
  0x3c   : > { %1240 = vmatprep.subr.bf16.mxu1 %v1361_v1 }
  0x3d   : > { %1221 = vmatpush3.bf16.msra.mxu0 %v1323_v31 }
  0x3e   : > { %1222 = vmatprep.subr.bf16.mxu0 %v1361_v1 }
  0x3f   : > { %1241 = vmatpush3.bf16.msra.mxu1 %v1337_v49 }
  0x40   : > { %1242 = vmatprep.subr.bf16.mxu1 %v1361_v1 }
  0x41   : > { %1223 = vmatpush3.bf16.msra.mxu0 %v1324_v32 }
  0x42   : > { %1224 = vmatprep.subr.bf16.mxu0 %v1361_v1 }
  0x43   : > { %1243 = vmatpush3.bf16.msra.mxu1 %v1339_v51 }
  0x44   : > { %1244 = vmatprep.subr.bf16.mxu1 %v1361_v1 }
  0x45   : > { %1225 = vmatpush3.bf16.msra.mxu0 %v1325_v35 }
  0x46   : > { %1226 = vmatprep.subr.bf16.mxu0 %v1361_v1 }
  0x47   : > { %1245 = vmatpush3.bf16.msra.mxu1 %v1341_v53 }
  0x48   : > { %1246 = vmatprep.subr.bf16.mxu1 %v1361_v1 }
  0x49   : > { %1227 = vmatpush3.bf16.msra.mxu0 %v1326_v37 }
  0x4a   : > { %1252 = vmatprep.subr.bf16.mxu0 %v1361_v1 }
  0x4b   : > { %1247 = vmatpush3.bf16.msra.mxu1 %v1342_v54 }
  0x4c   : > { %1229 = vmatmul.mubr.bf16.vlgmr.msra.gmra.mxu0 %v467_v38  ;;  %1272 = vmatprep.subr.bf16.mxu1 %v1361_v1 }
  0x4d   : > { %1268 = vmatprep.mubr.msk.bf16.mxu0 %vm1362_vm0, %v1361_v1  ;;  %1253 = vmatpush3.bf16.msra.mxu0 %v1327_v39 }
  0x4e   : > { %1254 = vmatprep.subr.bf16.mxu0 %v1361_v1 }
  0x51   : > { %1255 = vmatpush3.bf16.msra.mxu0 %v1328_v40  ;;  %v928_v40 = vld [vmem:[%s1445_s14] sm:$0x7] }
  0x52   : > { %1256 = vmatprep.subr.bf16.mxu0 %v1361_v1  ;;  %v929_v41 = vunpack.c.l.bf16 %v928_v40 }
  0x54   : > { %v931_v45 = vrot.slane %v929_v41, 1 }
  0x55   : > { %1257 = vmatpush3.bf16.msra.mxu0 %v1330_v42 }
  0x56   : > { %1258 = vmatprep.subr.bf16.mxu0 %v1361_v1 }
  0x59   : > { %1259 = vmatpush3.bf16.msra.mxu0 %v1332_v44 }
  0x5a   : > { %1260 = vmatprep.subr.bf16.mxu0 %v1361_v1 }
  0x5d   : > { %1261 = vmatpush3.bf16.msra.mxu0 %v1334_v46 }
  0x5e   : > { %1262 = vmatprep.subr.bf16.mxu0 %v1361_v1 }
  0x61   : > { %1263 = vmatpush3.bf16.msra.mxu0 %v1336_v48 }
  0x62   : > { %1264 = vmatprep.subr.bf16.mxu0 %v1361_v1 }
  0x65   : > { %1265 = vmatpush3.bf16.msra.mxu0 %v1338_v50 }
  0x66   : > { %1266 = vmatprep.subr.bf16.mxu0 %v1361_v1 }
  0x69   : > { %1267 = vmatpush3.bf16.msra.mxu0 %v1340_v52 }
  0xec   : > { %v351_v55 = vpop.f32.mrf.mxu0 }
  0xed   : > { %v439_v56 = vpop.f32.mrf.mxu1 }
  0xee   : > { %v1190_v57 = vpop.f32.mrf.mxu0  ;;  %v440_v63 = vadd.f32 %v439_v56, %v351_v55 }
  0xef   : > { %v1210_v58 = vpop.f32.mrf.mxu1 }
  0xf0   : > { %v354_v59 = vpop.f32.mrf.mxu0 }
  0xf1   : > { %v442_v60 = vpop.f32.mrf.mxu1 }
  0xf2   : > { %v1191_v61 = vpop.f32.mrf.mxu0 }
  0xf3   : > { %v1211_v62 = vpop.f32.mrf.mxu1 }
 0x10c   : > { %v551_v0 = vpop.f32.mrf.mxu0 }
 0x10d   : > { %v557_v3 = vadd.f32 %v551_v0, %v440_v63 }
 0x10e   : > { %v1230_v4 = vpop.f32.mrf.mxu0 }
 0x10f   : > { %v565_v5 = vadd.f32 %v1054_v2, %v557_v3 }
 0x110   : > { %v554_v6 = vpop.f32.mrf.mxu0 }
 0x111   : > { %v566_v7 = vmax.f32 %v565_v5, 0.0 }
 0x112   : > { %v1231_v8 = vpop.f32.mrf.mxu0 }
 0x113   : > { %v1117_v9 = vpack.c.bf16 %v566_v7, %v566_v7 }
 0x115   : > { %v573_v10 = vshrl.u32 %v1117_v9, 16  ;;  %v576_v12 = vshll.u32 %v1117_v9, 16 }
 0x117   : > { %v575_v11 = vrot.slane %v573_v10, 7 }
 0x119   : > { %v578_v14 = vor.u32 %v576_v12, %v575_v11 }
 0x11b   : > { %v584_v15 = vsel %vm582_vm3, %v578_v14, %v583_v13 }
 0x11c   : > { %585 = vst [vmem:[#allocation2] sm:$0x7] %v584_v15 }
 0x123   : > { %v586_v16 = vld [vmem:[#allocation2] sm:$0x3] }
 0x124   : > { %1269 = vmatmul.mubr.bf16.vlgmr.msra.gmra.mxu0 %v586_v16  ;;  %v1343_v17 = vld [vmem:[#allocation2] ss:$0 sps:$4 sm:$0x77]  }
 0x125   : > { %v627_v18 = vshll.u32 %v1343_v17, 16  ;;  %v625_v19 = vshrl.u32 %v1343_v17, 16  ;;  %v1352_v30 = vld [vmem:[#allocation2] ss:$0 sps:$4 sm:$0x66]  }
 0x126   : > { %v829_v31 = vrot.slane %v1352_v30, 1 }
 0x127   : > { %v629_v20 = vrot.slane %v627_v18, 1 }
 0x129   : > { %v630_v22 = vor.u32 %v629_v20, %v625_v19 }
 0x12b   : > { %1249 = vmatmul.mubr.bf16.vlgmr.msra.gmra.mxu1 %v630_v22 }
 0x12c   : > { %1273 = vmatpush3.bf16.msra.mxu1 %v1344_v21  ;;  %1288 = vmatprep.mubr.msk.bf16.mxu1 %vm1362_vm0, %v1361_v1 }
 0x12d   : > { %1274 = vmatprep.subr.bf16.mxu1 %v1361_v1 }
 0x130   : > { %1275 = vmatpush3.bf16.msra.mxu1 %v1345_v23 }
 0x131   : > { %1276 = vmatprep.subr.bf16.mxu1 %v1361_v1 }
 0x134   : > { %1277 = vmatpush3.bf16.msra.mxu1 %v1346_v24 }
 0x135   : > { %1278 = vmatprep.subr.bf16.mxu1 %v1361_v1 }
 0x138   : > { %1279 = vmatpush3.bf16.msra.mxu1 %v1347_v25 }
 0x139   : > { %1280 = vmatprep.subr.bf16.mxu1 %v1361_v1 }
 0x13c   : > { %1281 = vmatpush3.bf16.msra.mxu1 %v1348_v26 }
 0x13d   : > { %1282 = vmatprep.subr.bf16.mxu1 %v1361_v1 }
 0x140   : > { %1283 = vmatpush3.bf16.msra.mxu1 %v1349_v27 }
 0x141   : > { %1284 = vmatprep.subr.bf16.mxu1 %v1361_v1 }
 0x144   : > { %1285 = vmatpush3.bf16.msra.mxu1 %v1350_v28 }
 0x145   : > { %1286 = vmatprep.subr.bf16.mxu1 %v1361_v1  ;;  %v1114_v1 = vld [vmem:[%s1639_s4] ss:$0 sm:$0xff] }
 0x148   : > { %1287 = vmatpush3.bf16.msra.mxu1 %v1351_v29 }
 0x14b   : > { %1289 = vmatmul.mubr.bf16.vlgmr.msra.gmra.mxu1 %v829_v31 }
 0x1e4   : > { %v802_v32 = vpop.f32.mrf.mxu0 }
 0x1e6   : > { %v1270_v33 = vpop.f32.mrf.mxu0 }
 0x1e8   : > { %v805_v34 = vpop.f32.mrf.mxu0 }
 0x1ea   : > { %v1271_v35 = vpop.f32.mrf.mxu0 }
 0x1eb   : > { %v714_v36 = vpop.f32.mrf.mxu1 }
 0x1ec   : > { %v803_v42 = vadd.f32 %v802_v32, %v714_v36 }
 0x1ed   : > { %v1250_v37 = vpop.f32.mrf.mxu1 }
 0x1ef   : > { %v717_v38 = vpop.f32.mrf.mxu1 }
 0x1f1   : > { %v1251_v39 = vpop.f32.mrf.mxu1 }
 0x20b   : > { %v913_v43 = vpop.f32.mrf.mxu1 }
 0x20c   : > { %v919_v44 = vadd.f32 %v913_v43, %v803_v42 }
 0x20d   : > { %v1290_v46 = vpop.f32.mrf.mxu1 }
 0x20e   : > { %v927_v47 = vadd.f32 %v1114_v1, %v919_v44 }
 0x20f   : > { %v916_v48 = vpop.f32.mrf.mxu1 }
 0x210   : > { %v933_v49 = vadd.f32 %v931_v45, %v927_v47 }
 0x211   : > { %v1291_v50 = vpop.f32.mrf.mxu1 }
 0x212   : > { %v934_v51 = vpack.c.bf16 %v933_v49, %v933_v49 }
 0x214   : > { %935 = vst [vmem:[%s219_s13] sm:$0x3] %v934_v51 }
 0x215 PF: > { %s15_s18 = sadd.s32 1, %s1359_s18  }
 0x216   : > { %p12_p4 = scmp.ge.s32.totalorder %s15_s18, 4  }
 0x218   :  { %14 = sbr.rel (!%p12_p4) target bundleno = 1 (0x1), region = 74 }

// kernel: critic_cnn_forward.17
= control target key start
LH: loop header
LB: loop body
LE: loop exit
PB: predicated region body
PF: predicated region fallthrough
CT: control target
= control target key end

     0   :  { %s1085_s18 = smov 0   ;;  %s1239_s0 = inlined_call_operand.vmem [shape: bf16[2,4,64], index: 0, kind: input, shape index: {}]   ;;  %s1240_s1 = inlined_call_operand.vmem [shape: bf16[3,64,64], index: 1, kind: input, shape index: {}]   ;;  %s1241_s2 = inlined_call_operand.vmem [shape: f32[1,64], index: 2, kind: input, shape index: {}]   ;;  %s1242_s3 = inlined_call_operand.vmem [shape: bf16[3,64,64], index: 3, kind: input, shape index: {}]   ;;  %s1243_s4 = inlined_call_operand.vmem [shape: f32[1,64], index: 4, kind: input, shape index: {}]   ;;  %s1244_s5 = inlined_call_operand.vmem [shape: bf16[2,2,64], index: 5, kind: output, shape index: {}]  }
   0x1 LB: > { %s831_s19 = sadd.s32 4294967295, %s1049_s18   ;;  %p835_p0 = scmp.ge.s32.totalorder %s1049_s18, 1  ;;  %s1049_s18 = sphi %s1085_s18, %s15_s18  }
   0x2   : > { %p186_p1 = scmp.lt.s32.totalorder %s1049_s18, 3 }
   0x4   : > { %p187_p2 = pnand %p835_p0, %p186_p1 }
   0x5   : > { %p211_p3 = scmp.lt.s32.totalorder (!%p187_p2), %s831_s19, 1 }
   0x6   : > { %190 = sbr.rel (%p187_p2) target bundleno = 487 (0x1e7), region = 40 }
   0xb   : > { %v1019_v0 = vld [vmem:[%s1240_s1 + $0x38] sm:$0xff]   ;;  %v1051_v1 = vmov 0.0   ;;  %v1021_v3 = vld [vmem:[%s1240_s1 + $0x30] sm:$0xff]   ;;  %vm1052_vm0 = vmmov 0   ;;  %s1246_s19 = smov (!%p211_p3, %s831_s19), 1  ;;  %v244_v5 = vlaneseq  ;;  %v1023_v6 = vld [vmem:[%s1240_s1 + $0x28] sm:$0xff]  }
   0xc   : > { %935 = vmatprep.subr.bf16.mxu0 %v1051_v1  ;;  %947 = vmatprep.subr.bf16.mxu1 %v1051_v1  ;;  %v1020_v2 = vld [vmem:[%s1240_s1 + $0x18] sm:$0xff]   ;;  %v1022_v4 = vld [vmem:[%s1240_s1 + $0x10] sm:$0xff]   ;;  %s836_s30 = sshll.u32 %s1246_s19, 1  ;;  %v1024_v7 = vld [vmem:[%s1240_s1 + $0x8] sm:$0xff]   ;;  %v1053_v10 = vmov 1983009808   ;;  %s217_s8 = scalar_lea.vmem %s1244_s5, %s1246_s19 }
   0xd   : > { %936 = vmatpush3.bf16.msra.mxu0 %v1019_v0  ;;  %943 = vmatprep.mubr.msk.bf16.mxu0 %vm1052_vm0, %v1051_v1  ;;  %s1126_s10 = scalar_lea.vmem %s1239_s0, %s836_s30  ;;  %v1025_v9 = vld [vmem:[%s1240_s1 + $0x20] sm:$0xff]   ;;  %v242_v11 = vunpack.c.l.s4 %v1053_v10  ;;  %v245_v12 = vshrl.u32 %v244_v5, 7  ;;  %v1054_v14 = vmov 0   ;;  %vm279_vm1 = vcmask 523264   ;;  %v1027_v24 = vld [vmem:[%s1240_s1 + $0x58] sm:$0xff]   ;;  %v1028_v26 = vld [vmem:[%s1240_s1 + $0x50] sm:$0xff]  }
   0xe   : > { %948 = vmatpush3.bf16.msra.mxu1 %v1020_v2  ;;  %937 = vmatprep.subr.bf16.mxu0 %v1051_v1  ;;  %v229_v8 = vld [vmem:[%s1126_s10] sm:$0x3]  ;;  %v1029_v29 = vld [vmem:[%s1240_s1 + $0x48] sm:$0xff]   ;;  %vm487_vm2 = vcmask 517120   ;;  %v1031_v33 = vld [vmem:[%s1242_s3 + $0x18] sm:$0xff]   ;;  %vm782_vm5 = vcmask 516096  }
   0xf   : > { %949 = vmatprep.subr.bf16.mxu1 %v1051_v1  ;;  %955 = vmatprep.mubr.msk.bf16.mxu1 %vm1052_vm0, %v1051_v1  ;;  %v1026_v13 = vld [vmem:[%s1240_s1] sm:$0xff]   ;;  %v230_v15 = vmax.bf16 %v1054_v14, %v229_v8  ;;  %v243_v16 = vunpack.c.0.s8 %v242_v11  ;;  %488 = vst.msk [vmem:[#allocation2] sm:$0x3] %vm487_vm2, %v1054_v14  ;;  %v1032_v34 = vld [vmem:[%s1242_s3 + $0x10] sm:$0xff]   ;;  %v1033_v35 = vld [vmem:[%s1242_s3 + $0x38] sm:$0xff]  }
  0x10   : > { %v219_v17 = vld [vmem:[%s1126_s10] sm:$0x1]  ;;  %v390_v27 = vld [vmem:[%s1126_s10] sm:$0x2]  ;;  %v1034_v36 = vld [vmem:[%s1242_s3 + $0x8] sm:$0xff]  }
  0x11   : > { %938 = vmatpush3.bf16.msra.mxu0 %v1021_v3  ;;  %v1139_v18 = vsub.s32 %v243_v16, %v245_v12  ;;  %v220_v19 = vmax.bf16 %v1054_v14, %v219_v17  ;;  %v391_v28 = vmax.bf16 %v1054_v14, %v390_v27  ;;  %v1030_v31 = vld [vmem:[%s1240_s1 + $0x40] sm:$0xff]   ;;  %v1035_v37 = vld [vmem:[%s1242_s3 + $0x30] sm:$0xff]   ;;  %v1037_v39 = vld [vmem:[%s1242_s3 + $0x28] sm:$0xff]   ;;  %vm507_vm3 = vsmask.f32 1282 }
  0x12   : > { %950 = vmatpush3.bf16.msra.mxu1 %v1022_v4  ;;  %939 = vmatprep.subr.bf16.mxu0 %v1051_v1  ;;  %v1036_v38 = vld [vmem:[%s1242_s3] sm:$0xff]   ;;  %vm508_vm4 = vmand %vm487_vm2, %vm507_vm3  ;;  %v1039_v8 = vld [vmem:[%s1242_s3 + $0x58] sm:$0xff]  }
  0x13   : > { %951 = vmatprep.subr.bf16.mxu1 %v1051_v1  ;;  %v247_v20 = vrot.slane %v230_v15, %v1139_v18  ;;  %v408_v30 = vrot.slane %v391_v28, %v1139_v18  ;;  %v1038_v40 = vld [vmem:[%s1242_s3 + $0x20] sm:$0xff]   ;;  %v1040_v10 = vld [vmem:[%s1242_s3 + $0x50] sm:$0xff]   ;;  %v1041_v11 = vld [vmem:[%s1242_s3 + $0x48] sm:$0xff]  }
  0x14   : > { %v868_v51 = vld [vmem:[%s1241_s2] ss:$0 sm:$0xff] }
  0x15   : > { %940 = vmatpush3.bf16.msra.mxu0 %v1023_v6  ;;  %v249_v21 = vshrl.u32 %v247_v20, 16  ;;  %v251_v22 = vshll.u32 %v247_v20, 16  ;;  %v409_v32 = vrot.slane %v408_v30, 1  ;;  %v1042_v12 = vld [vmem:[%s1242_s3 + $0x40] sm:$0xff]  }
  0x16   : > { %952 = vmatpush3.bf16.msra.mxu1 %v1024_v7  ;;  %941 = vmatprep.subr.bf16.mxu0 %v1051_v1  ;;  %v509_v63 = vld [vmem:[#allocation2] sm:$0x3] }
  0x17   : > { %953 = vmatprep.subr.bf16.mxu1 %v1051_v1  ;;  %v253_v23 = vrot.slane %v251_v22, 1 }
  0x19   : > { %942 = vmatpush3.bf16.msra.mxu0 %v1025_v9  ;;  %v254_v25 = vor.u32 %v253_v23, %v249_v21  ;;  %v775_v23 = vld [vmem:[%s1126_s10] sm:$0x3] }
  0x1a   : > { %954 = vmatpush3.bf16.msra.mxu1 %v1026_v13  ;;  %959 = vmatprep.subr.bf16.mxu0 %v1051_v1 }
  0x1b   : > { %971 = vmatprep.subr.bf16.mxu1 %v1051_v1 }
  0x1c   : > { %944 = vmatmul.mubr.msk.bf16.vlgmr.msra.gmra.mxu0 %vm279_vm1, %v254_v25 }
  0x1d   : > { %956 = vmatmul.mubr.msk.bf16.vlgmr.msra.gmra.mxu1 %vm279_vm1, %v220_v19  ;;  %960 = vmatpush3.bf16.msra.mxu0 %v1027_v24  ;;  %v776_v24 = vunpack.c.l.bf16 %v775_v23 }
  0x1e   : > { %979 = vmatprep.mubr.msk.bf16.mxu1 %vm1052_vm0, %v1051_v1  ;;  %967 = vmatprep.mubr.msk.bf16.mxu0 %vm1052_vm0, %v1051_v1 }
  0x1f   : > { %961 = vmatprep.subr.bf16.mxu0 %v1051_v1  ;;  %972 = vmatpush3.bf16.msra.mxu1 %v1033_v35  ;;  %v778_v28 = vrot.slane %v776_v24, 1 }
  0x20   : > { %973 = vmatprep.subr.bf16.mxu1 %v1051_v1 }
  0x21   : > { %962 = vmatpush3.bf16.msra.mxu0 %v1028_v26 }
  0x22   : > { %963 = vmatprep.subr.bf16.mxu0 %v1051_v1 }
  0x23   : > { %974 = vmatpush3.bf16.msra.mxu1 %v1035_v37 }
  0x24   : > { %975 = vmatprep.subr.bf16.mxu1 %v1051_v1 }
  0x25   : > { %964 = vmatpush3.bf16.msra.mxu0 %v1029_v29 }
  0x26   : > { %965 = vmatprep.subr.bf16.mxu0 %v1051_v1 }
  0x27   : > { %976 = vmatpush3.bf16.msra.mxu1 %v1037_v39 }
  0x28   : > { %977 = vmatprep.subr.bf16.mxu1 %v1051_v1 }
  0x29   : > { %966 = vmatpush3.bf16.msra.mxu0 %v1030_v31 }
  0x2a   : > { %983 = vmatprep.subr.bf16.mxu0 %v1051_v1 }
  0x2b   : > { %978 = vmatpush3.bf16.msra.mxu1 %v1038_v40 }
  0x2c   : > { %968 = vmatmul.mubr.msk.bf16.vlgmr.msra.gmra.mxu0 %vm279_vm1, %v409_v32  ;;  %995 = vmatprep.subr.bf16.mxu1 %v1051_v1 }
  0x2d   : > { %991 = vmatprep.mubr.msk.bf16.mxu0 %vm1052_vm0, %v1051_v1  ;;  %984 = vmatpush3.bf16.msra.mxu0 %v1031_v33 }
  0x2e   : > { %985 = vmatprep.subr.bf16.mxu0 %v1051_v1 }
  0x31   : > { %986 = vmatpush3.bf16.msra.mxu0 %v1032_v34 }
  0x32   : > { %987 = vmatprep.subr.bf16.mxu0 %v1051_v1 }
  0x35   : > { %988 = vmatpush3.bf16.msra.mxu0 %v1034_v36 }
  0x36   : > { %989 = vmatprep.subr.bf16.mxu0 %v1051_v1 }
  0x39   : > { %990 = vmatpush3.bf16.msra.mxu0 %v1036_v38 }
  0xdc   : > { %v317_v44 = vpop.f32.mrf.mxu0 }
  0xdd   : > { %v384_v41 = vpop.f32.mrf.mxu1 }
  0xde   : > { %v945_v46 = vpop.f32.mrf.mxu0  ;;  %v385_v49 = vadd.f32 %v384_v41, %v317_v44 }
  0xdf   : > { %v957_v42 = vpop.f32.mrf.mxu1 }
  0xe0   : > { %v320_v47 = vpop.f32.mrf.mxu0 }
  0xe1   : > { %v387_v43 = vpop.f32.mrf.mxu1 }
  0xe2   : > { %v946_v48 = vpop.f32.mrf.mxu0 }
  0xe3   : > { %v958_v45 = vpop.f32.mrf.mxu1 }
  0xec   : > { %v471_v50 = vpop.f32.mrf.mxu0 }
  0xed   : > { %v477_v52 = vadd.f32 %v471_v50, %v385_v49 }
  0xee   : > { %v969_v53 = vpop.f32.mrf.mxu0 }
  0xef   : > { %v485_v54 = vadd.f32 %v868_v51, %v477_v52 }
  0xf0   : > { %v474_v55 = vpop.f32.mrf.mxu0 }
  0xf1   : > { %v486_v56 = vmax.f32 %v485_v54, 0.0 }
  0xf2   : > { %v970_v57 = vpop.f32.mrf.mxu0 }
  0xf3   : > { %v489_v58 = vpack.c.bf16 %v486_v56, %v486_v56 }
  0xf5   : > { %v497_v59 = vrot.slane %v489_v58, %v1139_v18 }
  0xf7   : > { %v499_v60 = vshrl.u32 %v497_v59, 16  ;;  %v502_v62 = vshll.u32 %v497_v59, 16 }
  0xf9   : > { %v501_v61 = vrot.slane %v499_v60, 7 }
  0xfb   : > { %v504_v0 = vor.u32 %v502_v62, %v501_v61 }
  0xfd   : > { %v510_v2 = vsel %vm508_vm4, %v504_v0, %v509_v63 }
  0xfe   : > { %511 = vst [vmem:[#allocation2] sm:$0x3] %v510_v2 }
 0x105   : > { %v512_v3 = vld [vmem:[#allocation2] sm:$0x1]  ;;  %v896_v13 = vld.sshfl [vmem:[#allocation2] sm:$0x2 pattern:$0x76325410] }
 0x106   : > { %v877_v4 = vld.sshfl [vmem:[#allocation2] sm:$0x3 pattern:$0x76325410]  ;;  %992 = vmatmul.mubr.msk.bf16.vlgmr.msra.gmra.mxu0 %vm279_vm1, %v512_v3  ;;  %v698_v14 = vrot.slane %v896_v13, 1 }
 0x107   : > { %v542_v5 = vshll.u32 %v877_v4, 16  ;;  %v540_v6 = vshrl.u32 %v877_v4, 16 }
 0x109   : > { %v544_v7 = vrot.slane %v542_v5, 1 }
 0x10b   : > { %v545_v9 = vor.u32 %v544_v7, %v540_v6 }
 0x10d   : > { %980 = vmatmul.mubr.msk.bf16.vlgmr.msra.gmra.mxu1 %vm279_vm1, %v545_v9 }
 0x10e   : > { %996 = vmatpush3.bf16.msra.mxu1 %v1039_v8  ;;  %1003 = vmatprep.mubr.msk.bf16.mxu1 %vm1052_vm0, %v1051_v1 }
 0x10f   : > { %997 = vmatprep.subr.bf16.mxu1 %v1051_v1 }
 0x112   : > { %998 = vmatpush3.bf16.msra.mxu1 %v1040_v10 }
 0x113   : > { %999 = vmatprep.subr.bf16.mxu1 %v1051_v1 }
 0x116   : > { %1000 = vmatpush3.bf16.msra.mxu1 %v1041_v11 }
 0x117   : > { %1001 = vmatprep.subr.bf16.mxu1 %v1051_v1  ;;  %v902_v1 = vld [vmem:[%s1243_s4] ss:$0 sm:$0xff] }
 0x11a   : > { %1002 = vmatpush3.bf16.msra.mxu1 %v1042_v12 }
 0x11d   : > { %1004 = vmatmul.mubr.msk.bf16.vlgmr.msra.gmra.mxu1 %vm279_vm1, %v698_v14 }
 0x1c6   : > { %v674_v15 = vpop.f32.mrf.mxu0 }
 0x1c8   : > { %v993_v16 = vpop.f32.mrf.mxu0 }
 0x1ca   : > { %v677_v17 = vpop.f32.mrf.mxu0 }
 0x1cc   : > { %v994_v19 = vpop.f32.mrf.mxu0 }
 0x1cd   : > { %v607_v18 = vpop.f32.mrf.mxu1 }
 0x1ce   : > { %v675_v25 = vadd.f32 %v674_v15, %v607_v18 }
 0x1cf   : > { %v981_v20 = vpop.f32.mrf.mxu1 }
 0x1d1   : > { %v610_v21 = vpop.f32.mrf.mxu1 }
 0x1d3   : > { %v982_v22 = vpop.f32.mrf.mxu1 }
 0x1dd   : > { %v760_v26 = vpop.f32.mrf.mxu1 }
 0x1de   : > { %v766_v27 = vadd.f32 %v760_v26, %v675_v25 }
 0x1df   : > { %v1005_v29 = vpop.f32.mrf.mxu1 }
 0x1e0   : > { %v774_v30 = vadd.f32 %v902_v1, %v766_v27 }
 0x1e1   : > { %v763_v31 = vpop.f32.mrf.mxu1 }
 0x1e2   : > { %v780_v32 = vadd.f32 %v778_v28, %v774_v30 }
 0x1e3   : > { %v1006_v33 = vpop.f32.mrf.mxu1 }
 0x1e4   : > { %v781_v34 = vpack.c.bf16 %v780_v32, %v780_v32 }
 0x1e6   : > { %783 = vst.msk [vmem:[%s217_s8] sm:$0x1] %vm782_vm5, %v781_v34 }
 0x1e7 PF: > { %s15_s18 = sadd.s32 1, %s1049_s18  }
 0x1e8   : > { %p12_p4 = scmp.ge.s32.totalorder %s15_s18, 4  }
 0x1ea   :  { %14 = sbr.rel (!%p12_p4) target bundleno = 1 (0x1), region = 74 }

// kernel: critic_cnn_forward.19
= control target key start
LH: loop header
LB: loop body
LE: loop exit
PB: predicated region body
PF: predicated region fallthrough
CT: control target
= control target key end

     0   :  { %v4049_v1 = vmov 0   ;;  %v65_v2 = vlaneseq  ;;  %v4050_v3 = vmov 1983009808   ;;  %vm289_vm0 = vcmask 1041408   ;;  %s5325_s2 = inlined_call_operand.vmem [shape: bf16[128,256], index: 2, kind: input, shape index: {}]   ;;  %s5326_s5 = inlined_call_operand.vmem [shape: bf16[4,512], index: 5, kind: input, shape index: {}]   ;;  %s5327_s1 = inlined_call_operand.vmem [shape: f32[2,4], index: 1, kind: input, shape index: {}]   ;;  %s5328_s4 = inlined_call_operand.vmem [shape: bf16[256,512], index: 4, kind: input, shape index: {}]   ;;  %s5329_s0 = inlined_call_operand.vmem [shape: bf16[2,128], index: 0, kind: input, shape index: {}]   ;;  %s5330_s7 = inlined_call_operand.vmem [shape: bf16[512,512], index: 7, kind: input, shape index: {}]   ;;  %s5331_s3 = inlined_call_operand.vmem [shape: f32[1,256], index: 3, kind: input, shape index: {}]   ;;  %s5332_s9 = inlined_call_operand.vmem [shape: bf16[512,512], index: 9, kind: input, shape index: {}]   ;;  %s5333_s6 = inlined_call_operand.vmem [shape: f32[1,512], index: 6, kind: input, shape index: {}]   ;;  %s5334_s8 = inlined_call_operand.vmem [shape: f32[1,512], index: 8, kind: input, shape index: {}]   ;;  %s5335_s11 = inlined_call_operand.vmem [shape: bf16[512,2], index: 11, kind: input, shape index: {}]   ;;  %s5336_s10 = inlined_call_operand.vmem [shape: f32[1,512], index: 10, kind: input, shape index: {}]   ;;  %s5337_s12 = inlined_call_operand.vmem [shape: f32[1,2], index: 12, kind: input, shape index: {}]   ;;  %s5338_s13 = inlined_call_operand.vmem [shape: f32[2,2], index: 13, kind: output, shape index: {}]  }
   0x1   :  { %v3512_v0 = vld [vmem:[%s5325_s2 + $0x74] ss:$8 sps:$4 sm:$0xff]   ;;  %187 = vmatprep.mubr.bf16.mxu0 %v4049_v1  ;;  %v270_v4 = vunpack.c.l.s4 %v4050_v3  ;;  %334 = vmatprep.mubr.bf16.mxu1 %v4049_v1  ;;  %v3514_v5 = vld [vmem:[%s5325_s2 + $0x70] ss:$8 sps:$4 sm:$0xff]   ;;  %v3515_v6 = vld [vmem:[%s5325_s2 + $0x64] ss:$8 sps:$4 sm:$0xff]  }
   0x2   :  { %155 = vmatprep.subr.bf16.mxu0 %v3512_v0  ;;  %v3517_v7 = vld [vmem:[%s5325_s2 + $0x60] ss:$8 sps:$4 sm:$0xff]   ;;  %v3518_v8 = vld [vmem:[%s5325_s2 + $0x54] ss:$8 sps:$4 sm:$0xff]   ;;  %v4138_v9 = vshrl.u32 %v65_v2, 7  ;;  %vm285_vm1 = vcmask 31744  }
   0x3   :  { %156 = vmatpush1.bf16.msra.mxu0 %v3514_v5  ;;  %v271_v10 = vunpack.c.0.s8 %v270_v4  ;;  %v3520_v11 = vld [vmem:[%s5325_s2 + $0x50] ss:$8 sps:$4 sm:$0xff]   ;;  %v3521_v12 = vld [vmem:[%s5325_s2 + $0x44] ss:$8 sps:$4 sm:$0xff]   ;;  %v3523_v14 = vld [vmem:[%s5325_s2 + $0x40] ss:$8 sps:$4 sm:$0xff]  }
   0x4   :  { %157 = vmatprep.subr.bf16.mxu0 %v3515_v6  ;;  %v266_v15 = vld [vmem:[%s5326_s5] sm:$0xff]  ;;  %v3524_v16 = vld [vmem:[%s5325_s2 + $0x34] ss:$8 sps:$4 sm:$0xff]   ;;  %v3526_v23 = vld [vmem:[%s5325_s2 + $0x30] ss:$8 sps:$4 sm:$0xff]   ;;  %vm3087_vm2 = vcmask 9216  }
   0x5   :  { %v274_v13 = vsub.s32 %v271_v10, %v4138_v9  ;;  %v268_v17 = vcombine.high %v266_v15, %v266_v15  ;;  %v200_v19 = vld [vmem:[%s5327_s1] sm:$0x3]  ;;  %v3527_v24 = vld [vmem:[%s5325_s2 + $0x24] ss:$8 sps:$4 sm:$0xff]   ;;  %v3530_v30 = vld [vmem:[%s5325_s2 + $0x14] ss:$8 sps:$4 sm:$0xff]  }
   0x6   :  { %v201_v25 = vpack.c.bf16 %v200_v19, %v200_v19  ;;  %v3539_v28 = vld [vmem:[%s5328_s4 + $0xe4] ss:$16 sps:$4 sm:$0xff]   ;;  %v3529_v29 = vld [vmem:[%s5325_s2 + $0x20] ss:$8 sps:$4 sm:$0xff]   ;;  %v3532_v31 = vld [vmem:[%s5325_s2 + $0x10] ss:$8 sps:$4 sm:$0xff]  }
   0x7   :  { %158 = vmatpush1.bf16.msra.mxu0 %v3517_v7  ;;  %v275_v18 = vrot.slane %v266_v15, %v274_v13  ;;  %v282_v20 = vrot.slane %v268_v17, %v274_v13  ;;  %v3533_v32 = vld [vmem:[%s5325_s2 + $0x4] ss:$8 sps:$4 sm:$0xff]   ;;  %v3537_v33 = vld [vmem:[%s5328_s4 + $0xe0] ss:$16 sps:$4 sm:$0xff]   ;;  %v3540_v41 = vld [vmem:[%s5328_s4 + $0xe8] ss:$16 sps:$4 sm:$0xff]  }
   0x8   :  { %159 = vmatprep.subr.bf16.mxu0 %v3518_v8  ;;  %v3545_v34 = vld [vmem:[%s5328_s4 + $0xc4] ss:$16 sps:$4 sm:$0xff]   ;;  %v3535_v35 = vld [vmem:[%s5325_s2] ss:$8 sps:$4 sm:$0xff]   ;;  %v3542_v37 = vld [vmem:[%s5328_s4 + $0xec] ss:$16 sps:$4 sm:$0xff]  }
   0x9   :  { %v283_v21 = vcombine.high %v275_v18, %v275_v18  ;;  %v291_v22 = vsel %vm289_vm0, %v275_v18, 0  ;;  %v284_v26 = vcombine.high %v282_v20, %v282_v20  ;;  %v297_v27 = vsel %vm289_vm0, %v282_v20, 0  ;;  %v45_v36 = vld [vmem:[%s5329_s0] sm:$0x1]  ;;  %v3551_v40 = vld [vmem:[%s5328_s4 + $0xa4] ss:$16 sps:$4 sm:$0xff]  }
   0xa   :  { %v3543_v38 = vld [vmem:[%s5328_s4 + $0xc0] ss:$16 sps:$4 sm:$0xff]   ;;  %v46_v39 = vmax.bf16 %v4049_v1, %v45_v36  ;;  %v3548_v42 = vld [vmem:[%s5328_s4 + $0xcc] ss:$16 sps:$4 sm:$0xff]   ;;  %v3557_v44 = vld [vmem:[%s5328_s4 + $0x84] ss:$16 sps:$4 sm:$0xff]  }
   0xb   :  { %160 = vmatpush1.bf16.msra.mxu0 %v3520_v11  ;;  %3109 = vmatprep.subr.msk.bf16.mxu1 %vm289_vm0, %v283_v21  ;;  %v3549_v43 = vld [vmem:[%s5328_s4 + $0xa0] ss:$16 sps:$4 sm:$0xff]   ;;  %v3546_v45 = vld [vmem:[%s5328_s4 + $0xc8] ss:$16 sps:$4 sm:$0xff]   ;;  %v3554_v46 = vld [vmem:[%s5328_s4 + $0xac] ss:$16 sps:$4 sm:$0xff]  }
   0xc   :  { %161 = vmatprep.subr.bf16.mxu0 %v3521_v12  ;;  %317 = vmatpush1.bf16.msra.mxu1 %v291_v22  ;;  %v3555_v47 = vld [vmem:[%s5328_s4 + $0x80] ss:$16 sps:$4 sm:$0xff]   ;;  %v3563_v48 = vld [vmem:[%s5328_s4 + $0x64] ss:$16 sps:$4 sm:$0xff]   ;;  %v3552_v49 = vld [vmem:[%s5328_s4 + $0xa8] ss:$16 sps:$4 sm:$0xff]  }
   0xd   :  { %3111 = vmatprep.subr.msk.bf16.mxu1 %vm289_vm0, %v284_v26  ;;  %v3560_v50 = vld [vmem:[%s5328_s4 + $0x8c] ss:$16 sps:$4 sm:$0xff]   ;;  %v3561_v51 = vld [vmem:[%s5328_s4 + $0x60] ss:$16 sps:$4 sm:$0xff]   ;;  %v3569_v52 = vld [vmem:[%s5328_s4 + $0x44] ss:$16 sps:$4 sm:$0xff]  }
   0xe   :  { %v3558_v53 = vld [vmem:[%s5328_s4 + $0x88] ss:$16 sps:$4 sm:$0xff]   ;;  %v3566_v54 = vld [vmem:[%s5328_s4 + $0x6c] ss:$16 sps:$4 sm:$0xff]   ;;  %v3567_v55 = vld [vmem:[%s5328_s4 + $0x40] ss:$16 sps:$4 sm:$0xff]  }
   0xf   :  { %162 = vmatpush1.bf16.msra.mxu0 %v3523_v14  ;;  %3110 = vmatmul.mubr.msk.bf16.vlgmr.msra.gmra.mxu1 %vm285_vm1, %v201_v25  ;;  %v3575_v56 = vld [vmem:[%s5328_s4 + $0x24] ss:$16 sps:$4 sm:$0xff]   ;;  %v3564_v57 = vld [vmem:[%s5328_s4 + $0x68] ss:$16 sps:$4 sm:$0xff]   ;;  %v3572_v58 = vld [vmem:[%s5328_s4 + $0x4c] ss:$16 sps:$4 sm:$0xff]  }
  0x10   :  { %163 = vmatprep.subr.bf16.mxu0 %v3524_v16  ;;  %358 = vmatpush1.bf16.msra.mxu1 %v297_v27  ;;  %v3573_v59 = vld [vmem:[%s5328_s4 + $0x20] ss:$16 sps:$4 sm:$0xff]   ;;  %v3570_v60 = vld [vmem:[%s5328_s4 + $0x48] ss:$16 sps:$4 sm:$0xff]   ;;  %v3581_v61 = vld [vmem:[%s5328_s4 + $0x4] ss:$16 sps:$4 sm:$0xff]  }
  0x11   :  { %375 = vmatprep.mubr.bf16.mxu1 %v4049_v1  ;;  %704 = vmatprep.subr.bf16.mxu1 %v3539_v28  ;;  %v3578_v62 = vld [vmem:[%s5328_s4 + $0x2c] ss:$16 sps:$4 sm:$0xff]   ;;  %v3579_v63 = vld [vmem:[%s5328_s4] ss:$16 sps:$4 sm:$0xff]   ;;  %v3587_v0 = vld [vmem:[%s5328_s4 + $0x1e4] ss:$16 sps:$4 sm:$0xff]  }
  0x12   :  { %v3576_v1 = vld [vmem:[%s5328_s4 + $0x28] ss:$16 sps:$4 sm:$0xff]   ;;  %v3584_v2 = vld [vmem:[%s5328_s4 + $0xc] ss:$16 sps:$4 sm:$0xff]   ;;  %v3585_v3 = vld [vmem:[%s5328_s4 + $0x1e0] ss:$16 sps:$4 sm:$0xff]  }
  0x13   :  { %164 = vmatpush1.bf16.msra.mxu0 %v3526_v23  ;;  %v3593_v4 = vld [vmem:[%s5328_s4 + $0x1c4] ss:$16 sps:$4 sm:$0xff]   ;;  %v3582_v5 = vld [vmem:[%s5328_s4 + $0x8] ss:$16 sps:$4 sm:$0xff]   ;;  %v3590_v6 = vld [vmem:[%s5328_s4 + $0x1ec] ss:$16 sps:$4 sm:$0xff]  }
  0x14   :  { %165 = vmatprep.subr.bf16.mxu0 %v3527_v24  ;;  %v3591_v7 = vld [vmem:[%s5328_s4 + $0x1c0] ss:$16 sps:$4 sm:$0xff]   ;;  %v3599_v8 = vld [vmem:[%s5328_s4 + $0x1a4] ss:$16 sps:$4 sm:$0xff]   ;;  %v3588_v10 = vld [vmem:[%s5328_s4 + $0x1e8] ss:$16 sps:$4 sm:$0xff]  }
  0x15   :  { %v3596_v11 = vld [vmem:[%s5328_s4 + $0x1cc] ss:$16 sps:$4 sm:$0xff]   ;;  %v3597_v12 = vld [vmem:[%s5328_s4 + $0x1a0] ss:$16 sps:$4 sm:$0xff]   ;;  %v3605_v13 = vld [vmem:[%s5328_s4 + $0x184] ss:$16 sps:$4 sm:$0xff]  }
  0x16   :  { %v3594_v14 = vld [vmem:[%s5328_s4 + $0x1c8] ss:$16 sps:$4 sm:$0xff]   ;;  %v3602_v15 = vld [vmem:[%s5328_s4 + $0x1ac] ss:$16 sps:$4 sm:$0xff]   ;;  %v3603_v16 = vld [vmem:[%s5328_s4 + $0x180] ss:$16 sps:$4 sm:$0xff]  }
  0x17   :  { %166 = vmatpush1.bf16.msra.mxu0 %v3529_v29  ;;  %3112 = vmatmul.mubr.msk.bf16.vlgmr.msra.gmra.mxu1 %vm285_vm1, %v201_v25  ;;  %v3611_v17 = vld [vmem:[%s5328_s4 + $0x164] ss:$16 sps:$4 sm:$0xff]   ;;  %v3600_v18 = vld [vmem:[%s5328_s4 + $0x1a8] ss:$16 sps:$4 sm:$0xff]   ;;  %v3608_v19 = vld [vmem:[%s5328_s4 + $0x18c] ss:$16 sps:$4 sm:$0xff]  }
  0x18   :  { %167 = vmatprep.subr.bf16.mxu0 %v3530_v30  ;;  %705 = vmatpush1.bf16.msra.mxu1 %v3537_v33  ;;  %v3609_v20 = vld [vmem:[%s5328_s4 + $0x160] ss:$16 sps:$4 sm:$0xff]   ;;  %v3617_v21 = vld [vmem:[%s5328_s4 + $0x144] ss:$16 sps:$4 sm:$0xff]   ;;  %v3606_v22 = vld [vmem:[%s5328_s4 + $0x188] ss:$16 sps:$4 sm:$0xff]  }
  0x19   :  { %706 = vmatprep.subr.bf16.mxu1 %v3545_v34  ;;  %v3614_v23 = vld [vmem:[%s5328_s4 + $0x16c] ss:$16 sps:$4 sm:$0xff]   ;;  %v3615_v24 = vld [vmem:[%s5328_s4 + $0x140] ss:$16 sps:$4 sm:$0xff]   ;;  %v3612_v25 = vld [vmem:[%s5328_s4 + $0x168] ss:$16 sps:$4 sm:$0xff]  }
  0x1a   :  { %v3620_v26 = vld [vmem:[%s5328_s4 + $0x14c] ss:$16 sps:$4 sm:$0xff]   ;;  %v3618_v27 = vld [vmem:[%s5328_s4 + $0x148] ss:$16 sps:$4 sm:$0xff]   ;;  %v3623_v28 = vld [vmem:[%s5328_s4 + $0x124] ss:$16 sps:$4 sm:$0xff]  }
  0x1b   :  { %168 = vmatpush1.bf16.msra.mxu0 %v3532_v31  ;;  %v3626_v29 = vld [vmem:[%s5328_s4 + $0x12c] ss:$16 sps:$4 sm:$0xff]   ;;  %v3621_v30 = vld [vmem:[%s5328_s4 + $0x120] ss:$16 sps:$4 sm:$0xff]   ;;  %v3624_v31 = vld [vmem:[%s5328_s4 + $0x128] ss:$16 sps:$4 sm:$0xff]  }
  0x1c   :  { %169 = vmatprep.subr.bf16.mxu0 %v3533_v32  ;;  %707 = vmatpush1.bf16.msra.mxu1 %v3543_v38  ;;  %v3629_v32 = vld [vmem:[%s5328_s4 + $0x104] ss:$16 sps:$4 sm:$0xff]   ;;  %v3632_v33 = vld [vmem:[%s5328_s4 + $0x10c] ss:$16 sps:$4 sm:$0xff]   ;;  %v3627_v34 = vld [vmem:[%s5328_s4 + $0x100] ss:$16 sps:$4 sm:$0xff]  }
  0x1d   :  { %708 = vmatprep.subr.bf16.mxu1 %v3551_v40  ;;  %v3635_v36 = vld [vmem:[%s5330_s7 + $0xe4] ss:$16 sps:$4 sm:$0xff]  }
  0x1f   :  { %170 = vmatpush1.bf16.msra.mxu0 %v3535_v35  ;;  %v3630_v35 = vld [vmem:[%s5328_s4 + $0x108] ss:$16 sps:$4 sm:$0xff]  }
  0x20   :  { %745 = vmatprep.subr.bf16.mxu0 %v3542_v37  ;;  %709 = vmatpush1.bf16.msra.mxu1 %v3549_v43  ;;  %v3638_v37 = vld [vmem:[%s5330_s7 + $0x2e4] ss:$16 sps:$4 sm:$0xff]   ;;  %v63_v43 = vld [vmem:[%s5331_s3] sm:$0x3] }
  0x21   :  { %710 = vmatprep.subr.bf16.mxu1 %v3557_v44 }
  0x22   :  { %188 = vmatmul.mubr.bf16.vlgmr.msra.gmra.mxu0 %v46_v39 }
  0x23   :  { %746 = vmatpush1.bf16.msra.mxu0 %v3540_v41 }
  0x24   :  { %747 = vmatprep.subr.bf16.mxu0 %v3548_v42  ;;  %711 = vmatpush1.bf16.msra.mxu1 %v3555_v47  ;;  %v4394_v42 = vsub.s32 0, %v4138_v9 }
  0x25   :  { %712 = vmatprep.subr.bf16.mxu1 %v3563_v48 }
  0x26   :  { %v68_v47 = vrot.slane %v63_v43, %v4394_v42 }
  0x27   :  { %748 = vmatpush1.bf16.msra.mxu0 %v3546_v45  ;;  %v4402_v45 = vsub.s32 1, %v4138_v9 }
  0x28   :  { %749 = vmatprep.subr.bf16.mxu0 %v3554_v46  ;;  %713 = vmatpush1.bf16.msra.mxu1 %v3561_v51 }
  0x29   :  { %714 = vmatprep.subr.bf16.mxu1 %v3569_v52 }
  0x2b   :  { %750 = vmatpush1.bf16.msra.mxu0 %v3552_v49  ;;  %v72_v49 = vrot.slane %v63_v43, %v4402_v45  ;;  %v3701_v43 = vld [vmem:[%s5330_s7 + $0x184] ss:$16 sps:$4 sm:$0xff]  }
  0x2c   :  { %751 = vmatprep.subr.bf16.mxu0 %v3560_v50  ;;  %715 = vmatpush1.bf16.msra.mxu1 %v3567_v55 }
  0x2d   :  { %716 = vmatprep.subr.bf16.mxu1 %v3575_v56 }
  0x2f   :  { %752 = vmatpush1.bf16.msra.mxu0 %v3558_v53 }
  0x30   :  { %753 = vmatprep.subr.bf16.mxu0 %v3566_v54  ;;  %717 = vmatpush1.bf16.msra.mxu1 %v3573_v59 }
  0x31   :  { %718 = vmatprep.subr.bf16.mxu1 %v3581_v61  ;;  %v3636_v61 = vld [vmem:[%s5330_s7 + $0x2e0] ss:$16 sps:$4 sm:$0xff]  }
  0x33   :  { %754 = vmatpush1.bf16.msra.mxu0 %v3564_v57 }
  0x34   :  { %755 = vmatprep.subr.bf16.mxu0 %v3572_v58  ;;  %719 = vmatpush1.bf16.msra.mxu1 %v3579_v63  ;;  %v3641_v63 = vld [vmem:[%s5330_s7 + $0xc4] ss:$16 sps:$4 sm:$0xff]  }
  0x35   :  { %720 = vmatprep.subr.bf16.mxu1 %v3587_v0  ;;  %v3644_v0 = vld [vmem:[%s5330_s7 + $0x2c4] ss:$16 sps:$4 sm:$0xff]  }
  0x37   :  { %756 = vmatpush1.bf16.msra.mxu0 %v3570_v60  ;;  %v3633_v60 = vld [vmem:[%s5330_s7 + $0xe0] ss:$16 sps:$4 sm:$0xff]  }
  0x38   :  { %757 = vmatprep.subr.bf16.mxu0 %v3578_v62  ;;  %721 = vmatpush2.bf16.msra.mxu1 %v3585_v3  ;;  %v3647_v3 = vld [vmem:[%s5330_s7 + $0xa4] ss:$16 sps:$4 sm:$0xff]  }
  0x39   :  { %722 = vmatprep.subr.bf16.mxu1 %v3593_v4  ;;  %v3650_v4 = vld [vmem:[%s5330_s7 + $0x2a4] ss:$16 sps:$4 sm:$0xff]  }
  0x3b   :  { %758 = vmatpush1.bf16.msra.mxu0 %v3576_v1  ;;  %v3639_v1 = vld [vmem:[%s5330_s7 + $0xc0] ss:$16 sps:$4 sm:$0xff]  }
  0x3c   :  { %759 = vmatprep.subr.bf16.mxu0 %v3584_v2  ;;  %723 = vmatpush2.bf16.msra.mxu1 %v3591_v7  ;;  %v3642_v2 = vld [vmem:[%s5330_s7 + $0x2c0] ss:$16 sps:$4 sm:$0xff]   ;;  %v3653_v7 = vld [vmem:[%s5330_s7 + $0x84] ss:$16 sps:$4 sm:$0xff]  }
  0x3d   :  { %724 = vmatprep.subr.bf16.mxu1 %v3599_v8  ;;  %v3656_v8 = vld [vmem:[%s5330_s7 + $0x284] ss:$16 sps:$4 sm:$0xff]  }
  0x3f   :  { %760 = vmatpush1.bf16.msra.mxu0 %v3582_v5  ;;  %v3645_v5 = vld [vmem:[%s5330_s7 + $0xa0] ss:$16 sps:$4 sm:$0xff]  }
  0x40   :  { %761 = vmatprep.subr.bf16.mxu0 %v3590_v6  ;;  %725 = vmatpush2.bf16.msra.mxu1 %v3597_v12  ;;  %v3648_v6 = vld [vmem:[%s5330_s7 + $0x2a0] ss:$16 sps:$4 sm:$0xff]   ;;  %v3659_v12 = vld [vmem:[%s5330_s7 + $0x64] ss:$16 sps:$4 sm:$0xff]  }
  0x41   :  { %726 = vmatprep.subr.bf16.mxu1 %v3605_v13  ;;  %v3662_v13 = vld [vmem:[%s5330_s7 + $0x264] ss:$16 sps:$4 sm:$0xff]  }
  0x43   :  { %762 = vmatpush2.bf16.msra.mxu0 %v3588_v10  ;;  %v3651_v10 = vld [vmem:[%s5330_s7 + $0x80] ss:$16 sps:$4 sm:$0xff]  }
  0x44   :  { %763 = vmatprep.subr.bf16.mxu0 %v3596_v11  ;;  %727 = vmatpush2.bf16.msra.mxu1 %v3603_v16  ;;  %v3654_v11 = vld [vmem:[%s5330_s7 + $0x280] ss:$16 sps:$4 sm:$0xff]   ;;  %v3665_v16 = vld [vmem:[%s5330_s7 + $0x44] ss:$16 sps:$4 sm:$0xff]  }
  0x45   :  { %728 = vmatprep.subr.bf16.mxu1 %v3611_v17  ;;  %v3668_v17 = vld [vmem:[%s5330_s7 + $0x244] ss:$16 sps:$4 sm:$0xff]  }
  0x47   :  { %764 = vmatpush2.bf16.msra.mxu0 %v3594_v14  ;;  %v3657_v14 = vld [vmem:[%s5330_s7 + $0x60] ss:$16 sps:$4 sm:$0xff]  }
  0x48   :  { %765 = vmatprep.subr.bf16.mxu0 %v3602_v15  ;;  %729 = vmatpush2.bf16.msra.mxu1 %v3609_v20  ;;  %v3660_v15 = vld [vmem:[%s5330_s7 + $0x260] ss:$16 sps:$4 sm:$0xff]   ;;  %v3671_v20 = vld [vmem:[%s5330_s7 + $0x24] ss:$16 sps:$4 sm:$0xff]  }
  0x49   :  { %730 = vmatprep.subr.bf16.mxu1 %v3617_v21  ;;  %v3674_v21 = vld [vmem:[%s5330_s7 + $0x224] ss:$16 sps:$4 sm:$0xff]  }
  0x4b   :  { %766 = vmatpush2.bf16.msra.mxu0 %v3600_v18  ;;  %v3663_v18 = vld [vmem:[%s5330_s7 + $0x40] ss:$16 sps:$4 sm:$0xff]  }
  0x4c   :  { %767 = vmatprep.subr.bf16.mxu0 %v3608_v19  ;;  %731 = vmatpush2.bf16.msra.mxu1 %v3615_v24  ;;  %v3666_v19 = vld [vmem:[%s5330_s7 + $0x240] ss:$16 sps:$4 sm:$0xff]   ;;  %v3677_v24 = vld [vmem:[%s5330_s7 + $0x4] ss:$16 sps:$4 sm:$0xff]  }
  0x4d   :  { %732 = vmatprep.subr.bf16.mxu1 %v3623_v28  ;;  %v3683_v28 = vld [vmem:[%s5330_s7 + $0x1e4] ss:$16 sps:$4 sm:$0xff]  }
  0x4f   :  { %768 = vmatpush2.bf16.msra.mxu0 %v3606_v22  ;;  %v3669_v22 = vld [vmem:[%s5330_s7 + $0x20] ss:$16 sps:$4 sm:$0xff]  }
  0x50   :  { %769 = vmatprep.subr.bf16.mxu0 %v3614_v23  ;;  %733 = vmatpush2.bf16.msra.mxu1 %v3621_v30  ;;  %v3672_v23 = vld [vmem:[%s5330_s7 + $0x220] ss:$16 sps:$4 sm:$0xff]  }
  0x51   :  { %734 = vmatprep.subr.bf16.mxu1 %v3629_v32  ;;  %v3681_v30 = vld [vmem:[%s5330_s7 + $0x1e0] ss:$16 sps:$4 sm:$0xff]   ;;  %v3689_v32 = vld [vmem:[%s5330_s7 + $0x1c4] ss:$16 sps:$4 sm:$0xff]  }
  0x53   :  { %770 = vmatpush2.bf16.msra.mxu0 %v3612_v25  ;;  %v3680_v25 = vld [vmem:[%s5330_s7 + $0x204] ss:$16 sps:$4 sm:$0xff]  }
  0x54   :  { %771 = vmatprep.subr.bf16.mxu0 %v3620_v26  ;;  %735 = vmatpush2.bf16.msra.mxu1 %v3627_v34  ;;  %v3675_v26 = vld [vmem:[%s5330_s7] ss:$16 sps:$4 sm:$0xff]  }
  0x55   :  { %1610 = vmatprep.subr.bf16.mxu1 %v3635_v36  ;;  %v3687_v34 = vld [vmem:[%s5330_s7 + $0x1c0] ss:$16 sps:$4 sm:$0xff]   ;;  %v3695_v36 = vld [vmem:[%s5330_s7 + $0x1a4] ss:$16 sps:$4 sm:$0xff]  }
  0x57   :  { %772 = vmatpush2.bf16.msra.mxu0 %v3618_v27  ;;  %v3678_v27 = vld [vmem:[%s5330_s7 + $0x200] ss:$16 sps:$4 sm:$0xff]  }
  0x58   :  { %773 = vmatprep.subr.bf16.mxu0 %v3626_v29  ;;  %v3686_v29 = vld [vmem:[%s5330_s7 + $0x3e4] ss:$16 sps:$4 sm:$0xff]  }
  0x5b   :  { %774 = vmatpush2.bf16.msra.mxu0 %v3624_v31  ;;  %v3684_v31 = vld [vmem:[%s5330_s7 + $0x3e0] ss:$16 sps:$4 sm:$0xff]  }
  0x5c   :  { %775 = vmatprep.subr.bf16.mxu0 %v3632_v33  ;;  %v3692_v33 = vld [vmem:[%s5330_s7 + $0x3c4] ss:$16 sps:$4 sm:$0xff]  }
  0x5f   :  { %776 = vmatpush2.bf16.msra.mxu0 %v3630_v35  ;;  %v3690_v35 = vld [vmem:[%s5330_s7 + $0x3c0] ss:$16 sps:$4 sm:$0xff]  }
  0x60   :  { %1651 = vmatprep.subr.bf16.mxu0 %v3638_v37  ;;  %v3698_v37 = vld [vmem:[%s5330_s7 + $0x3a4] ss:$16 sps:$4 sm:$0xff]  }
  0xcf   :  { %v4389_v38 = vpop.f32.mrf.mxu1 }
  0xd1   :  { %v4391_v39 = vpop.f32.mrf.mxu1 }
  0xd3   :  { %v340_v40 = vpop.f32.mrf.mxu1 }
  0xd4   :  { %v3693_v40 = vld [vmem:[%s5330_s7 + $0x1a0] ss:$16 sps:$4 sm:$0xff]  }
  0xd5   :  { %v341_v41 = vpop.f32.mrf.mxu1 }
  0xd6   :  { %v3696_v41 = vld [vmem:[%s5330_s7 + $0x3a0] ss:$16 sps:$4 sm:$0xff]  }
  0xd7   :  { %v4399_v44 = vpop.f32.mrf.mxu1 }
  0xd9   :  { %v4404_v46 = vpop.f32.mrf.mxu1 }
  0xdb   :  { %v381_v48 = vpop.f32.mrf.mxu1 }
  0xdc   :  { %v3699_v48 = vld [vmem:[%s5330_s7 + $0x180] ss:$16 sps:$4 sm:$0xff]  }
  0xdd   :  { %v382_v51 = vpop.f32.mrf.mxu1 }
  0xde   :  { %v3710_v51 = vld [vmem:[%s5330_s7 + $0x364] ss:$16 sps:$4 sm:$0xff]  }
  0xe2   :  { %v189_v50 = vpop.f32.mrf.mxu0 }
  0xe3   :  { %v190_v52 = vadd.f32 %v189_v50, %v68_v47  ;;  %v3704_v47 = vld [vmem:[%s5330_s7 + $0x384] ss:$16 sps:$4 sm:$0xff]  }
  0xe4   :  { %v191_v53 = vpop.f32.mrf.mxu0  ;;  %v3707_v50 = vld [vmem:[%s5330_s7 + $0x164] ss:$16 sps:$4 sm:$0xff]  }
  0xe5   :  { %v192_v54 = vadd.f32 %v191_v53, %v72_v49  ;;  %v196_v55 = vmax.f32 %v190_v52, 0.0  ;;  %v3702_v49 = vld [vmem:[%s5330_s7 + $0x380] ss:$16 sps:$4 sm:$0xff]  }
  0xe6   :  { %v193_v56 = vpop.f32.mrf.mxu0  ;;  %v3705_v52 = vld [vmem:[%s5330_s7 + $0x160] ss:$16 sps:$4 sm:$0xff]  }
  0xe7   :  { %v197_v57 = vmax.f32 %v192_v54, 0.0  ;;  %v198_v62 = vpack.c.bf16 %v196_v55, %v196_v55  ;;  %v3708_v53 = vld [vmem:[%s5330_s7 + $0x360] ss:$16 sps:$4 sm:$0xff]   ;;  %v3713_v54 = vld [vmem:[%s5330_s7 + $0x144] ss:$16 sps:$4 sm:$0xff]  }
  0xe8   :  { %v194_v58 = vpop.f32.mrf.mxu0  ;;  %v3716_v55 = vld [vmem:[%s5330_s7 + $0x344] ss:$16 sps:$4 sm:$0xff]   ;;  %v3711_v56 = vld [vmem:[%s5330_s7 + $0x140] ss:$16 sps:$4 sm:$0xff]  }
  0xe9   :  { %v199_v59 = vpack.c.bf16 %v197_v57, %v197_v57  ;;  %v3714_v57 = vld [vmem:[%s5330_s7 + $0x340] ss:$16 sps:$4 sm:$0xff]   ;;  %v3719_v58 = vld [vmem:[%s5330_s7 + $0x124] ss:$16 sps:$4 sm:$0xff]  }
  0xeb   :  { %736 = vmatprep.mubr.bf16.mxu1 %v199_v59  ;;  %777 = vmatprep.mubr.bf16.mxu0 %v199_v59  ;;  %v3722_v59 = vld [vmem:[%s5330_s7 + $0x324] ss:$16 sps:$4 sm:$0xff]  }
  0xec   :  { %737 = vmatmul.mubr.bf16.vlgmr.msra.gmra.mxu1 %v198_v62  ;;  %778 = vmatmul.mubr.bf16.vlgmr.msra.gmra.mxu0 %v198_v62  ;;  %v3725_v62 = vld [vmem:[%s5330_s7 + $0x104] ss:$16 sps:$4 sm:$0xff]  }
  0xed   :  { %1611 = vmatpush1.bf16.msra.mxu1 %v3633_v60  ;;  %1652 = vmatpush1.bf16.msra.mxu0 %v3636_v61  ;;  %v3717_v60 = vld [vmem:[%s5330_s7 + $0x120] ss:$16 sps:$4 sm:$0xff]  }
  0xee   :  { %1612 = vmatprep.subr.bf16.mxu1 %v3641_v63  ;;  %1653 = vmatprep.subr.bf16.mxu0 %v3644_v0  ;;  %v3720_v61 = vld [vmem:[%s5330_s7 + $0x320] ss:$16 sps:$4 sm:$0xff]   ;;  %v3728_v63 = vld [vmem:[%s5330_s7 + $0x304] ss:$16 sps:$4 sm:$0xff]  }
  0xef   :  { %v3723_v0 = vld [vmem:[%s5330_s7 + $0x100] ss:$16 sps:$4 sm:$0xff]  }
  0xf1   :  { %1613 = vmatpush1.bf16.msra.mxu1 %v3639_v1  ;;  %1654 = vmatpush1.bf16.msra.mxu0 %v3642_v2  ;;  %v3726_v1 = vld [vmem:[%s5330_s7 + $0x300] ss:$16 sps:$4 sm:$0xff]   ;;  %v3731_v2 = vld [vmem:[%s5330_s7 + $0xec] ss:$16 sps:$4 sm:$0xff]  }
  0xf2   :  { %1614 = vmatprep.subr.bf16.mxu1 %v3647_v3  ;;  %1655 = vmatprep.subr.bf16.mxu0 %v3650_v4  ;;  %v3734_v3 = vld [vmem:[%s5330_s7 + $0x2ec] ss:$16 sps:$4 sm:$0xff]   ;;  %v786_v4 = vld [vmem:[%s5333_s6] sm:$0xf] }
  0xf5   :  { %1615 = vmatpush1.bf16.msra.mxu1 %v3645_v5  ;;  %1656 = vmatpush1.bf16.msra.mxu0 %v3648_v6  ;;  %v4604_v5 = vsub.s32 2, %v4138_v9  ;;  %v4607_v6 = vsub.s32 3, %v4138_v9 }
  0xf6   :  { %1616 = vmatprep.subr.bf16.mxu1 %v3653_v7  ;;  %1657 = vmatprep.subr.bf16.mxu0 %v3656_v8  ;;  %v791_v7 = vrot.slane %v786_v4, %v4394_v42 }
  0xf7   :  { %v799_v8 = vrot.slane %v786_v4, %v4604_v5 }
  0xf9   :  { %1617 = vmatpush1.bf16.msra.mxu1 %v3651_v10  ;;  %1658 = vmatpush1.bf16.msra.mxu0 %v3654_v11 }
  0xfa   :  { %1618 = vmatprep.subr.bf16.mxu1 %v3659_v12  ;;  %1659 = vmatprep.subr.bf16.mxu0 %v3662_v13 }
  0xfd   :  { %1619 = vmatpush1.bf16.msra.mxu1 %v3657_v14  ;;  %1660 = vmatpush1.bf16.msra.mxu0 %v3660_v15  ;;  %v795_v14 = vrot.slane %v786_v4, %v4402_v45  ;;  %v803_v15 = vrot.slane %v786_v4, %v4607_v6  ;;  %v3782_v4 = vld [vmem:[%s5330_s7 + $0x3ec] ss:$16 sps:$4 sm:$0xff]  }
  0xfe   :  { %1620 = vmatprep.subr.bf16.mxu1 %v3665_v16  ;;  %1661 = vmatprep.subr.bf16.mxu0 %v3668_v17 }
 0x101   :  { %1621 = vmatpush1.bf16.msra.mxu1 %v3663_v18  ;;  %1662 = vmatpush1.bf16.msra.mxu0 %v3666_v19 }
 0x102   :  { %1622 = vmatprep.subr.bf16.mxu1 %v3671_v20  ;;  %1663 = vmatprep.subr.bf16.mxu0 %v3674_v21 }
 0x105   :  { %1623 = vmatpush1.bf16.msra.mxu1 %v3669_v22  ;;  %1664 = vmatpush1.bf16.msra.mxu0 %v3672_v23 }
 0x106   :  { %1624 = vmatprep.subr.bf16.mxu1 %v3677_v24  ;;  %1665 = vmatprep.subr.bf16.mxu0 %v3680_v25 }
 0x109   :  { %1625 = vmatpush1.bf16.msra.mxu1 %v3675_v26  ;;  %1666 = vmatpush1.bf16.msra.mxu0 %v3678_v27 }
 0x10a   :  { %1626 = vmatprep.subr.bf16.mxu1 %v3683_v28  ;;  %1667 = vmatprep.subr.bf16.mxu0 %v3686_v29 }
 0x10d   :  { %1627 = vmatpush2.bf16.msra.mxu1 %v3681_v30  ;;  %1668 = vmatpush2.bf16.msra.mxu0 %v3684_v31  ;;  %v3729_v31 = vld [vmem:[%s5330_s7 + $0xe8] ss:$16 sps:$4 sm:$0xff]  }
 0x10e   :  { %1628 = vmatprep.subr.bf16.mxu1 %v3689_v32  ;;  %1669 = vmatprep.subr.bf16.mxu0 %v3692_v33  ;;  %v3737_v33 = vld [vmem:[%s5330_s7 + $0xcc] ss:$16 sps:$4 sm:$0xff]  }
 0x111   :  { %1629 = vmatpush2.bf16.msra.mxu1 %v3687_v34  ;;  %1670 = vmatpush2.bf16.msra.mxu0 %v3690_v35  ;;  %v3740_v34 = vld [vmem:[%s5330_s7 + $0x2cc] ss:$16 sps:$4 sm:$0xff]   ;;  %v3735_v35 = vld [vmem:[%s5330_s7 + $0xc8] ss:$16 sps:$4 sm:$0xff]  }
 0x112   :  { %1630 = vmatprep.subr.bf16.mxu1 %v3695_v36  ;;  %1671 = vmatprep.subr.bf16.mxu0 %v3698_v37  ;;  %v3738_v36 = vld [vmem:[%s5330_s7 + $0x2c8] ss:$16 sps:$4 sm:$0xff]   ;;  %v3743_v37 = vld [vmem:[%s5330_s7 + $0xac] ss:$16 sps:$4 sm:$0xff]  }
 0x115   :  { %1631 = vmatpush2.bf16.msra.mxu1 %v3693_v40  ;;  %1672 = vmatpush2.bf16.msra.mxu0 %v3696_v41  ;;  %v3746_v40 = vld [vmem:[%s5330_s7 + $0x2ac] ss:$16 sps:$4 sm:$0xff]   ;;  %v3741_v41 = vld [vmem:[%s5330_s7 + $0xa8] ss:$16 sps:$4 sm:$0xff]  }
 0x116   :  { %1632 = vmatprep.subr.bf16.mxu1 %v3701_v43  ;;  %1673 = vmatprep.subr.bf16.mxu0 %v3704_v47  ;;  %v3744_v43 = vld [vmem:[%s5330_s7 + $0x2a8] ss:$16 sps:$4 sm:$0xff]   ;;  %v3749_v47 = vld [vmem:[%s5330_s7 + $0x8c] ss:$16 sps:$4 sm:$0xff]  }
 0x119   :  { %1633 = vmatpush2.bf16.msra.mxu1 %v3699_v48  ;;  %1674 = vmatpush2.bf16.msra.mxu0 %v3702_v49  ;;  %v3752_v48 = vld [vmem:[%s5330_s7 + $0x28c] ss:$16 sps:$4 sm:$0xff]   ;;  %v3747_v49 = vld [vmem:[%s5330_s7 + $0x88] ss:$16 sps:$4 sm:$0xff]  }
 0x11a   :  { %1634 = vmatprep.subr.bf16.mxu1 %v3707_v50  ;;  %1675 = vmatprep.subr.bf16.mxu0 %v3710_v51  ;;  %v3750_v50 = vld [vmem:[%s5330_s7 + $0x288] ss:$16 sps:$4 sm:$0xff]   ;;  %v3755_v51 = vld [vmem:[%s5330_s7 + $0x6c] ss:$16 sps:$4 sm:$0xff]  }
 0x11d   :  { %1635 = vmatpush2.bf16.msra.mxu1 %v3705_v52  ;;  %1676 = vmatpush2.bf16.msra.mxu0 %v3708_v53  ;;  %v3758_v52 = vld [vmem:[%s5330_s7 + $0x26c] ss:$16 sps:$4 sm:$0xff]   ;;  %v3753_v53 = vld [vmem:[%s5330_s7 + $0x68] ss:$16 sps:$4 sm:$0xff]  }
 0x11e   :  { %1636 = vmatprep.subr.bf16.mxu1 %v3713_v54  ;;  %1677 = vmatprep.subr.bf16.mxu0 %v3716_v55  ;;  %v3756_v54 = vld [vmem:[%s5330_s7 + $0x268] ss:$16 sps:$4 sm:$0xff]   ;;  %v3761_v55 = vld [vmem:[%s5330_s7 + $0x4c] ss:$16 sps:$4 sm:$0xff]  }
 0x121   :  { %1637 = vmatpush2.bf16.msra.mxu1 %v3711_v56  ;;  %1678 = vmatpush2.bf16.msra.mxu0 %v3714_v57  ;;  %v3764_v56 = vld [vmem:[%s5330_s7 + $0x24c] ss:$16 sps:$4 sm:$0xff]   ;;  %v3759_v57 = vld [vmem:[%s5330_s7 + $0x48] ss:$16 sps:$4 sm:$0xff]  }
 0x122   :  { %1638 = vmatprep.subr.bf16.mxu1 %v3719_v58  ;;  %1679 = vmatprep.subr.bf16.mxu0 %v3722_v59  ;;  %v3762_v58 = vld [vmem:[%s5330_s7 + $0x248] ss:$16 sps:$4 sm:$0xff]   ;;  %v3767_v59 = vld [vmem:[%s5330_s7 + $0x2c] ss:$16 sps:$4 sm:$0xff]  }
 0x125   :  { %1639 = vmatpush2.bf16.msra.mxu1 %v3717_v60  ;;  %1680 = vmatpush2.bf16.msra.mxu0 %v3720_v61  ;;  %v3770_v60 = vld [vmem:[%s5330_s7 + $0x22c] ss:$16 sps:$4 sm:$0xff]   ;;  %v3765_v61 = vld [vmem:[%s5330_s7 + $0x28] ss:$16 sps:$4 sm:$0xff]  }
 0x126   :  { %1640 = vmatprep.subr.bf16.mxu1 %v3725_v62  ;;  %1681 = vmatprep.subr.bf16.mxu0 %v3728_v63  ;;  %v3768_v62 = vld [vmem:[%s5330_s7 + $0x228] ss:$16 sps:$4 sm:$0xff]   ;;  %v3773_v63 = vld [vmem:[%s5330_s7 + $0xc] ss:$16 sps:$4 sm:$0xff]  }
 0x129   :  { %1641 = vmatpush2.bf16.msra.mxu1 %v3723_v0  ;;  %1682 = vmatpush2.bf16.msra.mxu0 %v3726_v1  ;;  %v3776_v0 = vld [vmem:[%s5330_s7 + $0x20c] ss:$16 sps:$4 sm:$0xff]   ;;  %v3771_v1 = vld [vmem:[%s5330_s7 + $0x8] ss:$16 sps:$4 sm:$0xff]  }
 0x12a   :  { %1692 = vmatprep.subr.bf16.mxu1 %v3731_v2  ;;  %1733 = vmatprep.subr.bf16.mxu0 %v3734_v3  ;;  %v3774_v2 = vld [vmem:[%s5330_s7 + $0x208] ss:$16 sps:$4 sm:$0xff]   ;;  %v3779_v3 = vld [vmem:[%s5330_s7 + $0x1ec] ss:$16 sps:$4 sm:$0xff]  }
 0x1ac   :  { %v738_v10 = vpop.f32.mrf.mxu1  ;;  %v779_v11 = vpop.f32.mrf.mxu0 }
 0x1ad   :  { %v739_v12 = vadd.f32 %v738_v10, %v4389_v38  ;;  %v780_v13 = vadd.f32 %v779_v11, %v4399_v44  ;;  %v3785_v10 = vld [vmem:[%s5330_s7 + $0x1cc] ss:$16 sps:$4 sm:$0xff]  }
 0x1ae   :  { %v740_v16 = vpop.f32.mrf.mxu1  ;;  %v781_v17 = vpop.f32.mrf.mxu0  ;;  %v3788_v11 = vld [vmem:[%s5330_s7 + $0x3cc] ss:$16 sps:$4 sm:$0xff]  }
 0x1af   :  { %v808_v18 = vadd.f32 %v791_v7, %v739_v12  ;;  %v810_v19 = vadd.f32 %v799_v8, %v780_v13  ;;  %v741_v9 = vadd.f32 %v740_v16, %v4391_v39  ;;  %v782_v20 = vadd.f32 %v781_v17, %v4404_v46  ;;  %v3732_v39 = vld [vmem:[%s5330_s7 + $0x2e8] ss:$16 sps:$4 sm:$0xff]  }
 0x1b0   :  { %v742_v21 = vpop.f32.mrf.mxu1  ;;  %v783_v22 = vpop.f32.mrf.mxu0  ;;  %v3777_v7 = vld [vmem:[%s5330_s7 + $0x1e8] ss:$16 sps:$4 sm:$0xff]  }
 0x1b1   :  { %v809_v23 = vadd.f32 %v795_v14, %v741_v9  ;;  %v811_v24 = vadd.f32 %v803_v15, %v782_v20  ;;  %v812_v25 = vmax.f32 %v808_v18, 0.0  ;;  %v814_v38 = vmax.f32 %v810_v19, 0.0  ;;  %v3780_v8 = vld [vmem:[%s5330_s7 + $0x3e8] ss:$16 sps:$4 sm:$0xff]   ;;  %v3791_v14 = vld [vmem:[%s5330_s7 + $0x1ac] ss:$16 sps:$4 sm:$0xff]  }
 0x1b2   :  { %v743_v26 = vpop.f32.mrf.mxu1  ;;  %v784_v44 = vpop.f32.mrf.mxu0  ;;  %v3783_v12 = vld [vmem:[%s5330_s7 + $0x1c8] ss:$16 sps:$4 sm:$0xff]   ;;  %v3794_v15 = vld [vmem:[%s5330_s7 + $0x3ac] ss:$16 sps:$4 sm:$0xff]  }
 0x1b3   :  { %v813_v27 = vmax.f32 %v809_v23, 0.0  ;;  %v815_v28 = vmax.f32 %v811_v24, 0.0  ;;  %v4623_v46 = vpack.c.bf16 %v812_v25, %v812_v25  ;;  %v4625_v32 = vpack.c.bf16 %v814_v38, %v814_v38  ;;  %v3786_v13 = vld [vmem:[%s5330_s7 + $0x3c8] ss:$16 sps:$4 sm:$0xff]   ;;  %v3797_v18 = vld [vmem:[%s5330_s7 + $0x18c] ss:$16 sps:$4 sm:$0xff]  }
 0x1b4   :  { %v3789_v16 = vld [vmem:[%s5330_s7 + $0x1a8] ss:$16 sps:$4 sm:$0xff]   ;;  %v3800_v19 = vld [vmem:[%s5330_s7 + $0x38c] ss:$16 sps:$4 sm:$0xff]  }
 0x1b5   :  { %v817_v29 = vpack.c.bf16 %v813_v27, %v813_v27  ;;  %v819_v30 = vpack.c.bf16 %v815_v28, %v815_v28  ;;  %v3792_v17 = vld [vmem:[%s5330_s7 + $0x3a8] ss:$16 sps:$4 sm:$0xff]   ;;  %v3803_v21 = vld [vmem:[%s5330_s7 + $0x16c] ss:$16 sps:$4 sm:$0xff]  }
 0x1b6   :  { %v3795_v9 = vld [vmem:[%s5330_s7 + $0x188] ss:$16 sps:$4 sm:$0xff]   ;;  %v3806_v22 = vld [vmem:[%s5330_s7 + $0x36c] ss:$16 sps:$4 sm:$0xff]  }
 0x1b7   :  { %1642 = vmatprep.mubr.bf16.mxu1 %v817_v29  ;;  %1683 = vmatprep.mubr.bf16.mxu0 %v819_v30  ;;  %v3798_v20 = vld [vmem:[%s5330_s7 + $0x388] ss:$16 sps:$4 sm:$0xff]   ;;  %v3809_v25 = vld [vmem:[%s5330_s7 + $0x14c] ss:$16 sps:$4 sm:$0xff]  }
 0x1b8   :  { %1643 = vmatmul.mubr.bf16.vlgmr.msra.gmra.mxu1 %v4623_v46  ;;  %1684 = vmatmul.mubr.bf16.vlgmr.msra.gmra.mxu0 %v4625_v32  ;;  %v3801_v23 = vld [vmem:[%s5330_s7 + $0x168] ss:$16 sps:$4 sm:$0xff]   ;;  %v3812_v38 = vld [vmem:[%s5330_s7 + $0x34c] ss:$16 sps:$4 sm:$0xff]  }
 0x1b9   :  { %1693 = vmatpush1.bf16.msra.mxu1 %v3729_v31  ;;  %1734 = vmatpush1.bf16.msra.mxu0 %v3732_v39  ;;  %v3804_v24 = vld [vmem:[%s5330_s7 + $0x368] ss:$16 sps:$4 sm:$0xff]   ;;  %v3815_v27 = vld [vmem:[%s5330_s7 + $0x12c] ss:$16 sps:$4 sm:$0xff]  }
 0x1ba   :  { %1724 = vmatprep.mubr.bf16.mxu1 %v817_v29  ;;  %1765 = vmatprep.mubr.bf16.mxu0 %v819_v30  ;;  %v3807_v26 = vld [vmem:[%s5330_s7 + $0x148] ss:$16 sps:$4 sm:$0xff]   ;;  %v3818_v28 = vld [vmem:[%s5330_s7 + $0x32c] ss:$16 sps:$4 sm:$0xff]  }
 0x1bb   :  { %1694 = vmatprep.subr.bf16.mxu1 %v3737_v33  ;;  %1735 = vmatprep.subr.bf16.mxu0 %v3740_v34  ;;  %v3810_v44 = vld [vmem:[%s5330_s7 + $0x348] ss:$16 sps:$4 sm:$0xff]   ;;  %v3821_v31 = vld [vmem:[%s5330_s7 + $0x10c] ss:$16 sps:$4 sm:$0xff]  }
 0x1bc   :  { %v3813_v29 = vld [vmem:[%s5330_s7 + $0x128] ss:$16 sps:$4 sm:$0xff]   ;;  %v3824_v39 = vld [vmem:[%s5330_s7 + $0x30c] ss:$16 sps:$4 sm:$0xff]  }
 0x1bd   :  { %1695 = vmatpush1.bf16.msra.mxu1 %v3735_v35  ;;  %1736 = vmatpush1.bf16.msra.mxu0 %v3738_v36  ;;  %v3816_v30 = vld [vmem:[%s5330_s7 + $0x328] ss:$16 sps:$4 sm:$0xff]   ;;  %v3827_v35 = vld [vmem:[%s5332_s9 + $0xe4] ss:$16 sps:$4 sm:$0xff]   ;;  %v3825_v36 = vld [vmem:[%s5332_s9 + $0xe0] ss:$16 sps:$4 sm:$0xff]  }
 0x1be   :  { %1696 = vmatprep.subr.bf16.mxu1 %v3743_v37  ;;  %1737 = vmatprep.subr.bf16.mxu0 %v3746_v40  ;;  %v3819_v33 = vld [vmem:[%s5330_s7 + $0x108] ss:$16 sps:$4 sm:$0xff]   ;;  %v3830_v37 = vld [vmem:[%s5332_s9 + $0xc4] ss:$16 sps:$4 sm:$0xff]   ;;  %v3828_v40 = vld [vmem:[%s5332_s9 + $0xc0] ss:$16 sps:$4 sm:$0xff]  }
 0x1bf   :  { %v3822_v34 = vld [vmem:[%s5330_s7 + $0x308] ss:$16 sps:$4 sm:$0xff]  }
 0x1c1   :  { %1697 = vmatpush1.bf16.msra.mxu1 %v3741_v41  ;;  %1738 = vmatpush1.bf16.msra.mxu0 %v3744_v43  ;;  %v3833_v41 = vld [vmem:[%s5332_s9 + $0xa4] ss:$16 sps:$4 sm:$0xff]   ;;  %v3831_v43 = vld [vmem:[%s5332_s9 + $0xa0] ss:$16 sps:$4 sm:$0xff]  }
 0x1c2   :  { %1698 = vmatprep.subr.bf16.mxu1 %v3749_v47  ;;  %1739 = vmatprep.subr.bf16.mxu0 %v3752_v48  ;;  %v3873_v47 = vld [vmem:[%s5332_s9 + $0x2e0] ss:$16 sps:$4 sm:$0xff]   ;;  %v3875_v48 = vld [vmem:[%s5332_s9 + $0x2e4] ss:$16 sps:$4 sm:$0xff]  }
 0x1c5   :  { %1699 = vmatpush1.bf16.msra.mxu1 %v3747_v49  ;;  %1740 = vmatpush1.bf16.msra.mxu0 %v3750_v50  ;;  %v3839_v49 = vld [vmem:[%s5332_s9 + $0x64] ss:$16 sps:$4 sm:$0xff]   ;;  %v3837_v50 = vld [vmem:[%s5332_s9 + $0x60] ss:$16 sps:$4 sm:$0xff]  }
 0x1c6   :  { %1700 = vmatprep.subr.bf16.mxu1 %v3755_v51  ;;  %1741 = vmatprep.subr.bf16.mxu0 %v3758_v52  ;;  %v3879_v51 = vld [vmem:[%s5332_s9 + $0x2c0] ss:$16 sps:$4 sm:$0xff]   ;;  %v3881_v52 = vld [vmem:[%s5332_s9 + $0x2c4] ss:$16 sps:$4 sm:$0xff]  }
 0x1c9   :  { %1701 = vmatpush1.bf16.msra.mxu1 %v3753_v53  ;;  %1742 = vmatpush1.bf16.msra.mxu0 %v3756_v54  ;;  %v3842_v53 = vld [vmem:[%s5332_s9 + $0x44] ss:$16 sps:$4 sm:$0xff]   ;;  %v3840_v54 = vld [vmem:[%s5332_s9 + $0x40] ss:$16 sps:$4 sm:$0xff]  }
 0x1ca   :  { %1702 = vmatprep.subr.bf16.mxu1 %v3761_v55  ;;  %1743 = vmatprep.subr.bf16.mxu0 %v3764_v56  ;;  %v3885_v55 = vld [vmem:[%s5332_s9 + $0x2a0] ss:$16 sps:$4 sm:$0xff]   ;;  %v3887_v56 = vld [vmem:[%s5332_s9 + $0x2a4] ss:$16 sps:$4 sm:$0xff]  }
 0x1cd   :  { %1703 = vmatpush1.bf16.msra.mxu1 %v3759_v57  ;;  %1744 = vmatpush1.bf16.msra.mxu0 %v3762_v58  ;;  %v3845_v57 = vld [vmem:[%s5332_s9 + $0x24] ss:$16 sps:$4 sm:$0xff]   ;;  %v3843_v58 = vld [vmem:[%s5332_s9 + $0x20] ss:$16 sps:$4 sm:$0xff]  }
 0x1ce   :  { %1704 = vmatprep.subr.bf16.mxu1 %v3767_v59  ;;  %1745 = vmatprep.subr.bf16.mxu0 %v3770_v60  ;;  %v3891_v59 = vld [vmem:[%s5332_s9 + $0x280] ss:$16 sps:$4 sm:$0xff]   ;;  %v3893_v60 = vld [vmem:[%s5332_s9 + $0x284] ss:$16 sps:$4 sm:$0xff]  }
 0x1d1   :  { %1705 = vmatpush1.bf16.msra.mxu1 %v3765_v61  ;;  %1746 = vmatpush1.bf16.msra.mxu0 %v3768_v62  ;;  %v3848_v61 = vld [vmem:[%s5332_s9 + $0x4] ss:$16 sps:$4 sm:$0xff]   ;;  %v3846_v62 = vld [vmem:[%s5332_s9] ss:$16 sps:$4 sm:$0xff]  }
 0x1d2   :  { %1706 = vmatprep.subr.bf16.mxu1 %v3773_v63  ;;  %1747 = vmatprep.subr.bf16.mxu0 %v3776_v0  ;;  %v3897_v63 = vld [vmem:[%s5332_s9 + $0x260] ss:$16 sps:$4 sm:$0xff]   ;;  %v3899_v0 = vld [vmem:[%s5332_s9 + $0x264] ss:$16 sps:$4 sm:$0xff]  }
 0x1d5   :  { %1707 = vmatpush1.bf16.msra.mxu1 %v3771_v1  ;;  %1748 = vmatpush1.bf16.msra.mxu0 %v3774_v2  ;;  %v3851_v1 = vld [vmem:[%s5332_s9 + $0x1e4] ss:$16 sps:$4 sm:$0xff]   ;;  %v3849_v2 = vld [vmem:[%s5332_s9 + $0x1e0] ss:$16 sps:$4 sm:$0xff]  }
 0x1d6   :  { %1708 = vmatprep.subr.bf16.mxu1 %v3779_v3  ;;  %1749 = vmatprep.subr.bf16.mxu0 %v3782_v4  ;;  %v3903_v3 = vld [vmem:[%s5332_s9 + $0x240] ss:$16 sps:$4 sm:$0xff]   ;;  %v3905_v4 = vld [vmem:[%s5332_s9 + $0x244] ss:$16 sps:$4 sm:$0xff]  }
 0x1d9   :  { %1709 = vmatpush2.bf16.msra.mxu1 %v3777_v7  ;;  %1750 = vmatpush2.bf16.msra.mxu0 %v3780_v8  ;;  %v3854_v7 = vld [vmem:[%s5332_s9 + $0x1c4] ss:$16 sps:$4 sm:$0xff]   ;;  %v3852_v8 = vld [vmem:[%s5332_s9 + $0x1c0] ss:$16 sps:$4 sm:$0xff]  }
 0x1da   :  { %1710 = vmatprep.subr.bf16.mxu1 %v3785_v10  ;;  %1751 = vmatprep.subr.bf16.mxu0 %v3788_v11  ;;  %v3909_v10 = vld [vmem:[%s5332_s9 + $0x220] ss:$16 sps:$4 sm:$0xff]   ;;  %v3911_v11 = vld [vmem:[%s5332_s9 + $0x224] ss:$16 sps:$4 sm:$0xff]  }
 0x1dd   :  { %1711 = vmatpush2.bf16.msra.mxu1 %v3783_v12  ;;  %1752 = vmatpush2.bf16.msra.mxu0 %v3786_v13  ;;  %v3857_v12 = vld [vmem:[%s5332_s9 + $0x1a4] ss:$16 sps:$4 sm:$0xff]   ;;  %v3855_v13 = vld [vmem:[%s5332_s9 + $0x1a0] ss:$16 sps:$4 sm:$0xff]  }
 0x1de   :  { %1712 = vmatprep.subr.bf16.mxu1 %v3791_v14  ;;  %1753 = vmatprep.subr.bf16.mxu0 %v3794_v15  ;;  %v3915_v14 = vld [vmem:[%s5332_s9 + $0x200] ss:$16 sps:$4 sm:$0xff]   ;;  %v3917_v15 = vld [vmem:[%s5332_s9 + $0x204] ss:$16 sps:$4 sm:$0xff]  }
 0x1e1   :  { %1713 = vmatpush2.bf16.msra.mxu1 %v3789_v16  ;;  %1754 = vmatpush2.bf16.msra.mxu0 %v3792_v17  ;;  %v3860_v16 = vld [vmem:[%s5332_s9 + $0x184] ss:$16 sps:$4 sm:$0xff]   ;;  %v3858_v17 = vld [vmem:[%s5332_s9 + $0x180] ss:$16 sps:$4 sm:$0xff]  }
 0x1e2   :  { %1714 = vmatprep.subr.bf16.mxu1 %v3797_v18  ;;  %1755 = vmatprep.subr.bf16.mxu0 %v3800_v19  ;;  %v3921_v18 = vld [vmem:[%s5332_s9 + $0x3e0] ss:$16 sps:$4 sm:$0xff]   ;;  %v3923_v19 = vld [vmem:[%s5332_s9 + $0x3e4] ss:$16 sps:$4 sm:$0xff]  }
 0x1e5   :  { %1715 = vmatpush2.bf16.msra.mxu1 %v3795_v9  ;;  %1756 = vmatpush2.bf16.msra.mxu0 %v3798_v20  ;;  %v3863_v9 = vld [vmem:[%s5332_s9 + $0x164] ss:$16 sps:$4 sm:$0xff]   ;;  %v3861_v20 = vld [vmem:[%s5332_s9 + $0x160] ss:$16 sps:$4 sm:$0xff]  }
 0x1e6   :  { %1716 = vmatprep.subr.bf16.mxu1 %v3803_v21  ;;  %1757 = vmatprep.subr.bf16.mxu0 %v3806_v22  ;;  %v3927_v21 = vld [vmem:[%s5332_s9 + $0x3c0] ss:$16 sps:$4 sm:$0xff]   ;;  %v3929_v22 = vld [vmem:[%s5332_s9 + $0x3c4] ss:$16 sps:$4 sm:$0xff]  }
 0x1e9   :  { %1717 = vmatpush2.bf16.msra.mxu1 %v3801_v23  ;;  %1758 = vmatpush2.bf16.msra.mxu0 %v3804_v24  ;;  %v3866_v23 = vld [vmem:[%s5332_s9 + $0x144] ss:$16 sps:$4 sm:$0xff]   ;;  %v3864_v24 = vld [vmem:[%s5332_s9 + $0x140] ss:$16 sps:$4 sm:$0xff]  }
 0x1ea   :  { %1718 = vmatprep.subr.bf16.mxu1 %v3809_v25  ;;  %1759 = vmatprep.subr.bf16.mxu0 %v3812_v38  ;;  %v3933_v25 = vld [vmem:[%s5332_s9 + $0x3a0] ss:$16 sps:$4 sm:$0xff]   ;;  %v3935_v38 = vld [vmem:[%s5332_s9 + $0x3a4] ss:$16 sps:$4 sm:$0xff]  }
 0x1ed   :  { %1719 = vmatpush2.bf16.msra.mxu1 %v3807_v26  ;;  %1760 = vmatpush2.bf16.msra.mxu0 %v3810_v44  ;;  %v3869_v26 = vld [vmem:[%s5332_s9 + $0x124] ss:$16 sps:$4 sm:$0xff]   ;;  %v3867_v44 = vld [vmem:[%s5332_s9 + $0x120] ss:$16 sps:$4 sm:$0xff]  }
 0x1ee   :  { %1720 = vmatprep.subr.bf16.mxu1 %v3815_v27  ;;  %1761 = vmatprep.subr.bf16.mxu0 %v3818_v28  ;;  %v3939_v27 = vld [vmem:[%s5332_s9 + $0x380] ss:$16 sps:$4 sm:$0xff]   ;;  %v3941_v28 = vld [vmem:[%s5332_s9 + $0x384] ss:$16 sps:$4 sm:$0xff]  }
 0x1f1   :  { %1721 = vmatpush2.bf16.msra.mxu1 %v3813_v29  ;;  %1762 = vmatpush2.bf16.msra.mxu0 %v3816_v30  ;;  %v3872_v29 = vld [vmem:[%s5332_s9 + $0x104] ss:$16 sps:$4 sm:$0xff]   ;;  %v3870_v30 = vld [vmem:[%s5332_s9 + $0x100] ss:$16 sps:$4 sm:$0xff]  }
 0x1f2   :  { %1722 = vmatprep.subr.bf16.mxu1 %v3821_v31  ;;  %1763 = vmatprep.subr.bf16.mxu0 %v3824_v39  ;;  %v3945_v31 = vld [vmem:[%s5332_s9 + $0x360] ss:$16 sps:$4 sm:$0xff]   ;;  %v3947_v39 = vld [vmem:[%s5332_s9 + $0x364] ss:$16 sps:$4 sm:$0xff]  }
 0x1f5   :  { %1723 = vmatpush2.bf16.msra.mxu1 %v3819_v33  ;;  %1764 = vmatpush2.bf16.msra.mxu0 %v3822_v34  ;;  %v3878_v33 = vld [vmem:[%s5332_s9 + $0xec] ss:$16 sps:$4 sm:$0xff]   ;;  %v3951_v34 = vld [vmem:[%s5332_s9 + $0x340] ss:$16 sps:$4 sm:$0xff]  }
 0x1f6   :  { %2572 = vmatprep.subr.bf16.mxu1 %v3827_v35  ;;  %2613 = vmatprep.subr.bf16.mxu0 %v3875_v48  ;;  %v3953_v35 = vld [vmem:[%s5332_s9 + $0x344] ss:$16 sps:$4 sm:$0xff]  }
 0x1f8   :  { %1725 = vmatmul.mubr.bf16.vlgmr.msra.gmra.mxu1 %v4623_v46  ;;  %1766 = vmatmul.mubr.bf16.vlgmr.msra.gmra.mxu0 %v4625_v32  ;;  %v3836_v46 = vld [vmem:[%s5332_s9 + $0x84] ss:$16 sps:$4 sm:$0xff]   ;;  %v3834_v32 = vld [vmem:[%s5332_s9 + $0x80] ss:$16 sps:$4 sm:$0xff]  }
 0x1f9   :  { %2573 = vmatpush1.bf16.msra.mxu1 %v3825_v36  ;;  %2614 = vmatpush1.bf16.msra.mxu0 %v3873_v47  ;;  %v3959_v36 = vld [vmem:[%s5332_s9 + $0x324] ss:$16 sps:$4 sm:$0xff]  }
 0x1fa   :  { %2574 = vmatprep.subr.bf16.mxu1 %v3830_v37  ;;  %2615 = vmatprep.subr.bf16.mxu0 %v3881_v52  ;;  %v3957_v37 = vld [vmem:[%s5332_s9 + $0x320] ss:$16 sps:$4 sm:$0xff]  }
 0x1fd   :  { %2575 = vmatpush1.bf16.msra.mxu1 %v3828_v40  ;;  %2616 = vmatpush1.bf16.msra.mxu0 %v3879_v51  ;;  %v3965_v40 = vld [vmem:[%s5332_s9 + $0x304] ss:$16 sps:$4 sm:$0xff]  }
 0x1fe   :  { %2576 = vmatprep.subr.bf16.mxu1 %v3833_v41  ;;  %2617 = vmatprep.subr.bf16.mxu0 %v3887_v56  ;;  %v3963_v41 = vld [vmem:[%s5332_s9 + $0x300] ss:$16 sps:$4 sm:$0xff]  }
 0x201   :  { %2577 = vmatpush1.bf16.msra.mxu1 %v3831_v43  ;;  %2618 = vmatpush1.bf16.msra.mxu0 %v3885_v55  ;;  %v3971_v43 = vld [vmem:[%s5332_s9 + $0x2ec] ss:$16 sps:$4 sm:$0xff]  }
 0x202   :  { %2578 = vmatprep.subr.bf16.mxu1 %v3836_v46  ;;  %2619 = vmatprep.subr.bf16.mxu0 %v3893_v60  ;;  %v5012_v46 = vld [vmem:[%s5334_s8] sm:$0xf] }
 0x203   :  { %v957_v47 = vrot.slane %v5012_v46, %v4402_v45 }
 0x205   :  { %2579 = vmatpush1.bf16.msra.mxu1 %v3834_v32  ;;  %2620 = vmatpush1.bf16.msra.mxu0 %v3891_v59  ;;  %v953_v32 = vrot.slane %v5012_v46, %v4394_v42 }
 0x206   :  { %2580 = vmatprep.subr.bf16.mxu1 %v3839_v49  ;;  %2621 = vmatprep.subr.bf16.mxu0 %v3899_v0 }
 0x209   :  { %2581 = vmatpush1.bf16.msra.mxu1 %v3837_v50  ;;  %2622 = vmatpush1.bf16.msra.mxu0 %v3897_v63  ;;  %v3876_v63 = vld [vmem:[%s5332_s9 + $0xe8] ss:$16 sps:$4 sm:$0xff]  }
 0x20a   :  { %2582 = vmatprep.subr.bf16.mxu1 %v3842_v53  ;;  %2623 = vmatprep.subr.bf16.mxu0 %v3905_v4  ;;  %v3888_v4 = vld [vmem:[%s5332_s9 + $0xa8] ss:$16 sps:$4 sm:$0xff]  }
 0x20d   :  { %2583 = vmatpush1.bf16.msra.mxu1 %v3840_v54  ;;  %2624 = vmatpush1.bf16.msra.mxu0 %v3903_v3  ;;  %v3890_v3 = vld [vmem:[%s5332_s9 + $0xac] ss:$16 sps:$4 sm:$0xff]  }
 0x20e   :  { %2584 = vmatprep.subr.bf16.mxu1 %v3845_v57  ;;  %2625 = vmatprep.subr.bf16.mxu0 %v3911_v11  ;;  %v3900_v11 = vld [vmem:[%s5332_s9 + $0x68] ss:$16 sps:$4 sm:$0xff]  }
 0x211   :  { %2585 = vmatpush1.bf16.msra.mxu1 %v3843_v58  ;;  %2626 = vmatpush1.bf16.msra.mxu0 %v3909_v10  ;;  %v3902_v10 = vld [vmem:[%s5332_s9 + $0x6c] ss:$16 sps:$4 sm:$0xff]  }
 0x212   :  { %2586 = vmatprep.subr.bf16.mxu1 %v3848_v61  ;;  %2627 = vmatprep.subr.bf16.mxu0 %v3917_v15  ;;  %v3912_v15 = vld [vmem:[%s5332_s9 + $0x28] ss:$16 sps:$4 sm:$0xff]  }
 0x215   :  { %2587 = vmatpush1.bf16.msra.mxu1 %v3846_v62  ;;  %2628 = vmatpush1.bf16.msra.mxu0 %v3915_v14  ;;  %v3914_v14 = vld [vmem:[%s5332_s9 + $0x2c] ss:$16 sps:$4 sm:$0xff]  }
 0x216   :  { %2588 = vmatprep.subr.bf16.mxu1 %v3851_v1  ;;  %2629 = vmatprep.subr.bf16.mxu0 %v3923_v19  ;;  %v3884_v1 = vld [vmem:[%s5332_s9 + $0xcc] ss:$16 sps:$4 sm:$0xff]   ;;  %v3924_v19 = vld [vmem:[%s5332_s9 + $0x1e8] ss:$16 sps:$4 sm:$0xff]  }
 0x219   :  { %2589 = vmatpush2.bf16.msra.mxu1 %v3849_v2  ;;  %2630 = vmatpush2.bf16.msra.mxu0 %v3921_v18  ;;  %v3882_v2 = vld [vmem:[%s5332_s9 + $0xc8] ss:$16 sps:$4 sm:$0xff]   ;;  %v3926_v18 = vld [vmem:[%s5332_s9 + $0x1ec] ss:$16 sps:$4 sm:$0xff]  }
 0x21a   :  { %2590 = vmatprep.subr.bf16.mxu1 %v3854_v7  ;;  %2631 = vmatprep.subr.bf16.mxu0 %v3929_v22  ;;  %v3896_v7 = vld [vmem:[%s5332_s9 + $0x8c] ss:$16 sps:$4 sm:$0xff]   ;;  %v3936_v22 = vld [vmem:[%s5332_s9 + $0x1a8] ss:$16 sps:$4 sm:$0xff]  }
 0x21d   :  { %2591 = vmatpush2.bf16.msra.mxu1 %v3852_v8  ;;  %2632 = vmatpush2.bf16.msra.mxu0 %v3927_v21  ;;  %v3894_v8 = vld [vmem:[%s5332_s9 + $0x88] ss:$16 sps:$4 sm:$0xff]   ;;  %v3938_v21 = vld [vmem:[%s5332_s9 + $0x1ac] ss:$16 sps:$4 sm:$0xff]  }
 0x21e   :  { %2592 = vmatprep.subr.bf16.mxu1 %v3857_v12  ;;  %2633 = vmatprep.subr.bf16.mxu0 %v3935_v38  ;;  %v3908_v12 = vld [vmem:[%s5332_s9 + $0x4c] ss:$16 sps:$4 sm:$0xff]   ;;  %v3948_v38 = vld [vmem:[%s5332_s9 + $0x168] ss:$16 sps:$4 sm:$0xff]  }
 0x221   :  { %2593 = vmatpush2.bf16.msra.mxu1 %v3855_v13  ;;  %2634 = vmatpush2.bf16.msra.mxu0 %v3933_v25  ;;  %v3906_v13 = vld [vmem:[%s5332_s9 + $0x48] ss:$16 sps:$4 sm:$0xff]   ;;  %v3950_v25 = vld [vmem:[%s5332_s9 + $0x16c] ss:$16 sps:$4 sm:$0xff]  }
 0x222   :  { %2594 = vmatprep.subr.bf16.mxu1 %v3860_v16  ;;  %2635 = vmatprep.subr.bf16.mxu0 %v3941_v28  ;;  %v3920_v16 = vld [vmem:[%s5332_s9 + $0xc] ss:$16 sps:$4 sm:$0xff]  }
 0x223   :  { %v3962_v28 = vld [vmem:[%s5332_s9 + $0x12c] ss:$16 sps:$4 sm:$0xff]  }
 0x225   :  { %2595 = vmatpush2.bf16.msra.mxu1 %v3858_v17  ;;  %2636 = vmatpush2.bf16.msra.mxu0 %v3939_v27  ;;  %v3918_v17 = vld [vmem:[%s5332_s9 + $0x8] ss:$16 sps:$4 sm:$0xff]  }
 0x226   :  { %2596 = vmatprep.subr.bf16.mxu1 %v3863_v9  ;;  %2637 = vmatprep.subr.bf16.mxu0 %v3947_v39  ;;  %v3932_v9 = vld [vmem:[%s5332_s9 + $0x1cc] ss:$16 sps:$4 sm:$0xff]   ;;  %v3954_v27 = vld [vmem:[%s5332_s9 + $0x148] ss:$16 sps:$4 sm:$0xff]  }
 0x229   :  { %2597 = vmatpush2.bf16.msra.mxu1 %v3861_v20  ;;  %2638 = vmatpush2.bf16.msra.mxu0 %v3945_v31  ;;  %v3930_v20 = vld [vmem:[%s5332_s9 + $0x1c8] ss:$16 sps:$4 sm:$0xff]  }
 0x22a   :  { %2598 = vmatprep.subr.bf16.mxu1 %v3866_v23  ;;  %2639 = vmatprep.subr.bf16.mxu0 %v3953_v35  ;;  %v3944_v23 = vld [vmem:[%s5332_s9 + $0x18c] ss:$16 sps:$4 sm:$0xff]  }
 0x22d   :  { %2599 = vmatpush2.bf16.msra.mxu1 %v3864_v24  ;;  %2640 = vmatpush2.bf16.msra.mxu0 %v3951_v34  ;;  %v3942_v24 = vld [vmem:[%s5332_s9 + $0x188] ss:$16 sps:$4 sm:$0xff]  }
 0x22e   :  { %2600 = vmatprep.subr.bf16.mxu1 %v3869_v26  ;;  %2641 = vmatprep.subr.bf16.mxu0 %v3959_v36  ;;  %v3956_v26 = vld [vmem:[%s5332_s9 + $0x14c] ss:$16 sps:$4 sm:$0xff]  }
 0x22f   :  { %v3968_v36 = vld [vmem:[%s5332_s9 + $0x10c] ss:$16 sps:$4 sm:$0xff]  }
 0x231   :  { %2601 = vmatpush2.bf16.msra.mxu1 %v3867_v44  ;;  %2642 = vmatpush2.bf16.msra.mxu0 %v3957_v37  ;;  %v961_v44 = vrot.slane %v5012_v46, %v4604_v5 }
 0x232   :  { %2602 = vmatprep.subr.bf16.mxu1 %v3872_v29  ;;  %2643 = vmatprep.subr.bf16.mxu0 %v3965_v40  ;;  %v965_v29 = vrot.slane %v5012_v46, %v4607_v6 }
 0x235   :  { %2603 = vmatpush2.bf16.msra.mxu1 %v3870_v30  ;;  %2644 = vmatpush2.bf16.msra.mxu0 %v3963_v41 }
 0x236   :  { %2654 = vmatprep.subr.bf16.mxu1 %v3878_v33  ;;  %2695 = vmatprep.subr.bf16.mxu0 %v3971_v43  ;;  %v3960_v33 = vld [vmem:[%s5332_s9 + $0x128] ss:$16 sps:$4 sm:$0xff]  }
 0x278   :  { %v1644_v48 = vpop.f32.mrf.mxu1  ;;  %v1685_v49 = vpop.f32.mrf.mxu0 }
 0x279   :  { %v1645_v50 = vadd.f32 %v1644_v48, %v953_v32  ;;  %v3966_v32 = vld [vmem:[%s5332_s9 + $0x108] ss:$16 sps:$4 sm:$0xff]  }
 0x27a   :  { %v1646_v51 = vpop.f32.mrf.mxu1  ;;  %v1687_v52 = vpop.f32.mrf.mxu0 }
 0x27b   :  { %v1686_v53 = vadd.f32 %v1685_v49, %v1645_v50  ;;  %v1647_v54 = vadd.f32 %v1646_v51, %v957_v47 }
 0x27c   :  { %v1648_v55 = vpop.f32.mrf.mxu1  ;;  %v1689_v56 = vpop.f32.mrf.mxu0 }
 0x27d   :  { %v1688_v57 = vadd.f32 %v1687_v52, %v1647_v54  ;;  %v1774_v58 = vmax.f32 %v1686_v53, 0.0  ;;  %v3969_v52 = vld [vmem:[%s5332_s9 + $0x2e8] ss:$16 sps:$4 sm:$0xff]   ;;  %v3974_v54 = vld [vmem:[%s5332_s9 + $0x2cc] ss:$16 sps:$4 sm:$0xff]  }
 0x27e   :  { %v1649_v59 = vpop.f32.mrf.mxu1  ;;  %v1690_v60 = vpop.f32.mrf.mxu0  ;;  %v3972_v55 = vld [vmem:[%s5332_s9 + $0x2c8] ss:$16 sps:$4 sm:$0xff]   ;;  %v3977_v56 = vld [vmem:[%s5332_s9 + $0x2ac] ss:$16 sps:$4 sm:$0xff]  }
 0x27f   :  { %v1775_v61 = vmax.f32 %v1688_v57, 0.0  ;;  %v5021_v0 = vpack.c.bf16 %v1774_v58, %v1774_v58  ;;  %v3975_v57 = vld [vmem:[%s5332_s9 + $0x2a8] ss:$16 sps:$4 sm:$0xff]   ;;  %v3980_v58 = vld [vmem:[%s5332_s9 + $0x28c] ss:$16 sps:$4 sm:$0xff]  }
 0x280   :  { %v3978_v59 = vld [vmem:[%s5332_s9 + $0x288] ss:$16 sps:$4 sm:$0xff]  }
 0x281   :  { %v1779_v62 = vpack.c.bf16 %v1775_v61, %v1775_v61  ;;  %v4017_v60 = vld [vmem:[%s5335_s11 + $0x78] sm:$0xff]  }
 0x282   :  { %v3983_v61 = vld [vmem:[%s5332_s9 + $0x26c] ss:$16 sps:$4 sm:$0xff]  }
 0x283   :  { %2604 = vmatprep.mubr.bf16.mxu1 %v1779_v62 }
 0x284   :  { %2605 = vmatmul.mubr.bf16.vlgmr.msra.gmra.mxu1 %v5021_v0 }
 0x285   :  { %2655 = vmatpush1.bf16.msra.mxu1 %v3876_v63  ;;  %2686 = vmatprep.mubr.bf16.mxu1 %v1779_v62  ;;  %v4018_v62 = vld [vmem:[%s5335_s11 + $0x38] sm:$0xff]   ;;  %v4019_v63 = vld [vmem:[%s5335_s11 + $0x70] sm:$0xff]  }
 0x286   :  { %2656 = vmatprep.subr.bf16.mxu1 %v3884_v1  ;;  %v4021_v1 = vld [vmem:[%s5335_s11 + $0x68] sm:$0xff]  }
 0x289   :  { %2657 = vmatpush1.bf16.msra.mxu1 %v3882_v2  ;;  %v3981_v2 = vld [vmem:[%s5332_s9 + $0x268] ss:$16 sps:$4 sm:$0xff]  }
 0x28a   :  { %2658 = vmatprep.subr.bf16.mxu1 %v3890_v3  ;;  %v3986_v3 = vld [vmem:[%s5332_s9 + $0x24c] ss:$16 sps:$4 sm:$0xff]  }
 0x28d   :  { %2659 = vmatpush1.bf16.msra.mxu1 %v3888_v4  ;;  %v4022_v4 = vld [vmem:[%s5335_s11 + $0x28] sm:$0xff]  }
 0x28e   :  { %2660 = vmatprep.subr.bf16.mxu1 %v3896_v7  ;;  %v3984_v7 = vld [vmem:[%s5332_s9 + $0x248] ss:$16 sps:$4 sm:$0xff]  }
 0x291   :  { %2661 = vmatpush1.bf16.msra.mxu1 %v3894_v8  ;;  %v4023_v8 = vld [vmem:[%s5335_s11 + $0x60] sm:$0xff]  }
 0x292   :  { %2662 = vmatprep.subr.bf16.mxu1 %v3902_v10  ;;  %v3989_v10 = vld [vmem:[%s5332_s9 + $0x22c] ss:$16 sps:$4 sm:$0xff]  }
 0x295   :  { %2663 = vmatpush1.bf16.msra.mxu1 %v3900_v11  ;;  %v4024_v11 = vld [vmem:[%s5335_s11 + $0x20] sm:$0xff]  }
 0x296   :  { %2664 = vmatprep.subr.bf16.mxu1 %v3908_v12  ;;  %v4025_v12 = vld [vmem:[%s5335_s11 + $0x58] sm:$0xff]  }
 0x299   :  { %2665 = vmatpush1.bf16.msra.mxu1 %v3906_v13  ;;  %v3987_v13 = vld [vmem:[%s5332_s9 + $0x228] ss:$16 sps:$4 sm:$0xff]  }
 0x29a   :  { %2666 = vmatprep.subr.bf16.mxu1 %v3914_v14  ;;  %v3992_v14 = vld [vmem:[%s5332_s9 + $0x20c] ss:$16 sps:$4 sm:$0xff]  }
 0x29d   :  { %2667 = vmatpush1.bf16.msra.mxu1 %v3912_v15  ;;  %v4026_v15 = vld [vmem:[%s5335_s11 + $0x18] sm:$0xff]  }
 0x29e   :  { %2668 = vmatprep.subr.bf16.mxu1 %v3920_v16  ;;  %v4027_v16 = vld [vmem:[%s5335_s11 + $0x50] sm:$0xff]  }
 0x2a1   :  { %2669 = vmatpush1.bf16.msra.mxu1 %v3918_v17  ;;  %v3990_v17 = vld [vmem:[%s5332_s9 + $0x208] ss:$16 sps:$4 sm:$0xff]  }
 0x2a2   :  { %2670 = vmatprep.subr.bf16.mxu1 %v3926_v18  ;;  %v3995_v18 = vld [vmem:[%s5332_s9 + $0x3ec] ss:$16 sps:$4 sm:$0xff]  }
 0x2a5   :  { %2671 = vmatpush2.bf16.msra.mxu1 %v3924_v19  ;;  %v4028_v19 = vld [vmem:[%s5335_s11 + $0x10] sm:$0xff]  }
 0x2a6   :  { %2672 = vmatprep.subr.bf16.mxu1 %v3932_v9  ;;  %v3993_v9 = vld [vmem:[%s5332_s9 + $0x3e8] ss:$16 sps:$4 sm:$0xff]  }
 0x2a9   :  { %2673 = vmatpush2.bf16.msra.mxu1 %v3930_v20  ;;  %v3998_v20 = vld [vmem:[%s5332_s9 + $0x3cc] ss:$16 sps:$4 sm:$0xff]  }
 0x2aa   :  { %2674 = vmatprep.subr.bf16.mxu1 %v3938_v21  ;;  %v3996_v21 = vld [vmem:[%s5332_s9 + $0x3c8] ss:$16 sps:$4 sm:$0xff]  }
 0x2ad   :  { %2675 = vmatpush2.bf16.msra.mxu1 %v3936_v22  ;;  %v4001_v22 = vld [vmem:[%s5332_s9 + $0x3ac] ss:$16 sps:$4 sm:$0xff]  }
 0x2ae   :  { %2676 = vmatprep.subr.bf16.mxu1 %v3944_v23  ;;  %v3999_v23 = vld [vmem:[%s5332_s9 + $0x3a8] ss:$16 sps:$4 sm:$0xff]  }
 0x2b1   :  { %2677 = vmatpush2.bf16.msra.mxu1 %v3942_v24  ;;  %v4004_v24 = vld [vmem:[%s5332_s9 + $0x38c] ss:$16 sps:$4 sm:$0xff]  }
 0x2b2   :  { %2678 = vmatprep.subr.bf16.mxu1 %v3950_v25  ;;  %v4002_v25 = vld [vmem:[%s5332_s9 + $0x388] ss:$16 sps:$4 sm:$0xff]  }
 0x2b5   :  { %2679 = vmatpush2.bf16.msra.mxu1 %v3948_v38  ;;  %v4007_v38 = vld [vmem:[%s5332_s9 + $0x36c] ss:$16 sps:$4 sm:$0xff]  }
 0x2b6   :  { %2680 = vmatprep.subr.bf16.mxu1 %v3956_v26  ;;  %v4005_v26 = vld [vmem:[%s5332_s9 + $0x368] ss:$16 sps:$4 sm:$0xff]  }
 0x2b8   :  { %v1726_v30 = vpop.f32.mrf.mxu1  ;;  %v1767_v31 = vpop.f32.mrf.mxu0 }
 0x2b9   :  { %v1727_v39 = vadd.f32 %v1726_v30, %v961_v44  ;;  %2681 = vmatpush2.bf16.msra.mxu1 %v3954_v27  ;;  %v4010_v44 = vld [vmem:[%s5332_s9 + $0x34c] ss:$16 sps:$4 sm:$0xff]   ;;  %v4008_v27 = vld [vmem:[%s5332_s9 + $0x348] ss:$16 sps:$4 sm:$0xff]  }
 0x2ba   :  { %v1728_v34 = vpop.f32.mrf.mxu1  ;;  %v1769_v35 = vpop.f32.mrf.mxu0  ;;  %2682 = vmatprep.subr.bf16.mxu1 %v3962_v28  ;;  %v4013_v28 = vld [vmem:[%s5332_s9 + $0x32c] ss:$16 sps:$4 sm:$0xff]  }
 0x2bb   :  { %v1768_v37 = vadd.f32 %v1767_v31, %v1727_v39  ;;  %v1729_v40 = vadd.f32 %v1728_v34, %v965_v29  ;;  %v4011_v29 = vld [vmem:[%s5332_s9 + $0x328] ss:$16 sps:$4 sm:$0xff]   ;;  %v4016_v30 = vld [vmem:[%s5332_s9 + $0x30c] ss:$16 sps:$4 sm:$0xff]   ;;  %v4031_v34 = vld [vmem:[%s5335_s11 + $0x40] sm:$0xff]  }
 0x2bc   :  { %v1730_v41 = vpop.f32.mrf.mxu1  ;;  %v1771_v43 = vpop.f32.mrf.mxu0  ;;  %v4014_v31 = vld [vmem:[%s5332_s9 + $0x308] ss:$16 sps:$4 sm:$0xff]  }
 0x2bd   :  { %v1770_v46 = vadd.f32 %v1769_v35, %v1729_v40  ;;  %2683 = vmatpush2.bf16.msra.mxu1 %v3960_v33  ;;  %v1776_v47 = vmax.f32 %v1768_v37, 0.0  ;;  %v4029_v39 = vld [vmem:[%s5335_s11 + $0x48] sm:$0xff]   ;;  %v4032_v35 = vld [vmem:[%s5335_s11] sm:$0xff]   ;;  %v4034_v37 = vld [vmem:[%s5335_s11 + $0xb8] sm:$0xff]  }
 0x2be   :  { %v1731_v48 = vpop.f32.mrf.mxu1  ;;  %v1772_v49 = vpop.f32.mrf.mxu0  ;;  %2684 = vmatprep.subr.bf16.mxu1 %v3968_v36  ;;  %v4030_v33 = vld [vmem:[%s5335_s11 + $0x8] sm:$0xff]   ;;  %v4033_v36 = vld [vmem:[%s5335_s11 + $0xf8] sm:$0xff]   ;;  %v4035_v40 = vld [vmem:[%s5335_s11 + $0xf0] sm:$0xff]  }
 0x2bf   :  { %v1777_v50 = vmax.f32 %v1770_v46, 0.0  ;;  %v5121_v53 = vpack.c.bf16 %v1776_v47, %v1776_v47  ;;  %v4036_v41 = vld [vmem:[%s5335_s11 + $0xb0] sm:$0xff]   ;;  %v4037_v43 = vld [vmem:[%s5335_s11 + $0xe8] sm:$0xff]   ;;  %v4040_v47 = vld [vmem:[%s5335_s11 + $0xa0] sm:$0xff]  }
 0x2c0   :  { %v4038_v46 = vld [vmem:[%s5335_s11 + $0xa8] sm:$0xff]   ;;  %v4041_v48 = vld [vmem:[%s5335_s11 + $0xd8] sm:$0xff]  }
 0x2c1   :  { %v1781_v51 = vpack.c.bf16 %v1777_v50, %v1777_v50  ;;  %2685 = vmatpush2.bf16.msra.mxu1 %v3966_v32  ;;  %v4039_v32 = vld [vmem:[%s5335_s11 + $0xe0] sm:$0xff]   ;;  %v4042_v49 = vld [vmem:[%s5335_s11 + $0x98] sm:$0xff]   ;;  %v4043_v50 = vld [vmem:[%s5335_s11 + $0xd0] sm:$0xff]  }
 0x2c2   :  { %3466 = vmatprep.subr.bf16.mxu1 %v4017_v60  ;;  %v1910_v60 = vld [vmem:[%s5336_s10] sm:$0xf] }
 0x2c3   :  { %2645 = vmatprep.mubr.bf16.mxu0 %v1781_v51 }
 0x2c4   :  { %2646 = vmatmul.mubr.bf16.vlgmr.msra.gmra.mxu0 %v5121_v53  ;;  %2687 = vmatmul.mubr.bf16.vlgmr.msra.gmra.mxu1 %v5021_v0  ;;  %v4020_v0 = vld [vmem:[%s5335_s11 + $0x30] sm:$0xff]  }
 0x2c5   :  { %2696 = vmatpush1.bf16.msra.mxu0 %v3969_v52  ;;  %2727 = vmatprep.mubr.bf16.mxu0 %v1781_v51  ;;  %v4044_v51 = vld [vmem:[%s5335_s11 + $0x90] sm:$0xff]  }
 0x2c6   :  { %2697 = vmatprep.subr.bf16.mxu0 %v3974_v54  ;;  %3467 = vmatpush3.bf16.msra.mxu1 %v4018_v62  ;;  %v4046_v54 = vld [vmem:[%s5335_s11 + $0x88] sm:$0xff]   ;;  %v1919_v62 = vrot.slane %v1910_v60, %v4402_v45  ;;  %v1927_v45 = vrot.slane %v1910_v60, %v4607_v6  ;;  %v3433_v6 = vld [vmem:[%s5337_s12] ss:$0 sm:$0xff] }
 0x2c7   :  { %3468 = vmatprep.subr.bf16.mxu1 %v4019_v63 }
 0x2c9   :  { %2698 = vmatpush1.bf16.msra.mxu0 %v3972_v55 }
 0x2ca   :  { %2699 = vmatprep.subr.bf16.mxu0 %v3977_v56  ;;  %3469 = vmatpush3.bf16.msra.mxu1 %v4020_v0 }
 0x2cb   :  { %3470 = vmatprep.subr.bf16.mxu1 %v4021_v1 }
 0x2cd   :  { %2700 = vmatpush1.bf16.msra.mxu0 %v3975_v57  ;;  %v4047_v57 = vld [vmem:[%s5335_s11 + $0xc0] sm:$0xff]  }
 0x2ce   :  { %2701 = vmatprep.subr.bf16.mxu0 %v3980_v58  ;;  %3471 = vmatpush3.bf16.msra.mxu1 %v4022_v4  ;;  %v4048_v58 = vld [vmem:[%s5335_s11 + $0x80] sm:$0xff]  }
 0x2cf   :  { %3472 = vmatprep.subr.bf16.mxu1 %v4023_v8 }
 0x2d1   :  { %2702 = vmatpush1.bf16.msra.mxu0 %v3978_v59 }
 0x2d2   :  { %2703 = vmatprep.subr.bf16.mxu0 %v3983_v61  ;;  %3473 = vmatpush3.bf16.msra.mxu1 %v4024_v11  ;;  %v1915_v61 = vrot.slane %v1910_v60, %v4394_v42  ;;  %v1923_v42 = vrot.slane %v1910_v60, %v4604_v5 }
 0x2d3   :  { %3474 = vmatprep.subr.bf16.mxu1 %v4025_v12 }
 0x2d5   :  { %2704 = vmatpush1.bf16.msra.mxu0 %v3981_v2 }
 0x2d6   :  { %2705 = vmatprep.subr.bf16.mxu0 %v3986_v3  ;;  %3475 = vmatpush3.bf16.msra.mxu1 %v4026_v15 }
 0x2d7   :  { %3476 = vmatprep.subr.bf16.mxu1 %v4027_v16 }
 0x2d9   :  { %2706 = vmatpush1.bf16.msra.mxu0 %v3984_v7 }
 0x2da   :  { %2707 = vmatprep.subr.bf16.mxu0 %v3989_v10  ;;  %3477 = vmatpush3.bf16.msra.mxu1 %v4028_v19 }
 0x2db   :  { %3478 = vmatprep.subr.bf16.mxu1 %v4029_v39 }
 0x2dd   :  { %2708 = vmatpush1.bf16.msra.mxu0 %v3987_v13 }
 0x2de   :  { %2709 = vmatprep.subr.bf16.mxu0 %v3992_v14  ;;  %3479 = vmatpush3.bf16.msra.mxu1 %v4030_v33 }
 0x2df   :  { %3480 = vmatprep.subr.bf16.mxu1 %v4031_v34 }
 0x2e1   :  { %2710 = vmatpush1.bf16.msra.mxu0 %v3990_v17 }
 0x2e2   :  { %2711 = vmatprep.subr.bf16.mxu0 %v3995_v18  ;;  %3481 = vmatpush3.bf16.msra.mxu1 %v4032_v35 }
 0x2e5   :  { %2712 = vmatpush2.bf16.msra.mxu0 %v3993_v9 }
 0x2e6   :  { %2713 = vmatprep.subr.bf16.mxu0 %v3998_v20 }
 0x2e9   :  { %2714 = vmatpush2.bf16.msra.mxu0 %v3996_v21 }
 0x2ea   :  { %2715 = vmatprep.subr.bf16.mxu0 %v4001_v22 }
 0x2ed   :  { %2716 = vmatpush2.bf16.msra.mxu0 %v3999_v23 }
 0x2ee   :  { %2717 = vmatprep.subr.bf16.mxu0 %v4004_v24 }
 0x2f1   :  { %2718 = vmatpush2.bf16.msra.mxu0 %v4002_v25 }
 0x2f2   :  { %2719 = vmatprep.subr.bf16.mxu0 %v4007_v38 }
 0x2f5   :  { %2720 = vmatpush2.bf16.msra.mxu0 %v4005_v26 }
 0x2f6   :  { %2721 = vmatprep.subr.bf16.mxu0 %v4010_v44 }
 0x2f9   :  { %2722 = vmatpush2.bf16.msra.mxu0 %v4008_v27 }
 0x2fa   :  { %2723 = vmatprep.subr.bf16.mxu0 %v4013_v28 }
 0x2fd   :  { %2724 = vmatpush2.bf16.msra.mxu0 %v4011_v29 }
 0x2fe   :  { %2725 = vmatprep.subr.bf16.mxu0 %v4016_v30 }
 0x301   :  { %2726 = vmatpush2.bf16.msra.mxu0 %v4014_v31 }
 0x302   :  { %3488 = vmatprep.subr.bf16.mxu0 %v4033_v36 }
 0x304   :  { %2728 = vmatmul.mubr.bf16.vlgmr.msra.gmra.mxu0 %v5121_v53  ;;  %v4045_v53 = vld [vmem:[%s5335_s11 + $0xc8] sm:$0xff]  }
 0x305   :  { %3489 = vmatpush3.bf16.msra.mxu0 %v4034_v37 }
 0x306   :  { %3490 = vmatprep.subr.bf16.mxu0 %v4035_v40 }
 0x309   :  { %3491 = vmatpush3.bf16.msra.mxu0 %v4036_v41 }
 0x30a   :  { %3492 = vmatprep.subr.bf16.mxu0 %v4037_v43 }
 0x30d   :  { %3493 = vmatpush3.bf16.msra.mxu0 %v4038_v46 }
 0x30e   :  { %3494 = vmatprep.subr.bf16.mxu0 %v4039_v32 }
 0x311   :  { %3495 = vmatpush3.bf16.msra.mxu0 %v4040_v47 }
 0x312   :  { %3496 = vmatprep.subr.bf16.mxu0 %v4041_v48 }
 0x315   :  { %3497 = vmatpush3.bf16.msra.mxu0 %v4042_v49 }
 0x316   :  { %3498 = vmatprep.subr.bf16.mxu0 %v4043_v50 }
 0x319   :  { %3499 = vmatpush3.bf16.msra.mxu0 %v4044_v51 }
 0x31a   :  { %3500 = vmatprep.subr.bf16.mxu0 %v4045_v53 }
 0x31d   :  { %3501 = vmatpush3.bf16.msra.mxu0 %v4046_v54 }
 0x31e   :  { %3502 = vmatprep.subr.bf16.mxu0 %v4047_v57 }
 0x321   :  { %3503 = vmatpush3.bf16.msra.mxu0 %v4048_v58 }
 0x344   :  { %v2606_v52 = vpop.f32.mrf.mxu1 }
 0x345   :  { %v2607_v63 = vadd.f32 %v2606_v52, %v1915_v61 }
 0x346   :  { %v2608_v55 = vpop.f32.mrf.mxu1 }
 0x347   :  { %v2609_v2 = vadd.f32 %v2608_v55, %v1919_v62 }
 0x348   :  { %v2610_v56 = vpop.f32.mrf.mxu1 }
 0x34a   :  { %v2611_v59 = vpop.f32.mrf.mxu1 }
 0x384   :  { %v2647_v0 = vpop.f32.mrf.mxu0  ;;  %v2688_v1 = vpop.f32.mrf.mxu1 }
 0x385   :  { %v2648_v3 = vadd.f32 %v2647_v0, %v2607_v63  ;;  %v2689_v18 = vadd.f32 %v2688_v1, %v1923_v42 }
 0x386   :  { %v2649_v4 = vpop.f32.mrf.mxu0  ;;  %v2690_v7 = vpop.f32.mrf.mxu1 }
 0x387   :  { %v2650_v8 = vadd.f32 %v2649_v4, %v2609_v2  ;;  %v2736_v10 = vmax.f32 %v2648_v3, 0.0  ;;  %v2691_v9 = vadd.f32 %v2690_v7, %v1927_v45 }
 0x388   :  { %v2651_v11 = vpop.f32.mrf.mxu0  ;;  %v2692_v12 = vpop.f32.mrf.mxu1 }
 0x389   :  { %v2737_v13 = vmax.f32 %v2650_v8, 0.0  ;;  %v2740_v17 = vpack.c.bf16 %v2736_v10, %v2736_v10 }
 0x38a   :  { %v2652_v14 = vpop.f32.mrf.mxu0  ;;  %v2693_v15 = vpop.f32.mrf.mxu1 }
 0x38b   :  { %v2741_v16 = vpack.c.bf16 %v2737_v13, %v2737_v13 }
 0x38d   :  { %3039 = vmatprep.mubr.bf16.mxu1 %v2741_v16 }
 0x38e   :  { %3040 = vmatmul.mubr.bf16.vlgmr.msra.gmra.mxu1 %v2740_v17 }
 0x3c4   :  { %v2729_v19 = vpop.f32.mrf.mxu0 }
 0x3c5   :  { %v2730_v20 = vadd.f32 %v2729_v19, %v2689_v18 }
 0x3c6   :  { %v2731_v21 = vpop.f32.mrf.mxu0 }
 0x3c7   :  { %v2732_v22 = vadd.f32 %v2731_v21, %v2691_v9  ;;  %v2738_v23 = vmax.f32 %v2730_v20, 0.0 }
 0x3c8   :  { %v2733_v24 = vpop.f32.mrf.mxu0 }
 0x3c9   :  { %v2739_v25 = vmax.f32 %v2732_v22, 0.0  ;;  %v2742_v44 = vpack.c.bf16 %v2738_v23, %v2738_v23 }
 0x3ca   :  { %v2734_v38 = vpop.f32.mrf.mxu0 }
 0x3cb   :  { %v2743_v26 = vpack.c.bf16 %v2739_v25, %v2739_v25 }
 0x3cd   :  { %3079 = vmatprep.mubr.bf16.mxu0 %v2743_v26 }
 0x3ce   :  { %3080 = vmatmul.mubr.bf16.vlgmr.msra.gmra.mxu0 %v2742_v44 }
 0x44e   :  { %v3482_v27 = vpop.f32.mrf.mxu1 }
 0x450   :  { %v3483_v28 = vpop.f32.mrf.mxu1 }
 0x451   :  { %v3484_v30 = vadd.f32 %v3483_v28, %v3482_v27 }
 0x452   :  { %v3485_v29 = vpop.f32.mrf.mxu1 }
 0x453   :  { %v3042_v33 = vadd.f32 %v3484_v30, %v3433_v6 }
 0x454   :  { %v3486_v5 = vpop.f32.mrf.mxu1 }
 0x48e   :  { %v3504_v31 = vpop.f32.mrf.mxu0 }
 0x490   :  { %v3505_v39 = vpop.f32.mrf.mxu0 }
 0x491   :  { %v3506_v34 = vadd.f32 %v3505_v39, %v3504_v31 }
 0x492   :  { %v3507_v35 = vpop.f32.mrf.mxu0 }
 0x493   :  { %v3082_v36 = vadd.f32 %v3506_v34, %v3042_v33 }
 0x494   :  { %v3508_v37 = vpop.f32.mrf.mxu0 }
 0x495   :  { %3088 = vst.msk [vmem:[%s5338_s13] sm:$0x3] %vm3087_vm2, %v3082_v36 }

</bundles_post_ra>
